<compile_context>
chip_gen: v7x
topology: tpu7x:2x2x1
jax: 0.10.0
libtpu: 0.0.40
codegen_flags: <defaults>
</compile_context>

<pallas_src>
import jax
import jax.numpy as jnp
from jax import lax
from jax.experimental import pallas as pl
from jax.experimental.pallas import tpu as pltpu


def _conv1d_relu_vpu(h, w_ref, b_ref, cout, first_mask, last_mask):
    """One Conv1d(k=3, pad=1) + ReLU, fully unrolled on the VPU.

    h:      (Cin, L, TB) f32 activations (L on sublanes, batch on lanes).
    w_ref:  SMEM ref, flat (Cout*Cin*3,) f32 in PyTorch (Cout, Cin, K) order.
    b_ref:  SMEM ref, (Cout,) f32.
    """
    cin, L, _ = h.shape
    # tap k=0 -> x[l-1] (left zero-pad), k=1 -> x[l], k=2 -> x[l+1] (right pad)
    h_lo = jnp.where(first_mask, 0.0, pltpu.roll(h, shift=1, axis=1))
    h_hi = jnp.where(last_mask, 0.0, pltpu.roll(h, shift=L - 1, axis=1))
    taps = (h_lo, h, h_hi)

    # Each (c, k) tap slab is sliced exactly once and the live vreg is reused
    # for all Cout scalar-weight FMAs (o is the innermost accumulation).
    accs = [None] * cout
    for c in range(cin):
        for k in range(3):
            tap = taps[k][c]                          # (L, TB), sliced once
            for o in range(cout):
                w = w_ref[(o * cin + c) * 3 + k]      # SMEM scalar weight
                term = w * tap                        # (L, TB) VPU multiply
                accs[o] = term if accs[o] is None else accs[o] + term
    outs = [jnp.maximum(accs[o] + b_ref[o], 0.0) for o in range(cout)]
    return jnp.stack(outs, axis=0)                    # (Cout, L, TB)


def encoder_conv_kernel(x_ref, w1_ref, b1_ref, w2_ref, b2_ref, w3_ref, b3_ref,
                        o_ref):
    # x_ref: (1, L, TB) VMEM block; o_ref: (8, TB) VMEM block; params in SMEM.
    L = x_ref.shape[1]
    # Hoisted boundary masks, shared by all six shifts of the three layers.
    lidx = lax.broadcasted_iota(jnp.int32, (1, L, 1), 1)
    first_mask = lidx == 0
    last_mask = lidx == L - 1

    h = x_ref[...]                                                     # (1, L, TB)
    h = _conv1d_relu_vpu(h, w1_ref, b1_ref, 4, first_mask, last_mask)  # (4, L, TB)
    h = _conv1d_relu_vpu(h, w2_ref, b2_ref, 8, first_mask, last_mask)  # (8, L, TB)
    h = _conv1d_relu_vpu(h, w3_ref, b3_ref, 4, first_mask, last_mask)  # (4, L, TB)
    m = jnp.mean(h, axis=1)                                            # (4, TB)
    # Pad to the native 8-sublane tile so the writeback store is unmasked.
    o_ref[...] = jnp.concatenate([m, jnp.zeros_like(m)], axis=0)       # (8, TB)


def _vmem_capacity_bytes():
    try:
        cap = getattr(pltpu.get_tpu_info(), "vmem_capacity_bytes", None)
        if cap:
            return int(cap)
    except Exception:
        pass
    return 64 * 1024 * 1024   # conservative (v7x per-TC VMEM)


def _pick_batch_tile(B, L):
    """Lane-dense batch tile that divides ceil(B/128)*128 (minimal padding)."""
    bp = ((B + 127) // 128) * 128        # minimal lane-dense padded batch
    if bp <= 128:
        return 128, 128                  # one full 128-lane block, unmasked I/O

    cap_bytes = _vmem_capacity_bytes()
    budget = cap_bytes // 8              # ~16 MiB on v5e/v6e, ~8 MiB on v7x
    # Worst layer keeps ~36 live (L, TB) f32 slabs.
    cap = budget // (36 * L * 4)
    cap = max(128, min(2048, (cap // 128) * 128))
    # At least two grid steps once B exceeds one tile: keeps the input DMA
    # double-buffered and lets v7x split batch tiles across its 2 TensorCores.
    cap = min(cap, max(128, (bp // 2 // 128) * 128))

    # Largest multiple-of-128 divisor of bp that fits the cap, so bp never
    # gets rounded up further (no padded-column work beyond the 128 minimum).
    n128 = bp // 128
    best = 1
    for d in range(1, n128 + 1):
        if n128 % d == 0 and d * 128 <= cap:
            best = d
    return best * 128, bp


def encoder_conv_forward(x, params):
    """x: (B, L) float; params: [(w (Cout,Cin,3), b (Cout,))] for the 3 layers."""
    B, L = x.shape
    tb, bp = _pick_batch_tile(B, L)

    # Layout glue: (B, L) -> (1, L, bp), batch on the lane axis.  Pad + transpose
    # are written as a single producer expression so XLA fuses them into one
    # HBM pass instead of two.
    x_f32 = x.astype(jnp.float32)
    if bp != B:
        x_f32 = jnp.pad(x_f32, ((0, bp - B), (0, 0)))
    x3 = jnp.transpose(x_f32)[None, :, :]              # (1, L, bp)

    flat_params = []
    for (w, b) in params:
        flat_params.append(jnp.asarray(w, jnp.float32).reshape(-1))  # (Cout*Cin*3,)
        flat_params.append(jnp.asarray(b, jnp.float32).reshape(-1))  # (Cout,)

    vmem_limit = min(_vmem_capacity_bytes() // 2, 64 * 1024 * 1024)
    smem = pltpu.MemorySpace.SMEM
    out = pl.pallas_call(
        encoder_conv_kernel,
        out_shape=jax.ShapeDtypeStruct((8, bp), jnp.float32),
        grid=(bp // tb,),
        in_specs=[pl.BlockSpec((1, L, tb), lambda i: (0, 0, i))]
        + [pl.BlockSpec(memory_space=smem)] * len(flat_params),
        out_specs=pl.BlockSpec((8, tb), lambda i: (0, i)),
        compiler_params=pltpu.CompilerParams(
            dimension_semantics=("parallel",),   # v7x: shard batch tiles over 2 TCs
            vmem_limit_bytes=vmem_limit,
        ),
    )(x3, *flat_params)

    return jnp.transpose(out[:4, :B])               # (B, 4)


def reference_forward(x, params):
    """Pure-JAX reference matching PyTorch Conv1d (cross-correlation) exactly."""
    h = x[:, None, :].astype(jnp.float32)
    for (w, b) in params:
        h = lax.conv_general_dilated(
            h, w.astype(jnp.float32), window_strides=(1,), padding=[(1, 1)],
            dimension_numbers=('NCH', 'OIH', 'NCH'))
        h = h + b.astype(jnp.float32)[None, :, None]
        h = jnp.maximum(h, 0.0)
    return h.mean(axis=2)


def init_params(key, in_channels=1):
    shapes = [((4, in_channels, 3), (4,)),
              ((8, 4, 3), (8,)),
              ((4, 8, 3), (4,))]
    params = []
    for (ws, bs) in shapes:
        key, kw, kb = jax.random.split(key, 3)
        fan_in = ws[1] * ws[2]
        bound = 1.0 / (fan_in ** 0.5)
        w = jax.random.uniform(kw, ws, jnp.float32, -bound, bound)
        b = jax.random.uniform(kb, bs, jnp.float32, -bound, bound)
        params.append((w, b))
    return params


if __name__ == "__main__":
    key = jax.random.PRNGKey(0)
    key, kx = jax.random.split(key)

    # Small primary test (matches the module's expected input rank: (B, L)).
    B, L = 2, 16
    x = jax.random.normal(kx, (B, L), jnp.float32)
    params = init_params(key, in_channels=1)

    out = jax.block_until_ready(encoder_conv_forward(x, params))
    ref = jax.block_until_ready(reference_forward(x, params))
    assert out.shape == (B, 4), out.shape
    if not jnp.allclose(out, ref, atol=1e-5, rtol=1e-5):
        raise AssertionError(f"mismatch: pallas={out}, ref={ref}")

    # Larger batch: exercises the multi-step (grid > 1) tiled path with a
    # divisor-friendly tile (B=640 -> bp=640, tb=128, 5 grid steps, no waste).
    key, kx2 = jax.random.split(key)
    B2 = 640
    x2 = jax.random.normal(kx2, (B2, L), jnp.float32)
    out2 = jax.block_until_ready(encoder_conv_forward(x2, params))
    ref2 = jax.block_until_ready(reference_forward(x2, params))
    if not jnp.allclose(out2, ref2, atol=1e-5, rtol=1e-5):
        raise AssertionError("mismatch on tiled-batch path")

    print("KERNEL_OK")
</pallas_src>

<mosaic_0001>
module attributes {stable_mosaic.version = 11 : i64} {
  func.func @encoder_conv_kernel(%arg0: i32, %arg1: memref<1x16x128xf32, #tpu.memory_space<vmem>>, %arg2: memref<12xf32, #tpu.memory_space<smem>>, %arg3: memref<4xf32, #tpu.memory_space<smem>>, %arg4: memref<96xf32, #tpu.memory_space<smem>>, %arg5: memref<8xf32, #tpu.memory_space<smem>>, %arg6: memref<96xf32, #tpu.memory_space<smem>>, %arg7: memref<4xf32, #tpu.memory_space<smem>>, %arg8: memref<8x128xf32, #tpu.memory_space<vmem>>) attributes {dimension_semantics = [#tpu.dimension_semantics<parallel>], iteration_bounds = array<i64: 1>, scalar_prefetch = 0 : i64, scratch_operands = 0 : i64, tpu.core_type = #tpu.core_type<tc>, window_params = [{transform_indices = @transform_0, window_bounds = array<i64: 1, 16, 128>}, {transform_indices = @transform_1, window_bounds = array<i64: 12>}, {transform_indices = @transform_2, window_bounds = array<i64: 4>}, {transform_indices = @transform_3, window_bounds = array<i64: 96>}, {transform_indices = @transform_4, window_bounds = array<i64: 8>}, {transform_indices = @transform_5, window_bounds = array<i64: 96>}, {transform_indices = @transform_6, window_bounds = array<i64: 4>}, {transform_indices = @transform_7, window_bounds = array<i64: 8, 128>}]} {
    %0 = tpu.iota {dimensions = array<i32: 1>} : vector<1x16x1xi32>
    %c0_i32 = arith.constant 0 : i32
    %1 = vector.broadcast %c0_i32 : i32 to vector<1x16x1xi32>
    %2 = arith.cmpi eq, %0, %1 : vector<1x16x1xi32>
    %c15_i32 = arith.constant 15 : i32
    %3 = vector.broadcast %c15_i32 : i32 to vector<1x16x1xi32>
    %4 = arith.cmpi eq, %0, %3 : vector<1x16x1xi32>
    %c0 = arith.constant 0 : index
    %c0_0 = arith.constant 0 : index
    %c0_1 = arith.constant 0 : index
    %5 = vector.load %arg1[%c0, %c0_0, %c0_1] : memref<1x16x128xf32, #tpu.memory_space<vmem>>, vector<1x16x128xf32>
    %c1_i32 = arith.constant 1 : i32
    %6 = tpu.dynamic_rotate %5 by %c1_i32 dim 1 : vector<1x16x128xf32>, i32 -> vector<1x16x128xf32>
    %cst = arith.constant 0.000000e+00 : f32
    %7 = vector.shape_cast %2 : vector<1x16x1xi1> to vector<1x16x1xi1>
    %8 = vector.broadcast %7 : vector<1x16x1xi1> to vector<1x16x128xi1>
    %9 = vector.broadcast %cst : f32 to vector<1x16x128xf32>
    %10 = arith.select %8, %9, %6 : vector<1x16x128xi1>, vector<1x16x128xf32>
    %c15_i32_2 = arith.constant 15 : i32
    %11 = tpu.dynamic_rotate %5 by %c15_i32_2 dim 1 : vector<1x16x128xf32>, i32 -> vector<1x16x128xf32>
    %cst_3 = arith.constant 0.000000e+00 : f32
    %12 = vector.shape_cast %4 : vector<1x16x1xi1> to vector<1x16x1xi1>
    %13 = vector.broadcast %12 : vector<1x16x1xi1> to vector<1x16x128xi1>
    %14 = vector.broadcast %cst_3 : f32 to vector<1x16x128xf32>
    %15 = arith.select %13, %14, %11 : vector<1x16x128xi1>, vector<1x16x128xf32>
    %16 = vector.shape_cast %10 : vector<1x16x128xf32> to vector<16x128xf32>
    %c0_4 = arith.constant 0 : index
    %17 = memref.load %arg2[%c0_4] : memref<12xf32, #tpu.memory_space<smem>>
    %18 = vector.broadcast %17 : f32 to vector<16x128xf32>
    %19 = arith.mulf %18, %16 : vector<16x128xf32>
    %c3 = arith.constant 3 : index
    %20 = memref.load %arg2[%c3] : memref<12xf32, #tpu.memory_space<smem>>
    %21 = vector.broadcast %20 : f32 to vector<16x128xf32>
    %22 = arith.mulf %21, %16 : vector<16x128xf32>
    %c6 = arith.constant 6 : index
    %23 = memref.load %arg2[%c6] : memref<12xf32, #tpu.memory_space<smem>>
    %24 = vector.broadcast %23 : f32 to vector<16x128xf32>
    %25 = arith.mulf %24, %16 : vector<16x128xf32>
    %c9 = arith.constant 9 : index
    %26 = memref.load %arg2[%c9] : memref<12xf32, #tpu.memory_space<smem>>
    %27 = vector.broadcast %26 : f32 to vector<16x128xf32>
    %28 = arith.mulf %27, %16 : vector<16x128xf32>
    %29 = vector.shape_cast %5 : vector<1x16x128xf32> to vector<16x128xf32>
    %c1 = arith.constant 1 : index
    %30 = memref.load %arg2[%c1] : memref<12xf32, #tpu.memory_space<smem>>
    %31 = vector.broadcast %30 : f32 to vector<16x128xf32>
    %32 = arith.mulf %31, %29 : vector<16x128xf32>
    %33 = arith.addf %19, %32 : vector<16x128xf32>
    %c4 = arith.constant 4 : index
    %34 = memref.load %arg2[%c4] : memref<12xf32, #tpu.memory_space<smem>>
    %35 = vector.broadcast %34 : f32 to vector<16x128xf32>
    %36 = arith.mulf %35, %29 : vector<16x128xf32>
    %37 = arith.addf %22, %36 : vector<16x128xf32>
    %c7 = arith.constant 7 : index
    %38 = memref.load %arg2[%c7] : memref<12xf32, #tpu.memory_space<smem>>
    %39 = vector.broadcast %38 : f32 to vector<16x128xf32>
    %40 = arith.mulf %39, %29 : vector<16x128xf32>
    %41 = arith.addf %25, %40 : vector<16x128xf32>
    %c10 = arith.constant 10 : index
    %42 = memref.load %arg2[%c10] : memref<12xf32, #tpu.memory_space<smem>>
    %43 = vector.broadcast %42 : f32 to vector<16x128xf32>
    %44 = arith.mulf %43, %29 : vector<16x128xf32>
    %45 = arith.addf %28, %44 : vector<16x128xf32>
    %46 = vector.shape_cast %15 : vector<1x16x128xf32> to vector<16x128xf32>
    %c2 = arith.constant 2 : index
    %47 = memref.load %arg2[%c2] : memref<12xf32, #tpu.memory_space<smem>>
    %48 = vector.broadcast %47 : f32 to vector<16x128xf32>
    %49 = arith.mulf %48, %46 : vector<16x128xf32>
    %50 = arith.addf %33, %49 : vector<16x128xf32>
    %c5 = arith.constant 5 : index
    %51 = memref.load %arg2[%c5] : memref<12xf32, #tpu.memory_space<smem>>
    %52 = vector.broadcast %51 : f32 to vector<16x128xf32>
    %53 = arith.mulf %52, %46 : vector<16x128xf32>
    %54 = arith.addf %37, %53 : vector<16x128xf32>
    %c8 = arith.constant 8 : index
    %55 = memref.load %arg2[%c8] : memref<12xf32, #tpu.memory_space<smem>>
    %56 = vector.broadcast %55 : f32 to vector<16x128xf32>
    %57 = arith.mulf %56, %46 : vector<16x128xf32>
    %58 = arith.addf %41, %57 : vector<16x128xf32>
    %c11 = arith.constant 11 : index
    %59 = memref.load %arg2[%c11] : memref<12xf32, #tpu.memory_space<smem>>
    %60 = vector.broadcast %59 : f32 to vector<16x128xf32>
    %61 = arith.mulf %60, %46 : vector<16x128xf32>
    %62 = arith.addf %45, %61 : vector<16x128xf32>
    %c0_5 = arith.constant 0 : index
    %63 = memref.load %arg3[%c0_5] : memref<4xf32, #tpu.memory_space<smem>>
    %64 = vector.broadcast %63 : f32 to vector<16x128xf32>
    %65 = arith.addf %50, %64 : vector<16x128xf32>
    %cst_6 = arith.constant 0.000000e+00 : f32
    %66 = vector.broadcast %cst_6 : f32 to vector<16x128xf32>
    %67 = arith.maximumf %65, %66 : vector<16x128xf32>
    %c1_7 = arith.constant 1 : index
    %68 = memref.load %arg3[%c1_7] : memref<4xf32, #tpu.memory_space<smem>>
    %69 = vector.broadcast %68 : f32 to vector<16x128xf32>
    %70 = arith.addf %54, %69 : vector<16x128xf32>
    %cst_8 = arith.constant 0.000000e+00 : f32
    %71 = vector.broadcast %cst_8 : f32 to vector<16x128xf32>
    %72 = arith.maximumf %70, %71 : vector<16x128xf32>
    %c2_9 = arith.constant 2 : index
    %73 = memref.load %arg3[%c2_9] : memref<4xf32, #tpu.memory_space<smem>>
    %74 = vector.broadcast %73 : f32 to vector<16x128xf32>
    %75 = arith.addf %58, %74 : vector<16x128xf32>
    %cst_10 = arith.constant 0.000000e+00 : f32
    %76 = vector.broadcast %cst_10 : f32 to vector<16x128xf32>
    %77 = arith.maximumf %75, %76 : vector<16x128xf32>
    %c3_11 = arith.constant 3 : index
    %78 = memref.load %arg3[%c3_11] : memref<4xf32, #tpu.memory_space<smem>>
    %79 = vector.broadcast %78 : f32 to vector<16x128xf32>
    %80 = arith.addf %62, %79 : vector<16x128xf32>
    %cst_12 = arith.constant 0.000000e+00 : f32
    %81 = vector.broadcast %cst_12 : f32 to vector<16x128xf32>
    %82 = arith.maximumf %80, %81 : vector<16x128xf32>
    %83 = vector.shape_cast %67 : vector<16x128xf32> to vector<1x16x128xf32>
    %84 = vector.shape_cast %72 : vector<16x128xf32> to vector<1x16x128xf32>
    %85 = vector.shape_cast %77 : vector<16x128xf32> to vector<1x16x128xf32>
    %86 = vector.shape_cast %82 : vector<16x128xf32> to vector<1x16x128xf32>
    %87 = tpu.concatenate %83, %84, %85, %86 in 0 : vector<1x16x128xf32>, vector<1x16x128xf32>, vector<1x16x128xf32>, vector<1x16x128xf32> -> vector<4x16x128xf32>
    %c1_i32_13 = arith.constant 1 : i32
    %88 = tpu.dynamic_rotate %87 by %c1_i32_13 dim 1 : vector<4x16x128xf32>, i32 -> vector<4x16x128xf32>
    %cst_14 = arith.constant 0.000000e+00 : f32
    %89 = vector.shape_cast %2 : vector<1x16x1xi1> to vector<1x16x1xi1>
    %90 = vector.broadcast %89 : vector<1x16x1xi1> to vector<4x16x128xi1>
    %91 = vector.broadcast %cst_14 : f32 to vector<4x16x128xf32>
    %92 = arith.select %90, %91, %88 : vector<4x16x128xi1>, vector<4x16x128xf32>
    %c15_i32_15 = arith.constant 15 : i32
    %93 = tpu.dynamic_rotate %87 by %c15_i32_15 dim 1 : vector<4x16x128xf32>, i32 -> vector<4x16x128xf32>
    %cst_16 = arith.constant 0.000000e+00 : f32
    %94 = vector.shape_cast %4 : vector<1x16x1xi1> to vector<1x16x1xi1>
    %95 = vector.broadcast %94 : vector<1x16x1xi1> to vector<4x16x128xi1>
    %96 = vector.broadcast %cst_16 : f32 to vector<4x16x128xf32>
    %97 = arith.select %95, %96, %93 : vector<4x16x128xi1>, vector<4x16x128xf32>
    %98 = vector.extract_strided_slice %92 {offsets = [0, 0, 0], sizes = [1, 16, 128], strides = [1, 1, 1]} : vector<4x16x128xf32> to vector<1x16x128xf32>
    %99 = vector.shape_cast %98 : vector<1x16x128xf32> to vector<16x128xf32>
    %c0_17 = arith.constant 0 : index
    %100 = memref.load %arg4[%c0_17] : memref<96xf32, #tpu.memory_space<smem>>
    %101 = vector.broadcast %100 : f32 to vector<16x128xf32>
    %102 = arith.mulf %101, %99 : vector<16x128xf32>
    %c12 = arith.constant 12 : index
    %103 = memref.load %arg4[%c12] : memref<96xf32, #tpu.memory_space<smem>>
    %104 = vector.broadcast %103 : f32 to vector<16x128xf32>
    %105 = arith.mulf %104, %99 : vector<16x128xf32>
    %c24 = arith.constant 24 : index
    %106 = memref.load %arg4[%c24] : memref<96xf32, #tpu.memory_space<smem>>
    %107 = vector.broadcast %106 : f32 to vector<16x128xf32>
    %108 = arith.mulf %107, %99 : vector<16x128xf32>
    %c36 = arith.constant 36 : index
    %109 = memref.load %arg4[%c36] : memref<96xf32, #tpu.memory_space<smem>>
    %110 = vector.broadcast %109 : f32 to vector<16x128xf32>
    %111 = arith.mulf %110, %99 : vector<16x128xf32>
    %c48 = arith.constant 48 : index
    %112 = memref.load %arg4[%c48] : memref<96xf32, #tpu.memory_space<smem>>
    %113 = vector.broadcast %112 : f32 to vector<16x128xf32>
    %114 = arith.mulf %113, %99 : vector<16x128xf32>
    %c60 = arith.constant 60 : index
    %115 = memref.load %arg4[%c60] : memref<96xf32, #tpu.memory_space<smem>>
    %116 = vector.broadcast %115 : f32 to vector<16x128xf32>
    %117 = arith.mulf %116, %99 : vector<16x128xf32>
    %c72 = arith.constant 72 : index
    %118 = memref.load %arg4[%c72] : memref<96xf32, #tpu.memory_space<smem>>
    %119 = vector.broadcast %118 : f32 to vector<16x128xf32>
    %120 = arith.mulf %119, %99 : vector<16x128xf32>
    %c84 = arith.constant 84 : index
    %121 = memref.load %arg4[%c84] : memref<96xf32, #tpu.memory_space<smem>>
    %122 = vector.broadcast %121 : f32 to vector<16x128xf32>
    %123 = arith.mulf %122, %99 : vector<16x128xf32>
    %124 = vector.extract_strided_slice %87 {offsets = [0, 0, 0], sizes = [1, 16, 128], strides = [1, 1, 1]} : vector<4x16x128xf32> to vector<1x16x128xf32>
    %125 = vector.shape_cast %124 : vector<1x16x128xf32> to vector<16x128xf32>
    %c1_18 = arith.constant 1 : index
    %126 = memref.load %arg4[%c1_18] : memref<96xf32, #tpu.memory_space<smem>>
    %127 = vector.broadcast %126 : f32 to vector<16x128xf32>
    %128 = arith.mulf %127, %125 : vector<16x128xf32>
    %129 = arith.addf %102, %128 : vector<16x128xf32>
    %c13 = arith.constant 13 : index
    %130 = memref.load %arg4[%c13] : memref<96xf32, #tpu.memory_space<smem>>
    %131 = vector.broadcast %130 : f32 to vector<16x128xf32>
    %132 = arith.mulf %131, %125 : vector<16x128xf32>
    %133 = arith.addf %105, %132 : vector<16x128xf32>
    %c25 = arith.constant 25 : index
    %134 = memref.load %arg4[%c25] : memref<96xf32, #tpu.memory_space<smem>>
    %135 = vector.broadcast %134 : f32 to vector<16x128xf32>
    %136 = arith.mulf %135, %125 : vector<16x128xf32>
    %137 = arith.addf %108, %136 : vector<16x128xf32>
    %c37 = arith.constant 37 : index
    %138 = memref.load %arg4[%c37] : memref<96xf32, #tpu.memory_space<smem>>
    %139 = vector.broadcast %138 : f32 to vector<16x128xf32>
    %140 = arith.mulf %139, %125 : vector<16x128xf32>
    %141 = arith.addf %111, %140 : vector<16x128xf32>
    %c49 = arith.constant 49 : index
    %142 = memref.load %arg4[%c49] : memref<96xf32, #tpu.memory_space<smem>>
    %143 = vector.broadcast %142 : f32 to vector<16x128xf32>
    %144 = arith.mulf %143, %125 : vector<16x128xf32>
    %145 = arith.addf %114, %144 : vector<16x128xf32>
    %c61 = arith.constant 61 : index
    %146 = memref.load %arg4[%c61] : memref<96xf32, #tpu.memory_space<smem>>
    %147 = vector.broadcast %146 : f32 to vector<16x128xf32>
    %148 = arith.mulf %147, %125 : vector<16x128xf32>
    %149 = arith.addf %117, %148 : vector<16x128xf32>
    %c73 = arith.constant 73 : index
    %150 = memref.load %arg4[%c73] : memref<96xf32, #tpu.memory_space<smem>>
    %151 = vector.broadcast %150 : f32 to vector<16x128xf32>
    %152 = arith.mulf %151, %125 : vector<16x128xf32>
    %153 = arith.addf %120, %152 : vector<16x128xf32>
    %c85 = arith.constant 85 : index
    %154 = memref.load %arg4[%c85] : memref<96xf32, #tpu.memory_space<smem>>
    %155 = vector.broadcast %154 : f32 to vector<16x128xf32>
    %156 = arith.mulf %155, %125 : vector<16x128xf32>
    %157 = arith.addf %123, %156 : vector<16x128xf32>
    %158 = vector.extract_strided_slice %97 {offsets = [0, 0, 0], sizes = [1, 16, 128], strides = [1, 1, 1]} : vector<4x16x128xf32> to vector<1x16x128xf32>
    %159 = vector.shape_cast %158 : vector<1x16x128xf32> to vector<16x128xf32>
    %c2_19 = arith.constant 2 : index
    %160 = memref.load %arg4[%c2_19] : memref<96xf32, #tpu.memory_space<smem>>
    %161 = vector.broadcast %160 : f32 to vector<16x128xf32>
    %162 = arith.mulf %161, %159 : vector<16x128xf32>
    %163 = arith.addf %129, %162 : vector<16x128xf32>
    %c14 = arith.constant 14 : index
    %164 = memref.load %arg4[%c14] : memref<96xf32, #tpu.memory_space<smem>>
    %165 = vector.broadcast %164 : f32 to vector<16x128xf32>
    %166 = arith.mulf %165, %159 : vector<16x128xf32>
    %167 = arith.addf %133, %166 : vector<16x128xf32>
    %c26 = arith.constant 26 : index
    %168 = memref.load %arg4[%c26] : memref<96xf32, #tpu.memory_space<smem>>
    %169 = vector.broadcast %168 : f32 to vector<16x128xf32>
    %170 = arith.mulf %169, %159 : vector<16x128xf32>
    %171 = arith.addf %137, %170 : vector<16x128xf32>
    %c38 = arith.constant 38 : index
    %172 = memref.load %arg4[%c38] : memref<96xf32, #tpu.memory_space<smem>>
    %173 = vector.broadcast %172 : f32 to vector<16x128xf32>
    %174 = arith.mulf %173, %159 : vector<16x128xf32>
    %175 = arith.addf %141, %174 : vector<16x128xf32>
    %c50 = arith.constant 50 : index
    %176 = memref.load %arg4[%c50] : memref<96xf32, #tpu.memory_space<smem>>
    %177 = vector.broadcast %176 : f32 to vector<16x128xf32>
    %178 = arith.mulf %177, %159 : vector<16x128xf32>
    %179 = arith.addf %145, %178 : vector<16x128xf32>
    %c62 = arith.constant 62 : index
    %180 = memref.load %arg4[%c62] : memref<96xf32, #tpu.memory_space<smem>>
    %181 = vector.broadcast %180 : f32 to vector<16x128xf32>
    %182 = arith.mulf %181, %159 : vector<16x128xf32>
    %183 = arith.addf %149, %182 : vector<16x128xf32>
    %c74 = arith.constant 74 : index
    %184 = memref.load %arg4[%c74] : memref<96xf32, #tpu.memory_space<smem>>
    %185 = vector.broadcast %184 : f32 to vector<16x128xf32>
    %186 = arith.mulf %185, %159 : vector<16x128xf32>
    %187 = arith.addf %153, %186 : vector<16x128xf32>
    %c86 = arith.constant 86 : index
    %188 = memref.load %arg4[%c86] : memref<96xf32, #tpu.memory_space<smem>>
    %189 = vector.broadcast %188 : f32 to vector<16x128xf32>
    %190 = arith.mulf %189, %159 : vector<16x128xf32>
    %191 = arith.addf %157, %190 : vector<16x128xf32>
    %192 = vector.extract_strided_slice %92 {offsets = [1, 0, 0], sizes = [1, 16, 128], strides = [1, 1, 1]} : vector<4x16x128xf32> to vector<1x16x128xf32>
    %193 = vector.shape_cast %192 : vector<1x16x128xf32> to vector<16x128xf32>
    %c3_20 = arith.constant 3 : index
    %194 = memref.load %arg4[%c3_20] : memref<96xf32, #tpu.memory_space<smem>>
    %195 = vector.broadcast %194 : f32 to vector<16x128xf32>
    %196 = arith.mulf %195, %193 : vector<16x128xf32>
    %197 = arith.addf %163, %196 : vector<16x128xf32>
    %c15 = arith.constant 15 : index
    %198 = memref.load %arg4[%c15] : memref<96xf32, #tpu.memory_space<smem>>
    %199 = vector.broadcast %198 : f32 to vector<16x128xf32>
    %200 = arith.mulf %199, %193 : vector<16x128xf32>
    %201 = arith.addf %167, %200 : vector<16x128xf32>
    %c27 = arith.constant 27 : index
    %202 = memref.load %arg4[%c27] : memref<96xf32, #tpu.memory_space<smem>>
    %203 = vector.broadcast %202 : f32 to vector<16x128xf32>
    %204 = arith.mulf %203, %193 : vector<16x128xf32>
    %205 = arith.addf %171, %204 : vector<16x128xf32>
    %c39 = arith.constant 39 : index
    %206 = memref.load %arg4[%c39] : memref<96xf32, #tpu.memory_space<smem>>
    %207 = vector.broadcast %206 : f32 to vector<16x128xf32>
    %208 = arith.mulf %207, %193 : vector<16x128xf32>
    %209 = arith.addf %175, %208 : vector<16x128xf32>
    %c51 = arith.constant 51 : index
    %210 = memref.load %arg4[%c51] : memref<96xf32, #tpu.memory_space<smem>>
    %211 = vector.broadcast %210 : f32 to vector<16x128xf32>
    %212 = arith.mulf %211, %193 : vector<16x128xf32>
    %213 = arith.addf %179, %212 : vector<16x128xf32>
    %c63 = arith.constant 63 : index
    %214 = memref.load %arg4[%c63] : memref<96xf32, #tpu.memory_space<smem>>
    %215 = vector.broadcast %214 : f32 to vector<16x128xf32>
    %216 = arith.mulf %215, %193 : vector<16x128xf32>
    %217 = arith.addf %183, %216 : vector<16x128xf32>
    %c75 = arith.constant 75 : index
    %218 = memref.load %arg4[%c75] : memref<96xf32, #tpu.memory_space<smem>>
    %219 = vector.broadcast %218 : f32 to vector<16x128xf32>
    %220 = arith.mulf %219, %193 : vector<16x128xf32>
    %221 = arith.addf %187, %220 : vector<16x128xf32>
    %c87 = arith.constant 87 : index
    %222 = memref.load %arg4[%c87] : memref<96xf32, #tpu.memory_space<smem>>
    %223 = vector.broadcast %222 : f32 to vector<16x128xf32>
    %224 = arith.mulf %223, %193 : vector<16x128xf32>
    %225 = arith.addf %191, %224 : vector<16x128xf32>
    %226 = vector.extract_strided_slice %87 {offsets = [1, 0, 0], sizes = [1, 16, 128], strides = [1, 1, 1]} : vector<4x16x128xf32> to vector<1x16x128xf32>
    %227 = vector.shape_cast %226 : vector<1x16x128xf32> to vector<16x128xf32>
    %c4_21 = arith.constant 4 : index
    %228 = memref.load %arg4[%c4_21] : memref<96xf32, #tpu.memory_space<smem>>
    %229 = vector.broadcast %228 : f32 to vector<16x128xf32>
    %230 = arith.mulf %229, %227 : vector<16x128xf32>
    %231 = arith.addf %197, %230 : vector<16x128xf32>
    %c16 = arith.constant 16 : index
    %232 = memref.load %arg4[%c16] : memref<96xf32, #tpu.memory_space<smem>>
    %233 = vector.broadcast %232 : f32 to vector<16x128xf32>
    %234 = arith.mulf %233, %227 : vector<16x128xf32>
    %235 = arith.addf %201, %234 : vector<16x128xf32>
    %c28 = arith.constant 28 : index
    %236 = memref.load %arg4[%c28] : memref<96xf32, #tpu.memory_space<smem>>
    %237 = vector.broadcast %236 : f32 to vector<16x128xf32>
    %238 = arith.mulf %237, %227 : vector<16x128xf32>
    %239 = arith.addf %205, %238 : vector<16x128xf32>
    %c40 = arith.constant 40 : index
    %240 = memref.load %arg4[%c40] : memref<96xf32, #tpu.memory_space<smem>>
    %241 = vector.broadcast %240 : f32 to vector<16x128xf32>
    %242 = arith.mulf %241, %227 : vector<16x128xf32>
    %243 = arith.addf %209, %242 : vector<16x128xf32>
    %c52 = arith.constant 52 : index
    %244 = memref.load %arg4[%c52] : memref<96xf32, #tpu.memory_space<smem>>
    %245 = vector.broadcast %244 : f32 to vector<16x128xf32>
    %246 = arith.mulf %245, %227 : vector<16x128xf32>
    %247 = arith.addf %213, %246 : vector<16x128xf32>
    %c64 = arith.constant 64 : index
    %248 = memref.load %arg4[%c64] : memref<96xf32, #tpu.memory_space<smem>>
    %249 = vector.broadcast %248 : f32 to vector<16x128xf32>
    %250 = arith.mulf %249, %227 : vector<16x128xf32>
    %251 = arith.addf %217, %250 : vector<16x128xf32>
    %c76 = arith.constant 76 : index
    %252 = memref.load %arg4[%c76] : memref<96xf32, #tpu.memory_space<smem>>
    %253 = vector.broadcast %252 : f32 to vector<16x128xf32>
    %254 = arith.mulf %253, %227 : vector<16x128xf32>
    %255 = arith.addf %221, %254 : vector<16x128xf32>
    %c88 = arith.constant 88 : index
    %256 = memref.load %arg4[%c88] : memref<96xf32, #tpu.memory_space<smem>>
    %257 = vector.broadcast %256 : f32 to vector<16x128xf32>
    %258 = arith.mulf %257, %227 : vector<16x128xf32>
    %259 = arith.addf %225, %258 : vector<16x128xf32>
    %260 = vector.extract_strided_slice %97 {offsets = [1, 0, 0], sizes = [1, 16, 128], strides = [1, 1, 1]} : vector<4x16x128xf32> to vector<1x16x128xf32>
    %261 = vector.shape_cast %260 : vector<1x16x128xf32> to vector<16x128xf32>
    %c5_22 = arith.constant 5 : index
    %262 = memref.load %arg4[%c5_22] : memref<96xf32, #tpu.memory_space<smem>>
    %263 = vector.broadcast %262 : f32 to vector<16x128xf32>
    %264 = arith.mulf %263, %261 : vector<16x128xf32>
    %265 = arith.addf %231, %264 : vector<16x128xf32>
    %c17 = arith.constant 17 : index
    %266 = memref.load %arg4[%c17] : memref<96xf32, #tpu.memory_space<smem>>
    %267 = vector.broadcast %266 : f32 to vector<16x128xf32>
    %268 = arith.mulf %267, %261 : vector<16x128xf32>
    %269 = arith.addf %235, %268 : vector<16x128xf32>
    %c29 = arith.constant 29 : index
    %270 = memref.load %arg4[%c29] : memref<96xf32, #tpu.memory_space<smem>>
    %271 = vector.broadcast %270 : f32 to vector<16x128xf32>
    %272 = arith.mulf %271, %261 : vector<16x128xf32>
    %273 = arith.addf %239, %272 : vector<16x128xf32>
    %c41 = arith.constant 41 : index
    %274 = memref.load %arg4[%c41] : memref<96xf32, #tpu.memory_space<smem>>
    %275 = vector.broadcast %274 : f32 to vector<16x128xf32>
    %276 = arith.mulf %275, %261 : vector<16x128xf32>
    %277 = arith.addf %243, %276 : vector<16x128xf32>
    %c53 = arith.constant 53 : index
    %278 = memref.load %arg4[%c53] : memref<96xf32, #tpu.memory_space<smem>>
    %279 = vector.broadcast %278 : f32 to vector<16x128xf32>
    %280 = arith.mulf %279, %261 : vector<16x128xf32>
    %281 = arith.addf %247, %280 : vector<16x128xf32>
    %c65 = arith.constant 65 : index
    %282 = memref.load %arg4[%c65] : memref<96xf32, #tpu.memory_space<smem>>
    %283 = vector.broadcast %282 : f32 to vector<16x128xf32>
    %284 = arith.mulf %283, %261 : vector<16x128xf32>
    %285 = arith.addf %251, %284 : vector<16x128xf32>
    %c77 = arith.constant 77 : index
    %286 = memref.load %arg4[%c77] : memref<96xf32, #tpu.memory_space<smem>>
    %287 = vector.broadcast %286 : f32 to vector<16x128xf32>
    %288 = arith.mulf %287, %261 : vector<16x128xf32>
    %289 = arith.addf %255, %288 : vector<16x128xf32>
    %c89 = arith.constant 89 : index
    %290 = memref.load %arg4[%c89] : memref<96xf32, #tpu.memory_space<smem>>
    %291 = vector.broadcast %290 : f32 to vector<16x128xf32>
    %292 = arith.mulf %291, %261 : vector<16x128xf32>
    %293 = arith.addf %259, %292 : vector<16x128xf32>
    %294 = vector.extract_strided_slice %92 {offsets = [2, 0, 0], sizes = [1, 16, 128], strides = [1, 1, 1]} : vector<4x16x128xf32> to vector<1x16x128xf32>
    %295 = vector.shape_cast %294 : vector<1x16x128xf32> to vector<16x128xf32>
    %c6_23 = arith.constant 6 : index
    %296 = memref.load %arg4[%c6_23] : memref<96xf32, #tpu.memory_space<smem>>
    %297 = vector.broadcast %296 : f32 to vector<16x128xf32>
    %298 = arith.mulf %297, %295 : vector<16x128xf32>
    %299 = arith.addf %265, %298 : vector<16x128xf32>
    %c18 = arith.constant 18 : index
    %300 = memref.load %arg4[%c18] : memref<96xf32, #tpu.memory_space<smem>>
    %301 = vector.broadcast %300 : f32 to vector<16x128xf32>
    %302 = arith.mulf %301, %295 : vector<16x128xf32>
    %303 = arith.addf %269, %302 : vector<16x128xf32>
    %c30 = arith.constant 30 : index
    %304 = memref.load %arg4[%c30] : memref<96xf32, #tpu.memory_space<smem>>
    %305 = vector.broadcast %304 : f32 to vector<16x128xf32>
    %306 = arith.mulf %305, %295 : vector<16x128xf32>
    %307 = arith.addf %273, %306 : vector<16x128xf32>
    %c42 = arith.constant 42 : index
    %308 = memref.load %arg4[%c42] : memref<96xf32, #tpu.memory_space<smem>>
    %309 = vector.broadcast %308 : f32 to vector<16x128xf32>
    %310 = arith.mulf %309, %295 : vector<16x128xf32>
    %311 = arith.addf %277, %310 : vector<16x128xf32>
    %c54 = arith.constant 54 : index
    %312 = memref.load %arg4[%c54] : memref<96xf32, #tpu.memory_space<smem>>
    %313 = vector.broadcast %312 : f32 to vector<16x128xf32>
    %314 = arith.mulf %313, %295 : vector<16x128xf32>
    %315 = arith.addf %281, %314 : vector<16x128xf32>
    %c66 = arith.constant 66 : index
    %316 = memref.load %arg4[%c66] : memref<96xf32, #tpu.memory_space<smem>>
    %317 = vector.broadcast %316 : f32 to vector<16x128xf32>
    %318 = arith.mulf %317, %295 : vector<16x128xf32>
    %319 = arith.addf %285, %318 : vector<16x128xf32>
    %c78 = arith.constant 78 : index
    %320 = memref.load %arg4[%c78] : memref<96xf32, #tpu.memory_space<smem>>
    %321 = vector.broadcast %320 : f32 to vector<16x128xf32>
    %322 = arith.mulf %321, %295 : vector<16x128xf32>
    %323 = arith.addf %289, %322 : vector<16x128xf32>
    %c90 = arith.constant 90 : index
    %324 = memref.load %arg4[%c90] : memref<96xf32, #tpu.memory_space<smem>>
    %325 = vector.broadcast %324 : f32 to vector<16x128xf32>
    %326 = arith.mulf %325, %295 : vector<16x128xf32>
    %327 = arith.addf %293, %326 : vector<16x128xf32>
    %328 = vector.extract_strided_slice %87 {offsets = [2, 0, 0], sizes = [1, 16, 128], strides = [1, 1, 1]} : vector<4x16x128xf32> to vector<1x16x128xf32>
    %329 = vector.shape_cast %328 : vector<1x16x128xf32> to vector<16x128xf32>
    %c7_24 = arith.constant 7 : index
    %330 = memref.load %arg4[%c7_24] : memref<96xf32, #tpu.memory_space<smem>>
    %331 = vector.broadcast %330 : f32 to vector<16x128xf32>
    %332 = arith.mulf %331, %329 : vector<16x128xf32>
    %333 = arith.addf %299, %332 : vector<16x128xf32>
    %c19 = arith.constant 19 : index
    %334 = memref.load %arg4[%c19] : memref<96xf32, #tpu.memory_space<smem>>
    %335 = vector.broadcast %334 : f32 to vector<16x128xf32>
    %336 = arith.mulf %335, %329 : vector<16x128xf32>
    %337 = arith.addf %303, %336 : vector<16x128xf32>
    %c31 = arith.constant 31 : index
    %338 = memref.load %arg4[%c31] : memref<96xf32, #tpu.memory_space<smem>>
    %339 = vector.broadcast %338 : f32 to vector<16x128xf32>
    %340 = arith.mulf %339, %329 : vector<16x128xf32>
    %341 = arith.addf %307, %340 : vector<16x128xf32>
    %c43 = arith.constant 43 : index
    %342 = memref.load %arg4[%c43] : memref<96xf32, #tpu.memory_space<smem>>
    %343 = vector.broadcast %342 : f32 to vector<16x128xf32>
    %344 = arith.mulf %343, %329 : vector<16x128xf32>
    %345 = arith.addf %311, %344 : vector<16x128xf32>
    %c55 = arith.constant 55 : index
    %346 = memref.load %arg4[%c55] : memref<96xf32, #tpu.memory_space<smem>>
    %347 = vector.broadcast %346 : f32 to vector<16x128xf32>
    %348 = arith.mulf %347, %329 : vector<16x128xf32>
    %349 = arith.addf %315, %348 : vector<16x128xf32>
    %c67 = arith.constant 67 : index
    %350 = memref.load %arg4[%c67] : memref<96xf32, #tpu.memory_space<smem>>
    %351 = vector.broadcast %350 : f32 to vector<16x128xf32>
    %352 = arith.mulf %351, %329 : vector<16x128xf32>
    %353 = arith.addf %319, %352 : vector<16x128xf32>
    %c79 = arith.constant 79 : index
    %354 = memref.load %arg4[%c79] : memref<96xf32, #tpu.memory_space<smem>>
    %355 = vector.broadcast %354 : f32 to vector<16x128xf32>
    %356 = arith.mulf %355, %329 : vector<16x128xf32>
    %357 = arith.addf %323, %356 : vector<16x128xf32>
    %c91 = arith.constant 91 : index
    %358 = memref.load %arg4[%c91] : memref<96xf32, #tpu.memory_space<smem>>
    %359 = vector.broadcast %358 : f32 to vector<16x128xf32>
    %360 = arith.mulf %359, %329 : vector<16x128xf32>
    %361 = arith.addf %327, %360 : vector<16x128xf32>
    %362 = vector.extract_strided_slice %97 {offsets = [2, 0, 0], sizes = [1, 16, 128], strides = [1, 1, 1]} : vector<4x16x128xf32> to vector<1x16x128xf32>
    %363 = vector.shape_cast %362 : vector<1x16x128xf32> to vector<16x128xf32>
    %c8_25 = arith.constant 8 : index
    %364 = memref.load %arg4[%c8_25] : memref<96xf32, #tpu.memory_space<smem>>
    %365 = vector.broadcast %364 : f32 to vector<16x128xf32>
    %366 = arith.mulf %365, %363 : vector<16x128xf32>
    %367 = arith.addf %333, %366 : vector<16x128xf32>
    %c20 = arith.constant 20 : index
    %368 = memref.load %arg4[%c20] : memref<96xf32, #tpu.memory_space<smem>>
    %369 = vector.broadcast %368 : f32 to vector<16x128xf32>
    %370 = arith.mulf %369, %363 : vector<16x128xf32>
    %371 = arith.addf %337, %370 : vector<16x128xf32>
    %c32 = arith.constant 32 : index
    %372 = memref.load %arg4[%c32] : memref<96xf32, #tpu.memory_space<smem>>
    %373 = vector.broadcast %372 : f32 to vector<16x128xf32>
    %374 = arith.mulf %373, %363 : vector<16x128xf32>
    %375 = arith.addf %341, %374 : vector<16x128xf32>
    %c44 = arith.constant 44 : index
    %376 = memref.load %arg4[%c44] : memref<96xf32, #tpu.memory_space<smem>>
    %377 = vector.broadcast %376 : f32 to vector<16x128xf32>
    %378 = arith.mulf %377, %363 : vector<16x128xf32>
    %379 = arith.addf %345, %378 : vector<16x128xf32>
    %c56 = arith.constant 56 : index
    %380 = memref.load %arg4[%c56] : memref<96xf32, #tpu.memory_space<smem>>
    %381 = vector.broadcast %380 : f32 to vector<16x128xf32>
    %382 = arith.mulf %381, %363 : vector<16x128xf32>
    %383 = arith.addf %349, %382 : vector<16x128xf32>
    %c68 = arith.constant 68 : index
    %384 = memref.load %arg4[%c68] : memref<96xf32, #tpu.memory_space<smem>>
    %385 = vector.broadcast %384 : f32 to vector<16x128xf32>
    %386 = arith.mulf %385, %363 : vector<16x128xf32>
    %387 = arith.addf %353, %386 : vector<16x128xf32>
    %c80 = arith.constant 80 : index
    %388 = memref.load %arg4[%c80] : memref<96xf32, #tpu.memory_space<smem>>
    %389 = vector.broadcast %388 : f32 to vector<16x128xf32>
    %390 = arith.mulf %389, %363 : vector<16x128xf32>
    %391 = arith.addf %357, %390 : vector<16x128xf32>
    %c92 = arith.constant 92 : index
    %392 = memref.load %arg4[%c92] : memref<96xf32, #tpu.memory_space<smem>>
    %393 = vector.broadcast %392 : f32 to vector<16x128xf32>
    %394 = arith.mulf %393, %363 : vector<16x128xf32>
    %395 = arith.addf %361, %394 : vector<16x128xf32>
    %396 = vector.extract_strided_slice %92 {offsets = [3, 0, 0], sizes = [1, 16, 128], strides = [1, 1, 1]} : vector<4x16x128xf32> to vector<1x16x128xf32>
    %397 = vector.shape_cast %396 : vector<1x16x128xf32> to vector<16x128xf32>
    %c9_26 = arith.constant 9 : index
    %398 = memref.load %arg4[%c9_26] : memref<96xf32, #tpu.memory_space<smem>>
    %399 = vector.broadcast %398 : f32 to vector<16x128xf32>
    %400 = arith.mulf %399, %397 : vector<16x128xf32>
    %401 = arith.addf %367, %400 : vector<16x128xf32>
    %c21 = arith.constant 21 : index
    %402 = memref.load %arg4[%c21] : memref<96xf32, #tpu.memory_space<smem>>
    %403 = vector.broadcast %402 : f32 to vector<16x128xf32>
    %404 = arith.mulf %403, %397 : vector<16x128xf32>
    %405 = arith.addf %371, %404 : vector<16x128xf32>
    %c33 = arith.constant 33 : index
    %406 = memref.load %arg4[%c33] : memref<96xf32, #tpu.memory_space<smem>>
    %407 = vector.broadcast %406 : f32 to vector<16x128xf32>
    %408 = arith.mulf %407, %397 : vector<16x128xf32>
    %409 = arith.addf %375, %408 : vector<16x128xf32>
    %c45 = arith.constant 45 : index
    %410 = memref.load %arg4[%c45] : memref<96xf32, #tpu.memory_space<smem>>
    %411 = vector.broadcast %410 : f32 to vector<16x128xf32>
    %412 = arith.mulf %411, %397 : vector<16x128xf32>
    %413 = arith.addf %379, %412 : vector<16x128xf32>
    %c57 = arith.constant 57 : index
    %414 = memref.load %arg4[%c57] : memref<96xf32, #tpu.memory_space<smem>>
    %415 = vector.broadcast %414 : f32 to vector<16x128xf32>
    %416 = arith.mulf %415, %397 : vector<16x128xf32>
    %417 = arith.addf %383, %416 : vector<16x128xf32>
    %c69 = arith.constant 69 : index
    %418 = memref.load %arg4[%c69] : memref<96xf32, #tpu.memory_space<smem>>
    %419 = vector.broadcast %418 : f32 to vector<16x128xf32>
    %420 = arith.mulf %419, %397 : vector<16x128xf32>
    %421 = arith.addf %387, %420 : vector<16x128xf32>
    %c81 = arith.constant 81 : index
    %422 = memref.load %arg4[%c81] : memref<96xf32, #tpu.memory_space<smem>>
    %423 = vector.broadcast %422 : f32 to vector<16x128xf32>
    %424 = arith.mulf %423, %397 : vector<16x128xf32>
    %425 = arith.addf %391, %424 : vector<16x128xf32>
    %c93 = arith.constant 93 : index
    %426 = memref.load %arg4[%c93] : memref<96xf32, #tpu.memory_space<smem>>
    %427 = vector.broadcast %426 : f32 to vector<16x128xf32>
    %428 = arith.mulf %427, %397 : vector<16x128xf32>
    %429 = arith.addf %395, %428 : vector<16x128xf32>
    %430 = vector.extract_strided_slice %87 {offsets = [3, 0, 0], sizes = [1, 16, 128], strides = [1, 1, 1]} : vector<4x16x128xf32> to vector<1x16x128xf32>
    %431 = vector.shape_cast %430 : vector<1x16x128xf32> to vector<16x128xf32>
    %c10_27 = arith.constant 10 : index
    %432 = memref.load %arg4[%c10_27] : memref<96xf32, #tpu.memory_space<smem>>
    %433 = vector.broadcast %432 : f32 to vector<16x128xf32>
    %434 = arith.mulf %433, %431 : vector<16x128xf32>
    %435 = arith.addf %401, %434 : vector<16x128xf32>
    %c22 = arith.constant 22 : index
    %436 = memref.load %arg4[%c22] : memref<96xf32, #tpu.memory_space<smem>>
    %437 = vector.broadcast %436 : f32 to vector<16x128xf32>
    %438 = arith.mulf %437, %431 : vector<16x128xf32>
    %439 = arith.addf %405, %438 : vector<16x128xf32>
    %c34 = arith.constant 34 : index
    %440 = memref.load %arg4[%c34] : memref<96xf32, #tpu.memory_space<smem>>
    %441 = vector.broadcast %440 : f32 to vector<16x128xf32>
    %442 = arith.mulf %441, %431 : vector<16x128xf32>
    %443 = arith.addf %409, %442 : vector<16x128xf32>
    %c46 = arith.constant 46 : index
    %444 = memref.load %arg4[%c46] : memref<96xf32, #tpu.memory_space<smem>>
    %445 = vector.broadcast %444 : f32 to vector<16x128xf32>
    %446 = arith.mulf %445, %431 : vector<16x128xf32>
    %447 = arith.addf %413, %446 : vector<16x128xf32>
    %c58 = arith.constant 58 : index
    %448 = memref.load %arg4[%c58] : memref<96xf32, #tpu.memory_space<smem>>
    %449 = vector.broadcast %448 : f32 to vector<16x128xf32>
    %450 = arith.mulf %449, %431 : vector<16x128xf32>
    %451 = arith.addf %417, %450 : vector<16x128xf32>
    %c70 = arith.constant 70 : index
    %452 = memref.load %arg4[%c70] : memref<96xf32, #tpu.memory_space<smem>>
    %453 = vector.broadcast %452 : f32 to vector<16x128xf32>
    %454 = arith.mulf %453, %431 : vector<16x128xf32>
    %455 = arith.addf %421, %454 : vector<16x128xf32>
    %c82 = arith.constant 82 : index
    %456 = memref.load %arg4[%c82] : memref<96xf32, #tpu.memory_space<smem>>
    %457 = vector.broadcast %456 : f32 to vector<16x128xf32>
    %458 = arith.mulf %457, %431 : vector<16x128xf32>
    %459 = arith.addf %425, %458 : vector<16x128xf32>
    %c94 = arith.constant 94 : index
    %460 = memref.load %arg4[%c94] : memref<96xf32, #tpu.memory_space<smem>>
    %461 = vector.broadcast %460 : f32 to vector<16x128xf32>
    %462 = arith.mulf %461, %431 : vector<16x128xf32>
    %463 = arith.addf %429, %462 : vector<16x128xf32>
    %464 = vector.extract_strided_slice %97 {offsets = [3, 0, 0], sizes = [1, 16, 128], strides = [1, 1, 1]} : vector<4x16x128xf32> to vector<1x16x128xf32>
    %465 = vector.shape_cast %464 : vector<1x16x128xf32> to vector<16x128xf32>
    %c11_28 = arith.constant 11 : index
    %466 = memref.load %arg4[%c11_28] : memref<96xf32, #tpu.memory_space<smem>>
    %467 = vector.broadcast %466 : f32 to vector<16x128xf32>
    %468 = arith.mulf %467, %465 : vector<16x128xf32>
    %469 = arith.addf %435, %468 : vector<16x128xf32>
    %c23 = arith.constant 23 : index
    %470 = memref.load %arg4[%c23] : memref<96xf32, #tpu.memory_space<smem>>
    %471 = vector.broadcast %470 : f32 to vector<16x128xf32>
    %472 = arith.mulf %471, %465 : vector<16x128xf32>
    %473 = arith.addf %439, %472 : vector<16x128xf32>
    %c35 = arith.constant 35 : index
    %474 = memref.load %arg4[%c35] : memref<96xf32, #tpu.memory_space<smem>>
    %475 = vector.broadcast %474 : f32 to vector<16x128xf32>
    %476 = arith.mulf %475, %465 : vector<16x128xf32>
    %477 = arith.addf %443, %476 : vector<16x128xf32>
    %c47 = arith.constant 47 : index
    %478 = memref.load %arg4[%c47] : memref<96xf32, #tpu.memory_space<smem>>
    %479 = vector.broadcast %478 : f32 to vector<16x128xf32>
    %480 = arith.mulf %479, %465 : vector<16x128xf32>
    %481 = arith.addf %447, %480 : vector<16x128xf32>
    %c59 = arith.constant 59 : index
    %482 = memref.load %arg4[%c59] : memref<96xf32, #tpu.memory_space<smem>>
    %483 = vector.broadcast %482 : f32 to vector<16x128xf32>
    %484 = arith.mulf %483, %465 : vector<16x128xf32>
    %485 = arith.addf %451, %484 : vector<16x128xf32>
    %c71 = arith.constant 71 : index
    %486 = memref.load %arg4[%c71] : memref<96xf32, #tpu.memory_space<smem>>
    %487 = vector.broadcast %486 : f32 to vector<16x128xf32>
    %488 = arith.mulf %487, %465 : vector<16x128xf32>
    %489 = arith.addf %455, %488 : vector<16x128xf32>
    %c83 = arith.constant 83 : index
    %490 = memref.load %arg4[%c83] : memref<96xf32, #tpu.memory_space<smem>>
    %491 = vector.broadcast %490 : f32 to vector<16x128xf32>
    %492 = arith.mulf %491, %465 : vector<16x128xf32>
    %493 = arith.addf %459, %492 : vector<16x128xf32>
    %c95 = arith.constant 95 : index
    %494 = memref.load %arg4[%c95] : memref<96xf32, #tpu.memory_space<smem>>
    %495 = vector.broadcast %494 : f32 to vector<16x128xf32>
    %496 = arith.mulf %495, %465 : vector<16x128xf32>
    %497 = arith.addf %463, %496 : vector<16x128xf32>
    %c0_29 = arith.constant 0 : index
    %498 = memref.load %arg5[%c0_29] : memref<8xf32, #tpu.memory_space<smem>>
    %499 = vector.broadcast %498 : f32 to vector<16x128xf32>
    %500 = arith.addf %469, %499 : vector<16x128xf32>
    %cst_30 = arith.constant 0.000000e+00 : f32
    %501 = vector.broadcast %cst_30 : f32 to vector<16x128xf32>
    %502 = arith.maximumf %500, %501 : vector<16x128xf32>
    %c1_31 = arith.constant 1 : index
    %503 = memref.load %arg5[%c1_31] : memref<8xf32, #tpu.memory_space<smem>>
    %504 = vector.broadcast %503 : f32 to vector<16x128xf32>
    %505 = arith.addf %473, %504 : vector<16x128xf32>
    %cst_32 = arith.constant 0.000000e+00 : f32
    %506 = vector.broadcast %cst_32 : f32 to vector<16x128xf32>
    %507 = arith.maximumf %505, %506 : vector<16x128xf32>
    %c2_33 = arith.constant 2 : index
    %508 = memref.load %arg5[%c2_33] : memref<8xf32, #tpu.memory_space<smem>>
    %509 = vector.broadcast %508 : f32 to vector<16x128xf32>
    %510 = arith.addf %477, %509 : vector<16x128xf32>
    %cst_34 = arith.constant 0.000000e+00 : f32
    %511 = vector.broadcast %cst_34 : f32 to vector<16x128xf32>
    %512 = arith.maximumf %510, %511 : vector<16x128xf32>
    %c3_35 = arith.constant 3 : index
    %513 = memref.load %arg5[%c3_35] : memref<8xf32, #tpu.memory_space<smem>>
    %514 = vector.broadcast %513 : f32 to vector<16x128xf32>
    %515 = arith.addf %481, %514 : vector<16x128xf32>
    %cst_36 = arith.constant 0.000000e+00 : f32
    %516 = vector.broadcast %cst_36 : f32 to vector<16x128xf32>
    %517 = arith.maximumf %515, %516 : vector<16x128xf32>
    %c4_37 = arith.constant 4 : index
    %518 = memref.load %arg5[%c4_37] : memref<8xf32, #tpu.memory_space<smem>>
    %519 = vector.broadcast %518 : f32 to vector<16x128xf32>
    %520 = arith.addf %485, %519 : vector<16x128xf32>
    %cst_38 = arith.constant 0.000000e+00 : f32
    %521 = vector.broadcast %cst_38 : f32 to vector<16x128xf32>
    %522 = arith.maximumf %520, %521 : vector<16x128xf32>
    %c5_39 = arith.constant 5 : index
    %523 = memref.load %arg5[%c5_39] : memref<8xf32, #tpu.memory_space<smem>>
    %524 = vector.broadcast %523 : f32 to vector<16x128xf32>
    %525 = arith.addf %489, %524 : vector<16x128xf32>
    %cst_40 = arith.constant 0.000000e+00 : f32
    %526 = vector.broadcast %cst_40 : f32 to vector<16x128xf32>
    %527 = arith.maximumf %525, %526 : vector<16x128xf32>
    %c6_41 = arith.constant 6 : index
    %528 = memref.load %arg5[%c6_41] : memref<8xf32, #tpu.memory_space<smem>>
    %529 = vector.broadcast %528 : f32 to vector<16x128xf32>
    %530 = arith.addf %493, %529 : vector<16x128xf32>
    %cst_42 = arith.constant 0.000000e+00 : f32
    %531 = vector.broadcast %cst_42 : f32 to vector<16x128xf32>
    %532 = arith.maximumf %530, %531 : vector<16x128xf32>
    %c7_43 = arith.constant 7 : index
    %533 = memref.load %arg5[%c7_43] : memref<8xf32, #tpu.memory_space<smem>>
    %534 = vector.broadcast %533 : f32 to vector<16x128xf32>
    %535 = arith.addf %497, %534 : vector<16x128xf32>
    %cst_44 = arith.constant 0.000000e+00 : f32
    %536 = vector.broadcast %cst_44 : f32 to vector<16x128xf32>
    %537 = arith.maximumf %535, %536 : vector<16x128xf32>
    %538 = vector.shape_cast %502 : vector<16x128xf32> to vector<1x16x128xf32>
    %539 = vector.shape_cast %507 : vector<16x128xf32> to vector<1x16x128xf32>
    %540 = vector.shape_cast %512 : vector<16x128xf32> to vector<1x16x128xf32>
    %541 = vector.shape_cast %517 : vector<16x128xf32> to vector<1x16x128xf32>
    %542 = vector.shape_cast %522 : vector<16x128xf32> to vector<1x16x128xf32>
    %543 = vector.shape_cast %527 : vector<16x128xf32> to vector<1x16x128xf32>
    %544 = vector.shape_cast %532 : vector<16x128xf32> to vector<1x16x128xf32>
    %545 = vector.shape_cast %537 : vector<16x128xf32> to vector<1x16x128xf32>
    %546 = tpu.concatenate %538, %539, %540, %541, %542, %543, %544, %545 in 0 : vector<1x16x128xf32>, vector<1x16x128xf32>, vector<1x16x128xf32>, vector<1x16x128xf32>, vector<1x16x128xf32>, vector<1x16x128xf32>, vector<1x16x128xf32>, vector<1x16x128xf32> -> vector<8x16x128xf32>
    %c1_i32_45 = arith.constant 1 : i32
    %547 = tpu.dynamic_rotate %546 by %c1_i32_45 dim 1 : vector<8x16x128xf32>, i32 -> vector<8x16x128xf32>
    %cst_46 = arith.constant 0.000000e+00 : f32
    %548 = vector.shape_cast %2 : vector<1x16x1xi1> to vector<1x16x1xi1>
    %549 = vector.broadcast %548 : vector<1x16x1xi1> to vector<8x16x128xi1>
    %550 = vector.broadcast %cst_46 : f32 to vector<8x16x128xf32>
    %551 = arith.select %549, %550, %547 : vector<8x16x128xi1>, vector<8x16x128xf32>
    %c15_i32_47 = arith.constant 15 : i32
    %552 = tpu.dynamic_rotate %546 by %c15_i32_47 dim 1 : vector<8x16x128xf32>, i32 -> vector<8x16x128xf32>
    %cst_48 = arith.constant 0.000000e+00 : f32
    %553 = vector.shape_cast %4 : vector<1x16x1xi1> to vector<1x16x1xi1>
    %554 = vector.broadcast %553 : vector<1x16x1xi1> to vector<8x16x128xi1>
    %555 = vector.broadcast %cst_48 : f32 to vector<8x16x128xf32>
    %556 = arith.select %554, %555, %552 : vector<8x16x128xi1>, vector<8x16x128xf32>
    %557 = vector.extract_strided_slice %551 {offsets = [0, 0, 0], sizes = [1, 16, 128], strides = [1, 1, 1]} : vector<8x16x128xf32> to vector<1x16x128xf32>
    %558 = vector.shape_cast %557 : vector<1x16x128xf32> to vector<16x128xf32>
    %c0_49 = arith.constant 0 : index
    %559 = memref.load %arg6[%c0_49] : memref<96xf32, #tpu.memory_space<smem>>
    %560 = vector.broadcast %559 : f32 to vector<16x128xf32>
    %561 = arith.mulf %560, %558 : vector<16x128xf32>
    %c24_50 = arith.constant 24 : index
    %562 = memref.load %arg6[%c24_50] : memref<96xf32, #tpu.memory_space<smem>>
    %563 = vector.broadcast %562 : f32 to vector<16x128xf32>
    %564 = arith.mulf %563, %558 : vector<16x128xf32>
    %c48_51 = arith.constant 48 : index
    %565 = memref.load %arg6[%c48_51] : memref<96xf32, #tpu.memory_space<smem>>
    %566 = vector.broadcast %565 : f32 to vector<16x128xf32>
    %567 = arith.mulf %566, %558 : vector<16x128xf32>
    %c72_52 = arith.constant 72 : index
    %568 = memref.load %arg6[%c72_52] : memref<96xf32, #tpu.memory_space<smem>>
    %569 = vector.broadcast %568 : f32 to vector<16x128xf32>
    %570 = arith.mulf %569, %558 : vector<16x128xf32>
    %571 = vector.extract_strided_slice %546 {offsets = [0, 0, 0], sizes = [1, 16, 128], strides = [1, 1, 1]} : vector<8x16x128xf32> to vector<1x16x128xf32>
    %572 = vector.shape_cast %571 : vector<1x16x128xf32> to vector<16x128xf32>
    %c1_53 = arith.constant 1 : index
    %573 = memref.load %arg6[%c1_53] : memref<96xf32, #tpu.memory_space<smem>>
    %574 = vector.broadcast %573 : f32 to vector<16x128xf32>
    %575 = arith.mulf %574, %572 : vector<16x128xf32>
    %576 = arith.addf %561, %575 : vector<16x128xf32>
    %c25_54 = arith.constant 25 : index
    %577 = memref.load %arg6[%c25_54] : memref<96xf32, #tpu.memory_space<smem>>
    %578 = vector.broadcast %577 : f32 to vector<16x128xf32>
    %579 = arith.mulf %578, %572 : vector<16x128xf32>
    %580 = arith.addf %564, %579 : vector<16x128xf32>
    %c49_55 = arith.constant 49 : index
    %581 = memref.load %arg6[%c49_55] : memref<96xf32, #tpu.memory_space<smem>>
    %582 = vector.broadcast %581 : f32 to vector<16x128xf32>
    %583 = arith.mulf %582, %572 : vector<16x128xf32>
    %584 = arith.addf %567, %583 : vector<16x128xf32>
    %c73_56 = arith.constant 73 : index
    %585 = memref.load %arg6[%c73_56] : memref<96xf32, #tpu.memory_space<smem>>
    %586 = vector.broadcast %585 : f32 to vector<16x128xf32>
    %587 = arith.mulf %586, %572 : vector<16x128xf32>
    %588 = arith.addf %570, %587 : vector<16x128xf32>
    %589 = vector.extract_strided_slice %556 {offsets = [0, 0, 0], sizes = [1, 16, 128], strides = [1, 1, 1]} : vector<8x16x128xf32> to vector<1x16x128xf32>
    %590 = vector.shape_cast %589 : vector<1x16x128xf32> to vector<16x128xf32>
    %c2_57 = arith.constant 2 : index
    %591 = memref.load %arg6[%c2_57] : memref<96xf32, #tpu.memory_space<smem>>
    %592 = vector.broadcast %591 : f32 to vector<16x128xf32>
    %593 = arith.mulf %592, %590 : vector<16x128xf32>
    %594 = arith.addf %576, %593 : vector<16x128xf32>
    %c26_58 = arith.constant 26 : index
    %595 = memref.load %arg6[%c26_58] : memref<96xf32, #tpu.memory_space<smem>>
    %596 = vector.broadcast %595 : f32 to vector<16x128xf32>
    %597 = arith.mulf %596, %590 : vector<16x128xf32>
    %598 = arith.addf %580, %597 : vector<16x128xf32>
    %c50_59 = arith.constant 50 : index
    %599 = memref.load %arg6[%c50_59] : memref<96xf32, #tpu.memory_space<smem>>
    %600 = vector.broadcast %599 : f32 to vector<16x128xf32>
    %601 = arith.mulf %600, %590 : vector<16x128xf32>
    %602 = arith.addf %584, %601 : vector<16x128xf32>
    %c74_60 = arith.constant 74 : index
    %603 = memref.load %arg6[%c74_60] : memref<96xf32, #tpu.memory_space<smem>>
    %604 = vector.broadcast %603 : f32 to vector<16x128xf32>
    %605 = arith.mulf %604, %590 : vector<16x128xf32>
    %606 = arith.addf %588, %605 : vector<16x128xf32>
    %607 = vector.extract_strided_slice %551 {offsets = [1, 0, 0], sizes = [1, 16, 128], strides = [1, 1, 1]} : vector<8x16x128xf32> to vector<1x16x128xf32>
    %608 = vector.shape_cast %607 : vector<1x16x128xf32> to vector<16x128xf32>
    %c3_61 = arith.constant 3 : index
    %609 = memref.load %arg6[%c3_61] : memref<96xf32, #tpu.memory_space<smem>>
    %610 = vector.broadcast %609 : f32 to vector<16x128xf32>
    %611 = arith.mulf %610, %608 : vector<16x128xf32>
    %612 = arith.addf %594, %611 : vector<16x128xf32>
    %c27_62 = arith.constant 27 : index
    %613 = memref.load %arg6[%c27_62] : memref<96xf32, #tpu.memory_space<smem>>
    %614 = vector.broadcast %613 : f32 to vector<16x128xf32>
    %615 = arith.mulf %614, %608 : vector<16x128xf32>
    %616 = arith.addf %598, %615 : vector<16x128xf32>
    %c51_63 = arith.constant 51 : index
    %617 = memref.load %arg6[%c51_63] : memref<96xf32, #tpu.memory_space<smem>>
    %618 = vector.broadcast %617 : f32 to vector<16x128xf32>
    %619 = arith.mulf %618, %608 : vector<16x128xf32>
    %620 = arith.addf %602, %619 : vector<16x128xf32>
    %c75_64 = arith.constant 75 : index
    %621 = memref.load %arg6[%c75_64] : memref<96xf32, #tpu.memory_space<smem>>
    %622 = vector.broadcast %621 : f32 to vector<16x128xf32>
    %623 = arith.mulf %622, %608 : vector<16x128xf32>
    %624 = arith.addf %606, %623 : vector<16x128xf32>
    %625 = vector.extract_strided_slice %546 {offsets = [1, 0, 0], sizes = [1, 16, 128], strides = [1, 1, 1]} : vector<8x16x128xf32> to vector<1x16x128xf32>
    %626 = vector.shape_cast %625 : vector<1x16x128xf32> to vector<16x128xf32>
    %c4_65 = arith.constant 4 : index
    %627 = memref.load %arg6[%c4_65] : memref<96xf32, #tpu.memory_space<smem>>
    %628 = vector.broadcast %627 : f32 to vector<16x128xf32>
    %629 = arith.mulf %628, %626 : vector<16x128xf32>
    %630 = arith.addf %612, %629 : vector<16x128xf32>
    %c28_66 = arith.constant 28 : index
    %631 = memref.load %arg6[%c28_66] : memref<96xf32, #tpu.memory_space<smem>>
    %632 = vector.broadcast %631 : f32 to vector<16x128xf32>
    %633 = arith.mulf %632, %626 : vector<16x128xf32>
    %634 = arith.addf %616, %633 : vector<16x128xf32>
    %c52_67 = arith.constant 52 : index
    %635 = memref.load %arg6[%c52_67] : memref<96xf32, #tpu.memory_space<smem>>
    %636 = vector.broadcast %635 : f32 to vector<16x128xf32>
    %637 = arith.mulf %636, %626 : vector<16x128xf32>
    %638 = arith.addf %620, %637 : vector<16x128xf32>
    %c76_68 = arith.constant 76 : index
    %639 = memref.load %arg6[%c76_68] : memref<96xf32, #tpu.memory_space<smem>>
    %640 = vector.broadcast %639 : f32 to vector<16x128xf32>
    %641 = arith.mulf %640, %626 : vector<16x128xf32>
    %642 = arith.addf %624, %641 : vector<16x128xf32>
    %643 = vector.extract_strided_slice %556 {offsets = [1, 0, 0], sizes = [1, 16, 128], strides = [1, 1, 1]} : vector<8x16x128xf32> to vector<1x16x128xf32>
    %644 = vector.shape_cast %643 : vector<1x16x128xf32> to vector<16x128xf32>
    %c5_69 = arith.constant 5 : index
    %645 = memref.load %arg6[%c5_69] : memref<96xf32, #tpu.memory_space<smem>>
    %646 = vector.broadcast %645 : f32 to vector<16x128xf32>
    %647 = arith.mulf %646, %644 : vector<16x128xf32>
    %648 = arith.addf %630, %647 : vector<16x128xf32>
    %c29_70 = arith.constant 29 : index
    %649 = memref.load %arg6[%c29_70] : memref<96xf32, #tpu.memory_space<smem>>
    %650 = vector.broadcast %649 : f32 to vector<16x128xf32>
    %651 = arith.mulf %650, %644 : vector<16x128xf32>
    %652 = arith.addf %634, %651 : vector<16x128xf32>
    %c53_71 = arith.constant 53 : index
    %653 = memref.load %arg6[%c53_71] : memref<96xf32, #tpu.memory_space<smem>>
    %654 = vector.broadcast %653 : f32 to vector<16x128xf32>
    %655 = arith.mulf %654, %644 : vector<16x128xf32>
    %656 = arith.addf %638, %655 : vector<16x128xf32>
    %c77_72 = arith.constant 77 : index
    %657 = memref.load %arg6[%c77_72] : memref<96xf32, #tpu.memory_space<smem>>
    %658 = vector.broadcast %657 : f32 to vector<16x128xf32>
    %659 = arith.mulf %658, %644 : vector<16x128xf32>
    %660 = arith.addf %642, %659 : vector<16x128xf32>
    %661 = vector.extract_strided_slice %551 {offsets = [2, 0, 0], sizes = [1, 16, 128], strides = [1, 1, 1]} : vector<8x16x128xf32> to vector<1x16x128xf32>
    %662 = vector.shape_cast %661 : vector<1x16x128xf32> to vector<16x128xf32>
    %c6_73 = arith.constant 6 : index
    %663 = memref.load %arg6[%c6_73] : memref<96xf32, #tpu.memory_space<smem>>
    %664 = vector.broadcast %663 : f32 to vector<16x128xf32>
    %665 = arith.mulf %664, %662 : vector<16x128xf32>
    %666 = arith.addf %648, %665 : vector<16x128xf32>
    %c30_74 = arith.constant 30 : index
    %667 = memref.load %arg6[%c30_74] : memref<96xf32, #tpu.memory_space<smem>>
    %668 = vector.broadcast %667 : f32 to vector<16x128xf32>
    %669 = arith.mulf %668, %662 : vector<16x128xf32>
    %670 = arith.addf %652, %669 : vector<16x128xf32>
    %c54_75 = arith.constant 54 : index
    %671 = memref.load %arg6[%c54_75] : memref<96xf32, #tpu.memory_space<smem>>
    %672 = vector.broadcast %671 : f32 to vector<16x128xf32>
    %673 = arith.mulf %672, %662 : vector<16x128xf32>
    %674 = arith.addf %656, %673 : vector<16x128xf32>
    %c78_76 = arith.constant 78 : index
    %675 = memref.load %arg6[%c78_76] : memref<96xf32, #tpu.memory_space<smem>>
    %676 = vector.broadcast %675 : f32 to vector<16x128xf32>
    %677 = arith.mulf %676, %662 : vector<16x128xf32>
    %678 = arith.addf %660, %677 : vector<16x128xf32>
    %679 = vector.extract_strided_slice %546 {offsets = [2, 0, 0], sizes = [1, 16, 128], strides = [1, 1, 1]} : vector<8x16x128xf32> to vector<1x16x128xf32>
    %680 = vector.shape_cast %679 : vector<1x16x128xf32> to vector<16x128xf32>
    %c7_77 = arith.constant 7 : index
    %681 = memref.load %arg6[%c7_77] : memref<96xf32, #tpu.memory_space<smem>>
    %682 = vector.broadcast %681 : f32 to vector<16x128xf32>
    %683 = arith.mulf %682, %680 : vector<16x128xf32>
    %684 = arith.addf %666, %683 : vector<16x128xf32>
    %c31_78 = arith.constant 31 : index
    %685 = memref.load %arg6[%c31_78] : memref<96xf32, #tpu.memory_space<smem>>
    %686 = vector.broadcast %685 : f32 to vector<16x128xf32>
    %687 = arith.mulf %686, %680 : vector<16x128xf32>
    %688 = arith.addf %670, %687 : vector<16x128xf32>
    %c55_79 = arith.constant 55 : index
    %689 = memref.load %arg6[%c55_79] : memref<96xf32, #tpu.memory_space<smem>>
    %690 = vector.broadcast %689 : f32 to vector<16x128xf32>
    %691 = arith.mulf %690, %680 : vector<16x128xf32>
    %692 = arith.addf %674, %691 : vector<16x128xf32>
    %c79_80 = arith.constant 79 : index
    %693 = memref.load %arg6[%c79_80] : memref<96xf32, #tpu.memory_space<smem>>
    %694 = vector.broadcast %693 : f32 to vector<16x128xf32>
    %695 = arith.mulf %694, %680 : vector<16x128xf32>
    %696 = arith.addf %678, %695 : vector<16x128xf32>
    %697 = vector.extract_strided_slice %556 {offsets = [2, 0, 0], sizes = [1, 16, 128], strides = [1, 1, 1]} : vector<8x16x128xf32> to vector<1x16x128xf32>
    %698 = vector.shape_cast %697 : vector<1x16x128xf32> to vector<16x128xf32>
    %c8_81 = arith.constant 8 : index
    %699 = memref.load %arg6[%c8_81] : memref<96xf32, #tpu.memory_space<smem>>
    %700 = vector.broadcast %699 : f32 to vector<16x128xf32>
    %701 = arith.mulf %700, %698 : vector<16x128xf32>
    %702 = arith.addf %684, %701 : vector<16x128xf32>
    %c32_82 = arith.constant 32 : index
    %703 = memref.load %arg6[%c32_82] : memref<96xf32, #tpu.memory_space<smem>>
    %704 = vector.broadcast %703 : f32 to vector<16x128xf32>
    %705 = arith.mulf %704, %698 : vector<16x128xf32>
    %706 = arith.addf %688, %705 : vector<16x128xf32>
    %c56_83 = arith.constant 56 : index
    %707 = memref.load %arg6[%c56_83] : memref<96xf32, #tpu.memory_space<smem>>
    %708 = vector.broadcast %707 : f32 to vector<16x128xf32>
    %709 = arith.mulf %708, %698 : vector<16x128xf32>
    %710 = arith.addf %692, %709 : vector<16x128xf32>
    %c80_84 = arith.constant 80 : index
    %711 = memref.load %arg6[%c80_84] : memref<96xf32, #tpu.memory_space<smem>>
    %712 = vector.broadcast %711 : f32 to vector<16x128xf32>
    %713 = arith.mulf %712, %698 : vector<16x128xf32>
    %714 = arith.addf %696, %713 : vector<16x128xf32>
    %715 = vector.extract_strided_slice %551 {offsets = [3, 0, 0], sizes = [1, 16, 128], strides = [1, 1, 1]} : vector<8x16x128xf32> to vector<1x16x128xf32>
    %716 = vector.shape_cast %715 : vector<1x16x128xf32> to vector<16x128xf32>
    %c9_85 = arith.constant 9 : index
    %717 = memref.load %arg6[%c9_85] : memref<96xf32, #tpu.memory_space<smem>>
    %718 = vector.broadcast %717 : f32 to vector<16x128xf32>
    %719 = arith.mulf %718, %716 : vector<16x128xf32>
    %720 = arith.addf %702, %719 : vector<16x128xf32>
    %c33_86 = arith.constant 33 : index
    %721 = memref.load %arg6[%c33_86] : memref<96xf32, #tpu.memory_space<smem>>
    %722 = vector.broadcast %721 : f32 to vector<16x128xf32>
    %723 = arith.mulf %722, %716 : vector<16x128xf32>
    %724 = arith.addf %706, %723 : vector<16x128xf32>
    %c57_87 = arith.constant 57 : index
    %725 = memref.load %arg6[%c57_87] : memref<96xf32, #tpu.memory_space<smem>>
    %726 = vector.broadcast %725 : f32 to vector<16x128xf32>
    %727 = arith.mulf %726, %716 : vector<16x128xf32>
    %728 = arith.addf %710, %727 : vector<16x128xf32>
    %c81_88 = arith.constant 81 : index
    %729 = memref.load %arg6[%c81_88] : memref<96xf32, #tpu.memory_space<smem>>
    %730 = vector.broadcast %729 : f32 to vector<16x128xf32>
    %731 = arith.mulf %730, %716 : vector<16x128xf32>
    %732 = arith.addf %714, %731 : vector<16x128xf32>
    %733 = vector.extract_strided_slice %546 {offsets = [3, 0, 0], sizes = [1, 16, 128], strides = [1, 1, 1]} : vector<8x16x128xf32> to vector<1x16x128xf32>
    %734 = vector.shape_cast %733 : vector<1x16x128xf32> to vector<16x128xf32>
    %c10_89 = arith.constant 10 : index
    %735 = memref.load %arg6[%c10_89] : memref<96xf32, #tpu.memory_space<smem>>
    %736 = vector.broadcast %735 : f32 to vector<16x128xf32>
    %737 = arith.mulf %736, %734 : vector<16x128xf32>
    %738 = arith.addf %720, %737 : vector<16x128xf32>
    %c34_90 = arith.constant 34 : index
    %739 = memref.load %arg6[%c34_90] : memref<96xf32, #tpu.memory_space<smem>>
    %740 = vector.broadcast %739 : f32 to vector<16x128xf32>
    %741 = arith.mulf %740, %734 : vector<16x128xf32>
    %742 = arith.addf %724, %741 : vector<16x128xf32>
    %c58_91 = arith.constant 58 : index
    %743 = memref.load %arg6[%c58_91] : memref<96xf32, #tpu.memory_space<smem>>
    %744 = vector.broadcast %743 : f32 to vector<16x128xf32>
    %745 = arith.mulf %744, %734 : vector<16x128xf32>
    %746 = arith.addf %728, %745 : vector<16x128xf32>
    %c82_92 = arith.constant 82 : index
    %747 = memref.load %arg6[%c82_92] : memref<96xf32, #tpu.memory_space<smem>>
    %748 = vector.broadcast %747 : f32 to vector<16x128xf32>
    %749 = arith.mulf %748, %734 : vector<16x128xf32>
    %750 = arith.addf %732, %749 : vector<16x128xf32>
    %751 = vector.extract_strided_slice %556 {offsets = [3, 0, 0], sizes = [1, 16, 128], strides = [1, 1, 1]} : vector<8x16x128xf32> to vector<1x16x128xf32>
    %752 = vector.shape_cast %751 : vector<1x16x128xf32> to vector<16x128xf32>
    %c11_93 = arith.constant 11 : index
    %753 = memref.load %arg6[%c11_93] : memref<96xf32, #tpu.memory_space<smem>>
    %754 = vector.broadcast %753 : f32 to vector<16x128xf32>
    %755 = arith.mulf %754, %752 : vector<16x128xf32>
    %756 = arith.addf %738, %755 : vector<16x128xf32>
    %c35_94 = arith.constant 35 : index
    %757 = memref.load %arg6[%c35_94] : memref<96xf32, #tpu.memory_space<smem>>
    %758 = vector.broadcast %757 : f32 to vector<16x128xf32>
    %759 = arith.mulf %758, %752 : vector<16x128xf32>
    %760 = arith.addf %742, %759 : vector<16x128xf32>
    %c59_95 = arith.constant 59 : index
    %761 = memref.load %arg6[%c59_95] : memref<96xf32, #tpu.memory_space<smem>>
    %762 = vector.broadcast %761 : f32 to vector<16x128xf32>
    %763 = arith.mulf %762, %752 : vector<16x128xf32>
    %764 = arith.addf %746, %763 : vector<16x128xf32>
    %c83_96 = arith.constant 83 : index
    %765 = memref.load %arg6[%c83_96] : memref<96xf32, #tpu.memory_space<smem>>
    %766 = vector.broadcast %765 : f32 to vector<16x128xf32>
    %767 = arith.mulf %766, %752 : vector<16x128xf32>
    %768 = arith.addf %750, %767 : vector<16x128xf32>
    %769 = vector.extract_strided_slice %551 {offsets = [4, 0, 0], sizes = [1, 16, 128], strides = [1, 1, 1]} : vector<8x16x128xf32> to vector<1x16x128xf32>
    %770 = vector.shape_cast %769 : vector<1x16x128xf32> to vector<16x128xf32>
    %c12_97 = arith.constant 12 : index
    %771 = memref.load %arg6[%c12_97] : memref<96xf32, #tpu.memory_space<smem>>
    %772 = vector.broadcast %771 : f32 to vector<16x128xf32>
    %773 = arith.mulf %772, %770 : vector<16x128xf32>
    %774 = arith.addf %756, %773 : vector<16x128xf32>
    %c36_98 = arith.constant 36 : index
    %775 = memref.load %arg6[%c36_98] : memref<96xf32, #tpu.memory_space<smem>>
    %776 = vector.broadcast %775 : f32 to vector<16x128xf32>
    %777 = arith.mulf %776, %770 : vector<16x128xf32>
    %778 = arith.addf %760, %777 : vector<16x128xf32>
    %c60_99 = arith.constant 60 : index
    %779 = memref.load %arg6[%c60_99] : memref<96xf32, #tpu.memory_space<smem>>
    %780 = vector.broadcast %779 : f32 to vector<16x128xf32>
    %781 = arith.mulf %780, %770 : vector<16x128xf32>
    %782 = arith.addf %764, %781 : vector<16x128xf32>
    %c84_100 = arith.constant 84 : index
    %783 = memref.load %arg6[%c84_100] : memref<96xf32, #tpu.memory_space<smem>>
    %784 = vector.broadcast %783 : f32 to vector<16x128xf32>
    %785 = arith.mulf %784, %770 : vector<16x128xf32>
    %786 = arith.addf %768, %785 : vector<16x128xf32>
    %787 = vector.extract_strided_slice %546 {offsets = [4, 0, 0], sizes = [1, 16, 128], strides = [1, 1, 1]} : vector<8x16x128xf32> to vector<1x16x128xf32>
    %788 = vector.shape_cast %787 : vector<1x16x128xf32> to vector<16x128xf32>
    %c13_101 = arith.constant 13 : index
    %789 = memref.load %arg6[%c13_101] : memref<96xf32, #tpu.memory_space<smem>>
    %790 = vector.broadcast %789 : f32 to vector<16x128xf32>
    %791 = arith.mulf %790, %788 : vector<16x128xf32>
    %792 = arith.addf %774, %791 : vector<16x128xf32>
    %c37_102 = arith.constant 37 : index
    %793 = memref.load %arg6[%c37_102] : memref<96xf32, #tpu.memory_space<smem>>
    %794 = vector.broadcast %793 : f32 to vector<16x128xf32>
    %795 = arith.mulf %794, %788 : vector<16x128xf32>
    %796 = arith.addf %778, %795 : vector<16x128xf32>
    %c61_103 = arith.constant 61 : index
    %797 = memref.load %arg6[%c61_103] : memref<96xf32, #tpu.memory_space<smem>>
    %798 = vector.broadcast %797 : f32 to vector<16x128xf32>
    %799 = arith.mulf %798, %788 : vector<16x128xf32>
    %800 = arith.addf %782, %799 : vector<16x128xf32>
    %c85_104 = arith.constant 85 : index
    %801 = memref.load %arg6[%c85_104] : memref<96xf32, #tpu.memory_space<smem>>
    %802 = vector.broadcast %801 : f32 to vector<16x128xf32>
    %803 = arith.mulf %802, %788 : vector<16x128xf32>
    %804 = arith.addf %786, %803 : vector<16x128xf32>
    %805 = vector.extract_strided_slice %556 {offsets = [4, 0, 0], sizes = [1, 16, 128], strides = [1, 1, 1]} : vector<8x16x128xf32> to vector<1x16x128xf32>
    %806 = vector.shape_cast %805 : vector<1x16x128xf32> to vector<16x128xf32>
    %c14_105 = arith.constant 14 : index
    %807 = memref.load %arg6[%c14_105] : memref<96xf32, #tpu.memory_space<smem>>
    %808 = vector.broadcast %807 : f32 to vector<16x128xf32>
    %809 = arith.mulf %808, %806 : vector<16x128xf32>
    %810 = arith.addf %792, %809 : vector<16x128xf32>
    %c38_106 = arith.constant 38 : index
    %811 = memref.load %arg6[%c38_106] : memref<96xf32, #tpu.memory_space<smem>>
    %812 = vector.broadcast %811 : f32 to vector<16x128xf32>
    %813 = arith.mulf %812, %806 : vector<16x128xf32>
    %814 = arith.addf %796, %813 : vector<16x128xf32>
    %c62_107 = arith.constant 62 : index
    %815 = memref.load %arg6[%c62_107] : memref<96xf32, #tpu.memory_space<smem>>
    %816 = vector.broadcast %815 : f32 to vector<16x128xf32>
    %817 = arith.mulf %816, %806 : vector<16x128xf32>
    %818 = arith.addf %800, %817 : vector<16x128xf32>
    %c86_108 = arith.constant 86 : index
    %819 = memref.load %arg6[%c86_108] : memref<96xf32, #tpu.memory_space<smem>>
    %820 = vector.broadcast %819 : f32 to vector<16x128xf32>
    %821 = arith.mulf %820, %806 : vector<16x128xf32>
    %822 = arith.addf %804, %821 : vector<16x128xf32>
    %823 = vector.extract_strided_slice %551 {offsets = [5, 0, 0], sizes = [1, 16, 128], strides = [1, 1, 1]} : vector<8x16x128xf32> to vector<1x16x128xf32>
    %824 = vector.shape_cast %823 : vector<1x16x128xf32> to vector<16x128xf32>
    %c15_109 = arith.constant 15 : index
    %825 = memref.load %arg6[%c15_109] : memref<96xf32, #tpu.memory_space<smem>>
    %826 = vector.broadcast %825 : f32 to vector<16x128xf32>
    %827 = arith.mulf %826, %824 : vector<16x128xf32>
    %828 = arith.addf %810, %827 : vector<16x128xf32>
    %c39_110 = arith.constant 39 : index
    %829 = memref.load %arg6[%c39_110] : memref<96xf32, #tpu.memory_space<smem>>
    %830 = vector.broadcast %829 : f32 to vector<16x128xf32>
    %831 = arith.mulf %830, %824 : vector<16x128xf32>
    %832 = arith.addf %814, %831 : vector<16x128xf32>
    %c63_111 = arith.constant 63 : index
    %833 = memref.load %arg6[%c63_111] : memref<96xf32, #tpu.memory_space<smem>>
    %834 = vector.broadcast %833 : f32 to vector<16x128xf32>
    %835 = arith.mulf %834, %824 : vector<16x128xf32>
    %836 = arith.addf %818, %835 : vector<16x128xf32>
    %c87_112 = arith.constant 87 : index
    %837 = memref.load %arg6[%c87_112] : memref<96xf32, #tpu.memory_space<smem>>
    %838 = vector.broadcast %837 : f32 to vector<16x128xf32>
    %839 = arith.mulf %838, %824 : vector<16x128xf32>
    %840 = arith.addf %822, %839 : vector<16x128xf32>
    %841 = vector.extract_strided_slice %546 {offsets = [5, 0, 0], sizes = [1, 16, 128], strides = [1, 1, 1]} : vector<8x16x128xf32> to vector<1x16x128xf32>
    %842 = vector.shape_cast %841 : vector<1x16x128xf32> to vector<16x128xf32>
    %c16_113 = arith.constant 16 : index
    %843 = memref.load %arg6[%c16_113] : memref<96xf32, #tpu.memory_space<smem>>
    %844 = vector.broadcast %843 : f32 to vector<16x128xf32>
    %845 = arith.mulf %844, %842 : vector<16x128xf32>
    %846 = arith.addf %828, %845 : vector<16x128xf32>
    %c40_114 = arith.constant 40 : index
    %847 = memref.load %arg6[%c40_114] : memref<96xf32, #tpu.memory_space<smem>>
    %848 = vector.broadcast %847 : f32 to vector<16x128xf32>
    %849 = arith.mulf %848, %842 : vector<16x128xf32>
    %850 = arith.addf %832, %849 : vector<16x128xf32>
    %c64_115 = arith.constant 64 : index
    %851 = memref.load %arg6[%c64_115] : memref<96xf32, #tpu.memory_space<smem>>
    %852 = vector.broadcast %851 : f32 to vector<16x128xf32>
    %853 = arith.mulf %852, %842 : vector<16x128xf32>
    %854 = arith.addf %836, %853 : vector<16x128xf32>
    %c88_116 = arith.constant 88 : index
    %855 = memref.load %arg6[%c88_116] : memref<96xf32, #tpu.memory_space<smem>>
    %856 = vector.broadcast %855 : f32 to vector<16x128xf32>
    %857 = arith.mulf %856, %842 : vector<16x128xf32>
    %858 = arith.addf %840, %857 : vector<16x128xf32>
    %859 = vector.extract_strided_slice %556 {offsets = [5, 0, 0], sizes = [1, 16, 128], strides = [1, 1, 1]} : vector<8x16x128xf32> to vector<1x16x128xf32>
    %860 = vector.shape_cast %859 : vector<1x16x128xf32> to vector<16x128xf32>
    %c17_117 = arith.constant 17 : index
    %861 = memref.load %arg6[%c17_117] : memref<96xf32, #tpu.memory_space<smem>>
    %862 = vector.broadcast %861 : f32 to vector<16x128xf32>
    %863 = arith.mulf %862, %860 : vector<16x128xf32>
    %864 = arith.addf %846, %863 : vector<16x128xf32>
    %c41_118 = arith.constant 41 : index
    %865 = memref.load %arg6[%c41_118] : memref<96xf32, #tpu.memory_space<smem>>
    %866 = vector.broadcast %865 : f32 to vector<16x128xf32>
    %867 = arith.mulf %866, %860 : vector<16x128xf32>
    %868 = arith.addf %850, %867 : vector<16x128xf32>
    %c65_119 = arith.constant 65 : index
    %869 = memref.load %arg6[%c65_119] : memref<96xf32, #tpu.memory_space<smem>>
    %870 = vector.broadcast %869 : f32 to vector<16x128xf32>
    %871 = arith.mulf %870, %860 : vector<16x128xf32>
    %872 = arith.addf %854, %871 : vector<16x128xf32>
    %c89_120 = arith.constant 89 : index
    %873 = memref.load %arg6[%c89_120] : memref<96xf32, #tpu.memory_space<smem>>
    %874 = vector.broadcast %873 : f32 to vector<16x128xf32>
    %875 = arith.mulf %874, %860 : vector<16x128xf32>
    %876 = arith.addf %858, %875 : vector<16x128xf32>
    %877 = vector.extract_strided_slice %551 {offsets = [6, 0, 0], sizes = [1, 16, 128], strides = [1, 1, 1]} : vector<8x16x128xf32> to vector<1x16x128xf32>
    %878 = vector.shape_cast %877 : vector<1x16x128xf32> to vector<16x128xf32>
    %c18_121 = arith.constant 18 : index
    %879 = memref.load %arg6[%c18_121] : memref<96xf32, #tpu.memory_space<smem>>
    %880 = vector.broadcast %879 : f32 to vector<16x128xf32>
    %881 = arith.mulf %880, %878 : vector<16x128xf32>
    %882 = arith.addf %864, %881 : vector<16x128xf32>
    %c42_122 = arith.constant 42 : index
    %883 = memref.load %arg6[%c42_122] : memref<96xf32, #tpu.memory_space<smem>>
    %884 = vector.broadcast %883 : f32 to vector<16x128xf32>
    %885 = arith.mulf %884, %878 : vector<16x128xf32>
    %886 = arith.addf %868, %885 : vector<16x128xf32>
    %c66_123 = arith.constant 66 : index
    %887 = memref.load %arg6[%c66_123] : memref<96xf32, #tpu.memory_space<smem>>
    %888 = vector.broadcast %887 : f32 to vector<16x128xf32>
    %889 = arith.mulf %888, %878 : vector<16x128xf32>
    %890 = arith.addf %872, %889 : vector<16x128xf32>
    %c90_124 = arith.constant 90 : index
    %891 = memref.load %arg6[%c90_124] : memref<96xf32, #tpu.memory_space<smem>>
    %892 = vector.broadcast %891 : f32 to vector<16x128xf32>
    %893 = arith.mulf %892, %878 : vector<16x128xf32>
    %894 = arith.addf %876, %893 : vector<16x128xf32>
    %895 = vector.extract_strided_slice %546 {offsets = [6, 0, 0], sizes = [1, 16, 128], strides = [1, 1, 1]} : vector<8x16x128xf32> to vector<1x16x128xf32>
    %896 = vector.shape_cast %895 : vector<1x16x128xf32> to vector<16x128xf32>
    %c19_125 = arith.constant 19 : index
    %897 = memref.load %arg6[%c19_125] : memref<96xf32, #tpu.memory_space<smem>>
    %898 = vector.broadcast %897 : f32 to vector<16x128xf32>
    %899 = arith.mulf %898, %896 : vector<16x128xf32>
    %900 = arith.addf %882, %899 : vector<16x128xf32>
    %c43_126 = arith.constant 43 : index
    %901 = memref.load %arg6[%c43_126] : memref<96xf32, #tpu.memory_space<smem>>
    %902 = vector.broadcast %901 : f32 to vector<16x128xf32>
    %903 = arith.mulf %902, %896 : vector<16x128xf32>
    %904 = arith.addf %886, %903 : vector<16x128xf32>
    %c67_127 = arith.constant 67 : index
    %905 = memref.load %arg6[%c67_127] : memref<96xf32, #tpu.memory_space<smem>>
    %906 = vector.broadcast %905 : f32 to vector<16x128xf32>
    %907 = arith.mulf %906, %896 : vector<16x128xf32>
    %908 = arith.addf %890, %907 : vector<16x128xf32>
    %c91_128 = arith.constant 91 : index
    %909 = memref.load %arg6[%c91_128] : memref<96xf32, #tpu.memory_space<smem>>
    %910 = vector.broadcast %909 : f32 to vector<16x128xf32>
    %911 = arith.mulf %910, %896 : vector<16x128xf32>
    %912 = arith.addf %894, %911 : vector<16x128xf32>
    %913 = vector.extract_strided_slice %556 {offsets = [6, 0, 0], sizes = [1, 16, 128], strides = [1, 1, 1]} : vector<8x16x128xf32> to vector<1x16x128xf32>
    %914 = vector.shape_cast %913 : vector<1x16x128xf32> to vector<16x128xf32>
    %c20_129 = arith.constant 20 : index
    %915 = memref.load %arg6[%c20_129] : memref<96xf32, #tpu.memory_space<smem>>
    %916 = vector.broadcast %915 : f32 to vector<16x128xf32>
    %917 = arith.mulf %916, %914 : vector<16x128xf32>
    %918 = arith.addf %900, %917 : vector<16x128xf32>
    %c44_130 = arith.constant 44 : index
    %919 = memref.load %arg6[%c44_130] : memref<96xf32, #tpu.memory_space<smem>>
    %920 = vector.broadcast %919 : f32 to vector<16x128xf32>
    %921 = arith.mulf %920, %914 : vector<16x128xf32>
    %922 = arith.addf %904, %921 : vector<16x128xf32>
    %c68_131 = arith.constant 68 : index
    %923 = memref.load %arg6[%c68_131] : memref<96xf32, #tpu.memory_space<smem>>
    %924 = vector.broadcast %923 : f32 to vector<16x128xf32>
    %925 = arith.mulf %924, %914 : vector<16x128xf32>
    %926 = arith.addf %908, %925 : vector<16x128xf32>
    %c92_132 = arith.constant 92 : index
    %927 = memref.load %arg6[%c92_132] : memref<96xf32, #tpu.memory_space<smem>>
    %928 = vector.broadcast %927 : f32 to vector<16x128xf32>
    %929 = arith.mulf %928, %914 : vector<16x128xf32>
    %930 = arith.addf %912, %929 : vector<16x128xf32>
    %931 = vector.extract_strided_slice %551 {offsets = [7, 0, 0], sizes = [1, 16, 128], strides = [1, 1, 1]} : vector<8x16x128xf32> to vector<1x16x128xf32>
    %932 = vector.shape_cast %931 : vector<1x16x128xf32> to vector<16x128xf32>
    %c21_133 = arith.constant 21 : index
    %933 = memref.load %arg6[%c21_133] : memref<96xf32, #tpu.memory_space<smem>>
    %934 = vector.broadcast %933 : f32 to vector<16x128xf32>
    %935 = arith.mulf %934, %932 : vector<16x128xf32>
    %936 = arith.addf %918, %935 : vector<16x128xf32>
    %c45_134 = arith.constant 45 : index
    %937 = memref.load %arg6[%c45_134] : memref<96xf32, #tpu.memory_space<smem>>
    %938 = vector.broadcast %937 : f32 to vector<16x128xf32>
    %939 = arith.mulf %938, %932 : vector<16x128xf32>
    %940 = arith.addf %922, %939 : vector<16x128xf32>
    %c69_135 = arith.constant 69 : index
    %941 = memref.load %arg6[%c69_135] : memref<96xf32, #tpu.memory_space<smem>>
    %942 = vector.broadcast %941 : f32 to vector<16x128xf32>
    %943 = arith.mulf %942, %932 : vector<16x128xf32>
    %944 = arith.addf %926, %943 : vector<16x128xf32>
    %c93_136 = arith.constant 93 : index
    %945 = memref.load %arg6[%c93_136] : memref<96xf32, #tpu.memory_space<smem>>
    %946 = vector.broadcast %945 : f32 to vector<16x128xf32>
    %947 = arith.mulf %946, %932 : vector<16x128xf32>
    %948 = arith.addf %930, %947 : vector<16x128xf32>
    %949 = vector.extract_strided_slice %546 {offsets = [7, 0, 0], sizes = [1, 16, 128], strides = [1, 1, 1]} : vector<8x16x128xf32> to vector<1x16x128xf32>
    %950 = vector.shape_cast %949 : vector<1x16x128xf32> to vector<16x128xf32>
    %c22_137 = arith.constant 22 : index
    %951 = memref.load %arg6[%c22_137] : memref<96xf32, #tpu.memory_space<smem>>
    %952 = vector.broadcast %951 : f32 to vector<16x128xf32>
    %953 = arith.mulf %952, %950 : vector<16x128xf32>
    %954 = arith.addf %936, %953 : vector<16x128xf32>
    %c46_138 = arith.constant 46 : index
    %955 = memref.load %arg6[%c46_138] : memref<96xf32, #tpu.memory_space<smem>>
    %956 = vector.broadcast %955 : f32 to vector<16x128xf32>
    %957 = arith.mulf %956, %950 : vector<16x128xf32>
    %958 = arith.addf %940, %957 : vector<16x128xf32>
    %c70_139 = arith.constant 70 : index
    %959 = memref.load %arg6[%c70_139] : memref<96xf32, #tpu.memory_space<smem>>
    %960 = vector.broadcast %959 : f32 to vector<16x128xf32>
    %961 = arith.mulf %960, %950 : vector<16x128xf32>
    %962 = arith.addf %944, %961 : vector<16x128xf32>
    %c94_140 = arith.constant 94 : index
    %963 = memref.load %arg6[%c94_140] : memref<96xf32, #tpu.memory_space<smem>>
    %964 = vector.broadcast %963 : f32 to vector<16x128xf32>
    %965 = arith.mulf %964, %950 : vector<16x128xf32>
    %966 = arith.addf %948, %965 : vector<16x128xf32>
    %967 = vector.extract_strided_slice %556 {offsets = [7, 0, 0], sizes = [1, 16, 128], strides = [1, 1, 1]} : vector<8x16x128xf32> to vector<1x16x128xf32>
    %968 = vector.shape_cast %967 : vector<1x16x128xf32> to vector<16x128xf32>
    %c23_141 = arith.constant 23 : index
    %969 = memref.load %arg6[%c23_141] : memref<96xf32, #tpu.memory_space<smem>>
    %970 = vector.broadcast %969 : f32 to vector<16x128xf32>
    %971 = arith.mulf %970, %968 : vector<16x128xf32>
    %972 = arith.addf %954, %971 : vector<16x128xf32>
    %c47_142 = arith.constant 47 : index
    %973 = memref.load %arg6[%c47_142] : memref<96xf32, #tpu.memory_space<smem>>
    %974 = vector.broadcast %973 : f32 to vector<16x128xf32>
    %975 = arith.mulf %974, %968 : vector<16x128xf32>
    %976 = arith.addf %958, %975 : vector<16x128xf32>
    %c71_143 = arith.constant 71 : index
    %977 = memref.load %arg6[%c71_143] : memref<96xf32, #tpu.memory_space<smem>>
    %978 = vector.broadcast %977 : f32 to vector<16x128xf32>
    %979 = arith.mulf %978, %968 : vector<16x128xf32>
    %980 = arith.addf %962, %979 : vector<16x128xf32>
    %c95_144 = arith.constant 95 : index
    %981 = memref.load %arg6[%c95_144] : memref<96xf32, #tpu.memory_space<smem>>
    %982 = vector.broadcast %981 : f32 to vector<16x128xf32>
    %983 = arith.mulf %982, %968 : vector<16x128xf32>
    %984 = arith.addf %966, %983 : vector<16x128xf32>
    %c0_145 = arith.constant 0 : index
    %985 = memref.load %arg7[%c0_145] : memref<4xf32, #tpu.memory_space<smem>>
    %986 = vector.broadcast %985 : f32 to vector<16x128xf32>
    %987 = arith.addf %972, %986 : vector<16x128xf32>
    %cst_146 = arith.constant 0.000000e+00 : f32
    %988 = vector.broadcast %cst_146 : f32 to vector<16x128xf32>
    %989 = arith.maximumf %987, %988 : vector<16x128xf32>
    %c1_147 = arith.constant 1 : index
    %990 = memref.load %arg7[%c1_147] : memref<4xf32, #tpu.memory_space<smem>>
    %991 = vector.broadcast %990 : f32 to vector<16x128xf32>
    %992 = arith.addf %976, %991 : vector<16x128xf32>
    %cst_148 = arith.constant 0.000000e+00 : f32
    %993 = vector.broadcast %cst_148 : f32 to vector<16x128xf32>
    %994 = arith.maximumf %992, %993 : vector<16x128xf32>
    %c2_149 = arith.constant 2 : index
    %995 = memref.load %arg7[%c2_149] : memref<4xf32, #tpu.memory_space<smem>>
    %996 = vector.broadcast %995 : f32 to vector<16x128xf32>
    %997 = arith.addf %980, %996 : vector<16x128xf32>
    %cst_150 = arith.constant 0.000000e+00 : f32
    %998 = vector.broadcast %cst_150 : f32 to vector<16x128xf32>
    %999 = arith.maximumf %997, %998 : vector<16x128xf32>
    %c3_151 = arith.constant 3 : index
    %1000 = memref.load %arg7[%c3_151] : memref<4xf32, #tpu.memory_space<smem>>
    %1001 = vector.broadcast %1000 : f32 to vector<16x128xf32>
    %1002 = arith.addf %984, %1001 : vector<16x128xf32>
    %cst_152 = arith.constant 0.000000e+00 : f32
    %1003 = vector.broadcast %cst_152 : f32 to vector<16x128xf32>
    %1004 = arith.maximumf %1002, %1003 : vector<16x128xf32>
    %1005 = vector.shape_cast %989 : vector<16x128xf32> to vector<1x16x128xf32>
    %1006 = vector.shape_cast %994 : vector<16x128xf32> to vector<1x16x128xf32>
    %1007 = vector.shape_cast %999 : vector<16x128xf32> to vector<1x16x128xf32>
    %1008 = vector.shape_cast %1004 : vector<16x128xf32> to vector<1x16x128xf32>
    %1009 = tpu.concatenate %1005, %1006, %1007, %1008 in 0 : vector<1x16x128xf32>, vector<1x16x128xf32>, vector<1x16x128xf32>, vector<1x16x128xf32> -> vector<4x16x128xf32>
    %cst_153 = arith.constant dense<0.000000e+00> : vector<4x128xf32>
    %1010 = vector.multi_reduction <add>, %1009, %cst_153 [1] : vector<4x16x128xf32> to vector<4x128xf32>
    %cst_154 = arith.constant 1.600000e+01 : f32
    %1011 = vector.broadcast %cst_154 : f32 to vector<4x128xf32>
    %1012 = arith.divf %1010, %1011 : vector<4x128xf32>
    %cst_155 = arith.constant 0.000000e+00 : f32
    %1013 = vector.broadcast %cst_155 : f32 to vector<4x128xf32>
    %1014 = tpu.concatenate %1012, %1013 in 0 : vector<4x128xf32>, vector<4x128xf32> -> vector<8x128xf32>
    %c0_156 = arith.constant 0 : index
    %c0_157 = arith.constant 0 : index
    %1015 = vector.load %arg8[%c0_156, %c0_157] : memref<8x128xf32, #tpu.memory_space<vmem>>, vector<8x128xf32>
    tpu.vector_store %arg8[%c0_156, %c0_157], %1014 {strides = array<i32>} : memref<8x128xf32, #tpu.memory_space<vmem>>, vector<8x128xf32>,
    return
  }
  func.func @transform_0(%arg0: i32) -> (i32, i32, i32) {
    %c0_i32 = arith.constant 0 : i32
    %c0_i32_0 = arith.constant 0 : i32
    %c0_i32_1 = arith.constant 0 : i32
    return %c0_i32, %c0_i32_0, %arg0 : i32, i32, i32
  }
  func.func @transform_1(%arg0: i32) -> i32 {
    %c0_i32 = arith.constant 0 : i32
    %c0_i32_0 = arith.constant 0 : i32
    return %c0_i32 : i32
  }
  func.func @transform_2(%arg0: i32) -> i32 {
    %c0_i32 = arith.constant 0 : i32
    %c0_i32_0 = arith.constant 0 : i32
    return %c0_i32 : i32
  }
  func.func @transform_3(%arg0: i32) -> i32 {
    %c0_i32 = arith.constant 0 : i32
    %c0_i32_0 = arith.constant 0 : i32
    return %c0_i32 : i32
  }
  func.func @transform_4(%arg0: i32) -> i32 {
    %c0_i32 = arith.constant 0 : i32
    %c0_i32_0 = arith.constant 0 : i32
    return %c0_i32 : i32
  }
  func.func @transform_5(%arg0: i32) -> i32 {
    %c0_i32 = arith.constant 0 : i32
    %c0_i32_0 = arith.constant 0 : i32
    return %c0_i32 : i32
  }
  func.func @transform_6(%arg0: i32) -> i32 {
    %c0_i32 = arith.constant 0 : i32
    %c0_i32_0 = arith.constant 0 : i32
    return %c0_i32 : i32
  }
  func.func @transform_7(%arg0: i32) -> (i32, i32) {
    %c0_i32 = arith.constant 0 : i32
    %c0_i32_0 = arith.constant 0 : i32
    return %c0_i32, %arg0 : i32, i32
  }
}

</mosaic_0001>

<bundles_post_ra>
// kernel: tpu_custom_call.1
= control target key start
LH: loop header
LB: loop body
LE: loop exit
PB: predicated region body
PF: predicated region fallthrough
CT: control target
= control target key end

     0   :  { %12 = vsyncpa [#allocation3], 0  ;;  %s3499_s0 = inlined_call_operand.hbm [shape: f32[1,16,128], index: 0, kind: input, shape index: {}]   ;;  %s3500_s1 = inlined_call_operand.vmem [shape: f32[12], index: 1, kind: input, shape index: {}]   ;;  %s3501_s2 = inlined_call_operand.vmem [shape: f32[4], index: 2, kind: input, shape index: {}]   ;;  %s3502_s3 = inlined_call_operand.vmem [shape: f32[96], index: 3, kind: input, shape index: {}]   ;;  %s3503_s4 = inlined_call_operand.vmem [shape: f32[8], index: 4, kind: input, shape index: {}]   ;;  %s3504_s5 = inlined_call_operand.vmem [shape: f32[96], index: 5, kind: input, shape index: {}]   ;;  %s3505_s6 = inlined_call_operand.vmem [shape: f32[4], index: 6, kind: input, shape index: {}]   ;;  %s3506_s7 = inlined_call_operand.hbm [shape: f32[8,128], index: 7, kind: output, shape index: {}]  }
   0x1   :  { %13 = vsyncpa [#allocation5], 0 }
   0x2   :  { %14 = vsyncpa [#allocation8], 0 }
   0x3   :  { %15 = vsyncpa [#allocation11], 0 }
   0x4   :  { %16 = vsyncpa [#allocation14], 0  ;;  %s46_s26 = sshll.u32 %s3501_s2, 4  ;;  %s47_s26 = int_to_ptr.vmem [resolvable:$true] %s46_s26 }
   0x5   :  { %17 = vsyncpa [#allocation4], 0  ;;  %s66_s29 = sshll.u32 %s3503_s4, 4  ;;  %s1865_s30 = scalar_lea.vmem %s47_s26, 16  ;;  %s67_s29 = int_to_ptr.vmem [resolvable:$true] %s66_s29 }
   0x6   :  { %p1866_p0 = scmp.ne.s32.totalorder %s47_s26, %s1865_s30  ;;  %p1870_p1 = scmp.lt.s32.totalorder %s47_s26, %s47_s26 }
   0x7   :  { %p1871_p2 = scmp.lt.s32.totalorder %s1865_s30, %s1865_s30 }
   0x9   :  { %p1872_p3 = por %p1871_p2, %p1870_p1 }
   0xb   :  { %p1873_p4 = pnand %p1872_p3, %p1866_p0 }
   0xd   :  { %1876 = shalt.err (!%p1873_p4)
}
   0xe   :  { %s1993_s8 = smov [#allocation7]   ;;  %s1877_s9 = scalar_lea.vmem %s67_s29, 16 }
   0xf   :  { %49 = dma.vmem_to_smem %s47_s26, 16, %s1993_s8, [#allocation8]  }
  0x10   :  { %p1878_p5 = scmp.ne.s32.totalorder %s67_s29, %s1877_s9  ;;  %p1882_p6 = scmp.lt.s32.totalorder %s67_s29, %s67_s29 }
  0x11   :  { %p1883_p7 = scmp.lt.s32.totalorder %s1877_s9, %s1877_s9 }
  0x13   :  { %p1884_p8 = por %p1883_p7, %p1882_p6 }
  0x15   :  { %p1885_p9 = pnand %p1884_p8, %p1878_p5 }
  0x17   :  { %1888 = shalt.err (!%p1885_p9)
}
  0x18   :  { %s1994_s2 = smov [#allocation10]   ;;  %s1995_s4 = smov [#allocation2]  }
  0x19   :  { %69 = dma.vmem_to_smem %s67_s29, 16, %s1994_s2, [#allocation11]  }
  0x1a   :  { %s23_s10 = sshll.u32 %s1995_s4, 4  ;;  %s36_s13 = sshll.u32 %s3500_s1, 4  ;;  %s24_s10 = int_to_ptr.vmem [resolvable:$true] %s23_s10  ;;  %s37_s13 = int_to_ptr.vmem [resolvable:$true] %s36_s13 }
  0x1b   :  { %s1889_s16 = scalar_lea.hbm %s3499_s0, 256 }
  0x1c   :  { %p1890_p10 = scmp.ne.s32.totalorder %s3499_s0, %s1889_s16  ;;  %p1893_p11 = scmp.lt.u32.totalorder %s1889_s16, %s3499_s0 }
  0x1e   :  { %p1895_p12 = pnand %p1893_p11, %p1890_p10 }
  0x20   :  { %1898 = shalt.err (!%p1895_p12)
}
  0x21   :  { %s1899_s21 = scalar_lea.vmem %s24_s10, 256  ;;  %p1904_p0 = scmp.lt.s32.totalorder %s24_s10, %s24_s10 }
  0x22   :  { %p1900_p13 = scmp.ne.s32.totalorder %s24_s10, %s1899_s21  ;;  %p1905_p1 = scmp.lt.s32.totalorder %s1899_s21, %s1899_s21 }
  0x24   :  { %p1906_p2 = por %p1905_p1, %p1904_p0 }
  0x26   :  { %p1907_p3 = pnand %p1906_p2, %p1900_p13 }
  0x28   :  { %1910 = shalt.err (!%p1907_p3)
}
  0x29   :  { %s1996_s1 = smov 128   ;;  %s1997_s22 = smov 8  }
  0x2a   :  { %29 = dma.hbm_to_vmem [thread:$0]  %s3499_s0, 256, %s24_s10, [#allocation3], %s1996_s1, %s1996_s1, %s1997_s22  }
  0x2b   :  { %s1911_s25 = scalar_lea.vmem %s37_s13, 16  ;;  %p1916_p5 = scmp.lt.s32.totalorder %s37_s13, %s37_s13 }
  0x2c   :  { %p1912_p4 = scmp.ne.s32.totalorder %s37_s13, %s1911_s25  ;;  %p1917_p6 = scmp.lt.s32.totalorder %s1911_s25, %s1911_s25 }
  0x2e   :  { %p1918_p7 = por %p1917_p6, %p1916_p5 }
  0x30   :  { %p1919_p8 = pnand %p1918_p7, %p1912_p4 }
  0x32   :  { %1922 = shalt.err (!%p1919_p8)
}
  0x33   :  { %s1998_s26 = smov [#allocation6]   ;;  %s56_s29 = sshll.u32 %s3502_s3, 4  ;;  %s57_s29 = int_to_ptr.vmem [resolvable:$true] %s56_s29 }
  0x34   :  { %39 = dma.vmem_to_smem %s37_s13, 16, %s1998_s26, [#allocation5]  }
  0x35   :  { %s76_s9 = sshll.u32 %s3504_s5, 4  ;;  %s1923_s0 = scalar_lea.vmem %s57_s29, 16  ;;  %s77_s9 = int_to_ptr.vmem [resolvable:$true] %s76_s9 }
  0x36   :  { %p1924_p9 = scmp.ne.s32.totalorder %s57_s29, %s1923_s0  ;;  %p1928_p10 = scmp.lt.s32.totalorder %s57_s29, %s57_s29 }
  0x37   :  { %p1929_p11 = scmp.lt.s32.totalorder %s1923_s0, %s1923_s0 }
  0x39   :  { %p1930_p12 = por %p1929_p11, %p1928_p10 }
  0x3b   :  { %p1931_p13 = pnand %p1930_p12, %p1924_p9 }
  0x3d   :  { %1934 = shalt.err (!%p1931_p13)
}
  0x3e   :  { %s1999_s2 = smov [#allocation9]   ;;  %s1935_s4 = scalar_lea.vmem %s77_s9, 16 }
  0x3f   :  { %59 = dma.vmem_to_smem %s57_s29, 16, %s1999_s2, [#allocation8]  }
  0x40   :  { %p1936_p0 = scmp.ne.s32.totalorder %s77_s9, %s1935_s4  ;;  %p1940_p1 = scmp.lt.s32.totalorder %s77_s9, %s77_s9 }
  0x41   :  { %p1941_p2 = scmp.lt.s32.totalorder %s1935_s4, %s1935_s4 }
  0x43   :  { %p1942_p3 = por %p1941_p2, %p1940_p1 }
  0x45   :  { %p1943_p4 = pnand %p1942_p3, %p1936_p0 }
  0x47   :  { %1946 = shalt.err (!%p1943_p4)
}
  0x48   :  { %s2000_s3 = smov [#allocation12]   ;;  %s86_s11 = sshll.u32 %s3505_s6, 4  ;;  %s87_s11 = int_to_ptr.vmem [resolvable:$true] %s86_s11 }
  0x49   :  { %79 = dma.vmem_to_smem %s77_s9, 16, %s2000_s3, [#allocation11]  }
  0x4a   :  { %s1947_s12 = scalar_lea.vmem %s87_s11, 16  ;;  %p1952_p6 = scmp.lt.s32.totalorder %s87_s11, %s87_s11 }
  0x4b   :  { %p1948_p5 = scmp.ne.s32.totalorder %s87_s11, %s1947_s12  ;;  %p1953_p7 = scmp.lt.s32.totalorder %s1947_s12, %s1947_s12 }
  0x4d   :  { %p1954_p8 = por %p1953_p7, %p1952_p6 }
  0x4f   :  { %p1955_p9 = pnand %p1954_p8, %p1948_p5 }
  0x51   :  { %1958 = shalt.err (!%p1955_p9)
}
  0x52   :  { %s2001_s13 = smov [#allocation13]  }
  0x53   :  { %89 = dma.vmem_to_smem %s87_s11, 16, %s2001_s13, [#allocation14]  }
  0x54   :  { %1981 = dma.done.wait [#allocation3], 256  }
  0x55   :  { %1982 = vsyncadd [#allocation3], 4294967040 }
  0x56   :  { %1983 = dma.done.wait [#allocation5], 16  }
  0x57   :  { %1984 = vsyncadd [#allocation5], 4294967280 }
  0x58   :  { %1985 = dma.done.wait [#allocation8], 32  }
  0x59   :  { %1986 = vsyncadd [#allocation8], 4294967264 }
  0x5a   :  { %1987 = dma.done.wait [#allocation11], 32  }
  0x5b   :  { %1988 = vsyncadd [#allocation11], 4294967264 }
  0x5c   :  { %1989 = dma.done.wait [#allocation14], 16  }
  0x5d   :  { %1990 = vsyncadd [#allocation14], 4294967280 }
  0x5e   :  { %111 = sfence }
  0x5f   :  { %v112_v0 = vlaneseq  ;;  %v2073_v1 = vld [vmem:[#allocation2] sm:$0xff]  ;;  %v2075_v2 = vld [vmem:[#allocation2 + $0x8] sm:$0xff]  ;;  %s143_s6 = sld [smem:[#allocation6]]  ;;  %s2077_s14 = sld [smem:[#allocation6 + $0x3]]  ;;  %vm1612_vm4 = vcmask 1041409   ;;  %vm1614_vm5 = vcmask 1042434  }
  0x60   :  { %v121_v3 = vrot.slane %v2073_v1, 7  ;;  %v122_v4 = vrot.slane %v2075_v2, 7  ;;  %v132_v5 = vrot.slane %v2073_v1, 1  ;;  %v133_v6 = vrot.slane %v2075_v2, 1  ;;  %s2083_s15 = sld [smem:[#allocation6 + $0x6]]  ;;  %s2087_s16 = sld [smem:[#allocation6 + $0x9]] }
  0x61   :  { %v2085_v7 = vshrl.u32 %v112_v0, 7  ;;  %s2089_s17 = sld [smem:[#allocation6 + $0x1]]  ;;  %s2091_s18 = sld [smem:[#allocation6 + $0x4]]  ;;  %vm1616_vm6 = vcmask 1043459   ;;  %vm1619_vm7 = vcmask 1043456  }
  0x62   :  { %s2093_s19 = sld [smem:[#allocation6 + $0x7]]  ;;  %s2101_s20 = sld [smem:[#allocation6 + $0xa]] }
  0x63   :  { %v2096_v8 = vadd.s32 8, %v2085_v7  ;;  %vm115_vm0 = vcmp.eq.s32.totalorder %v2085_v7, 0  ;;  %vm123_vm1 = vcmp.lt.s32.totalorder %v2085_v7, 1  ;;  %vm134_vm2 = vcmp.lt.s32.totalorder %v2085_v7, 7  ;;  %s2111_s21 = sld [smem:[#allocation6 + $0x2]]  ;;  %s2117_s1 = sld [smem:[#allocation6 + $0x5]] }
  0x64   :  { %v124_v9 = vsel %vm123_vm1, %v121_v3, %v122_v4  ;;  %v125_v10 = vsel %vm123_vm1, %v122_v4, %v121_v3  ;;  %v135_v11 = vsel %vm134_vm2, %v132_v5, %v133_v6  ;;  %v136_v12 = vsel %vm134_vm2, %v133_v6, %v132_v5  ;;  %s2119_s22 = sld [smem:[#allocation6 + $0x8]]  ;;  %s2123_s23 = sld [smem:[#allocation6 + $0xb]] }
  0x65   :  { %vm118_vm3 = vcmp.eq.s32.totalorder %v2096_v8, 15  ;;  %v130_v13 = vsel %vm115_vm0, 0.0, %v125_v10  ;;  %v144_v14 = vstv %s143_s6  ;;  %v148_v15 = vstv %s2077_s14  ;;  %s2125_s24 = sld [smem:[#allocation7]]  ;;  %s2140_s25 = sld [smem:[#allocation7 + $0x1]] }
  0x66   :  { %v142_v16 = vsel %vm118_vm3, 0.0, %v136_v12  ;;  %v145_v17 = vmul.f32 %v144_v14, %v130_v13  ;;  %v146_v18 = vmul.f32 %v144_v14, %v124_v9  ;;  %v149_v19 = vmul.f32 %v148_v15, %v130_v13  ;;  %s2142_s26 = sld [smem:[#allocation7 + $0x2]]  ;;  %s2144_s27 = sld [smem:[#allocation7 + $0x3]] }
  0x67   :  { %v150_v20 = vmul.f32 %v148_v15, %v124_v9  ;;  %v152_v21 = vstv %s2083_s15  ;;  %v156_v22 = vstv %s2087_s16  ;;  %v160_v23 = vstv %s2089_s17  ;;  %s2146_s28 = sld [smem:[#allocation9]]  ;;  %s2164_s29 = sld [smem:[#allocation9 + $0xc]] }
  0x68   :  { %v153_v24 = vmul.f32 %v152_v21, %v130_v13  ;;  %v154_v25 = vmul.f32 %v152_v21, %v124_v9  ;;  %v157_v26 = vmul.f32 %v156_v22, %v130_v13  ;;  %v158_v27 = vmul.f32 %v156_v22, %v124_v9  ;;  %s2174_s30 = sld [smem:[#allocation9 + $0x18]]  ;;  %s2209_s8 = sld [smem:[#allocation9 + $0x24]] }
  0x69   :  { %v161_v28 = vmul.f32 %v160_v23, %v2073_v1  ;;  %v162_v29 = vmul.f32 %v160_v23, %v2075_v2  ;;  %v166_v30 = vstv %s2091_s18  ;;  %v172_v31 = vstv %s2093_s19  ;;  %s2211_s9 = sld [smem:[#allocation9 + $0x30]]  ;;  %s2227_s0 = sld [smem:[#allocation9 + $0x3c]] }
  0x6a   :  { %v167_v32 = vmul.f32 %v166_v30, %v2073_v1  ;;  %v168_v33 = vmul.f32 %v166_v30, %v2075_v2  ;;  %v173_v34 = vmul.f32 %v172_v31, %v2073_v1  ;;  %v174_v35 = vmul.f32 %v172_v31, %v2075_v2  ;;  %s2229_s2 = sld [smem:[#allocation9 + $0x48]]  ;;  %s2238_s4 = sld [smem:[#allocation9 + $0x54]] }
  0x6b   :  { %v163_v36 = vadd.f32 %v161_v28, %v145_v17  ;;  %v164_v37 = vadd.f32 %v162_v29, %v146_v18  ;;  %v178_v38 = vstv %s2101_s20  ;;  %v184_v39 = vstv %s2111_s21  ;;  %s2244_s3 = sld [smem:[#allocation9 + $0x1]]  ;;  %s2250_s5 = sld [smem:[#allocation9 + $0xd]] }
  0x6c   :  { %v169_v40 = vadd.f32 %v167_v32, %v149_v19  ;;  %v170_v41 = vadd.f32 %v168_v33, %v150_v20  ;;  %v175_v42 = vadd.f32 %v173_v34, %v153_v24  ;;  %v176_v43 = vadd.f32 %v174_v35, %v154_v25  ;;  %s2252_s10 = sld [smem:[#allocation9 + $0x19]]  ;;  %s2278_s11 = sld [smem:[#allocation9 + $0x25]] }
  0x6d   :  { %v179_v44 = vmul.f32 %v178_v38, %v2073_v1  ;;  %v180_v45 = vmul.f32 %v178_v38, %v2075_v2  ;;  %v185_v46 = vmul.f32 %v184_v39, %v135_v11  ;;  %v186_v47 = vmul.f32 %v184_v39, %v142_v16  ;;  %s2296_s12 = sld [smem:[#allocation9 + $0x31]]  ;;  %s2306_s13 = sld [smem:[#allocation9 + $0x3d]] }
  0x6e   :  { %v190_v48 = vstv %s2117_s1  ;;  %v196_v49 = vstv %s2119_s22  ;;  %v202_v50 = vstv %s2123_s23  ;;  %v208_v51 = vstv %s2125_s24  ;;  %s2308_s6 = sld [smem:[#allocation9 + $0x49]]  ;;  %s2314_s14 = sld [smem:[#allocation9 + $0x55]] }
  0x6f   :  { %v181_v52 = vadd.f32 %v179_v44, %v157_v26  ;;  %v182_v53 = vadd.f32 %v180_v45, %v158_v27  ;;  %v187_v54 = vadd.f32 %v185_v46, %v163_v36  ;;  %v188_v55 = vadd.f32 %v186_v47, %v164_v37  ;;  %s2316_s15 = sld [smem:[#allocation9 + $0x2]]  ;;  %s2336_s16 = sld [smem:[#allocation9 + $0xe]] }
  0x70   :  { %v191_v56 = vmul.f32 %v190_v48, %v135_v11  ;;  %v192_v57 = vmul.f32 %v190_v48, %v142_v16  ;;  %v197_v58 = vmul.f32 %v196_v49, %v135_v11  ;;  %v198_v59 = vmul.f32 %v196_v49, %v142_v16  ;;  %s2338_s17 = sld [smem:[#allocation9 + $0x1a]]  ;;  %s2340_s18 = sld [smem:[#allocation9 + $0x26]] }
  0x71   :  { %v203_v60 = vmul.f32 %v202_v50, %v135_v11  ;;  %v204_v61 = vmul.f32 %v202_v50, %v142_v16  ;;  %v209_v62 = vadd.f32 %v208_v51, %v187_v54  ;;  %v210_v63 = vadd.f32 %v208_v51, %v188_v55  ;;  %s2342_s19 = sld [smem:[#allocation9 + $0x32]]  ;;  %s2356_s20 = sld [smem:[#allocation9 + $0x3e]] }
  0x72   :  { %v193_v0 = vadd.f32 %v191_v56, %v169_v40  ;;  %v194_v1 = vadd.f32 %v192_v57, %v170_v41  ;;  %v199_v2 = vadd.f32 %v197_v58, %v175_v42  ;;  %v200_v3 = vadd.f32 %v198_v59, %v176_v43  ;;  %s2358_s21 = sld [smem:[#allocation9 + $0x4a]]  ;;  %s2364_s1 = sld [smem:[#allocation9 + $0x56]] }
  0x73   :  { %v205_v4 = vadd.f32 %v203_v60, %v181_v52  ;;  %v206_v5 = vadd.f32 %v204_v61, %v182_v53  ;;  %v2154_v6 = vmax.f32 %v209_v62, 0.0  ;;  %v2156_v9 = vmax.f32 %v210_v63, 0.0  ;;  %s2366_s22 = sld [smem:[#allocation9 + $0x3]]  ;;  %s2376_s23 = sld [smem:[#allocation9 + $0xf]] }
  0x74   :  { %v214_v10 = vstv %s2140_s25  ;;  %v220_v12 = vstv %s2142_s26  ;;  %v226_v13 = vstv %s2144_s27  ;;  %v280_v14 = vstv %s2146_s28  ;;  %s2378_s24 = sld [smem:[#allocation9 + $0x1b]]  ;;  %s2384_s25 = sld [smem:[#allocation9 + $0x27]] }
  0x75   :  { %v215_v15 = vadd.f32 %v214_v10, %v193_v0  ;;  %v216_v17 = vadd.f32 %v214_v10, %v194_v1  ;;  %v221_v11 = vadd.f32 %v220_v12, %v199_v2  ;;  %v222_v16 = vadd.f32 %v220_v12, %v200_v3  ;;  %s2386_s26 = sld [smem:[#allocation9 + $0x33]]  ;;  %s2396_s27 = sld [smem:[#allocation9 + $0x3f]] }
  0x76   :  { %v227_v18 = vadd.f32 %v226_v13, %v205_v4  ;;  %v228_v19 = vadd.f32 %v226_v13, %v206_v5  ;;  %v231_v20 = vrot.slane %v2154_v6, 7  ;;  %v235_v21 = vrot.slane %v2156_v9, 7  ;;  %s2398_s28 = sld [smem:[#allocation9 + $0x4b]] }
  0x77   :  { %v2166_v22 = vmax.f32 %v215_v15, 0.0  ;;  %v2168_v23 = vmax.f32 %v216_v17, 0.0  ;;  %v2170_v24 = vmax.f32 %v221_v11, 0.0  ;;  %v2172_v25 = vmax.f32 %v222_v16, 0.0 }
  0x78   :  { %v2176_v26 = vmax.f32 %v227_v18, 0.0  ;;  %v2178_v27 = vmax.f32 %v228_v19, 0.0  ;;  %v2182_v28 = vsel %vm123_vm1, %v231_v20, %v235_v21  ;;  %v243_v29 = vsel %vm123_vm1, %v235_v21, %v231_v20 }
  0x79   :  { %v232_v30 = vrot.slane %v2166_v22, 7  ;;  %v233_v31 = vrot.slane %v2170_v24, 7  ;;  %v236_v32 = vrot.slane %v2168_v23, 7  ;;  %v237_v33 = vrot.slane %v2172_v25, 7 }
  0x7a   :  { %v234_v34 = vrot.slane %v2176_v26, 7  ;;  %v238_v35 = vrot.slane %v2178_v27, 7  ;;  %v2194_v36 = vsel %vm115_vm0, 0.0, %v243_v29  ;;  %v255_v37 = vrot.slane %v2154_v6, 1 }
  0x7b   :  { %v2199_v38 = vsel %vm123_vm1, %v232_v30, %v236_v32  ;;  %v2203_v39 = vsel %vm123_vm1, %v233_v31, %v237_v33  ;;  %v244_v40 = vsel %vm123_vm1, %v236_v32, %v232_v30  ;;  %v245_v41 = vsel %vm123_vm1, %v237_v33, %v233_v31 }
  0x7c   :  { %v2215_v42 = vsel %vm123_vm1, %v234_v34, %v238_v35  ;;  %v246_v43 = vsel %vm123_vm1, %v238_v35, %v234_v34  ;;  %v2221_v44 = vsel %vm115_vm0, 0.0, %v244_v40  ;;  %v2225_v45 = vsel %vm115_vm0, 0.0, %v245_v41 }
  0x7d   :  { %v2233_v46 = vsel %vm115_vm0, 0.0, %v246_v43  ;;  %v256_v47 = vrot.slane %v2166_v22, 1  ;;  %v257_v48 = vrot.slane %v2170_v24, 1  ;;  %v258_v49 = vrot.slane %v2176_v26, 1 }
  0x7e   :  { %v259_v50 = vrot.slane %v2156_v9, 1  ;;  %v260_v51 = vrot.slane %v2168_v23, 1  ;;  %v261_v52 = vrot.slane %v2172_v25, 1  ;;  %v262_v53 = vrot.slane %v2178_v27, 1 }
  0x7f   :  { %v281_v54 = vmul.f32 %v280_v14, %v2194_v36  ;;  %v282_v55 = vmul.f32 %v280_v14, %v2182_v28  ;;  %v284_v56 = vstv %s2164_s29  ;;  %v288_v57 = vstv %s2174_s30  ;;  %s2404_s29 = sld [smem:[#allocation9 + $0x57]]  ;;  %s2406_s30 = sld [smem:[#allocation9 + $0x4]] }
  0x80   :  { %v2256_v58 = vsel %vm134_vm2, %v255_v37, %v259_v50  ;;  %v2260_v59 = vsel %vm134_vm2, %v256_v47, %v260_v51  ;;  %v2264_v60 = vsel %vm134_vm2, %v257_v48, %v261_v52  ;;  %v2268_v61 = vsel %vm134_vm2, %v258_v49, %v262_v53 }
  0x81   :  { %v267_v62 = vsel %vm134_vm2, %v259_v50, %v255_v37  ;;  %v268_v63 = vsel %vm134_vm2, %v260_v51, %v256_v47  ;;  %v269_v0 = vsel %vm134_vm2, %v261_v52, %v257_v48  ;;  %v270_v1 = vsel %vm134_vm2, %v262_v53, %v258_v49 }
  0x82   :  { %v2282_v2 = vsel %vm118_vm3, 0.0, %v267_v62  ;;  %v2286_v3 = vsel %vm118_vm3, 0.0, %v268_v63  ;;  %v2290_v4 = vsel %vm118_vm3, 0.0, %v269_v0  ;;  %v2294_v5 = vsel %vm118_vm3, 0.0, %v270_v1 }
  0x83   :  { %v285_v10 = vmul.f32 %v284_v56, %v2194_v36  ;;  %v286_v12 = vmul.f32 %v284_v56, %v2182_v28  ;;  %v289_v13 = vmul.f32 %v288_v57, %v2194_v36  ;;  %v290_v14 = vmul.f32 %v288_v57, %v2182_v28 }
  0x84   :  { %v292_v15 = vstv %s2209_s8  ;;  %v296_v17 = vstv %s2211_s9  ;;  %v300_v11 = vstv %s2227_s0  ;;  %v304_v16 = vstv %s2229_s2  ;;  %s2416_s8 = sld [smem:[#allocation9 + $0x10]]  ;;  %s2418_s9 = sld [smem:[#allocation9 + $0x1c]] }
  0x85   :  { %v293_v18 = vmul.f32 %v292_v15, %v2194_v36  ;;  %v294_v19 = vmul.f32 %v292_v15, %v2182_v28  ;;  %v297_v20 = vmul.f32 %v296_v17, %v2194_v36  ;;  %v298_v21 = vmul.f32 %v296_v17, %v2182_v28  ;;  %s2424_s0 = sld [smem:[#allocation9 + $0x28]]  ;;  %s2426_s2 = sld [smem:[#allocation9 + $0x34]] }
  0x86   :  { %v301_v29 = vmul.f32 %v300_v11, %v2194_v36  ;;  %v302_v30 = vmul.f32 %v300_v11, %v2182_v28  ;;  %v305_v31 = vmul.f32 %v304_v16, %v2194_v36  ;;  %v306_v32 = vmul.f32 %v304_v16, %v2182_v28 }
  0x87   :  { %v308_v33 = vstv %s2238_s4  ;;  %v312_v34 = vstv %s2244_s3  ;;  %v318_v35 = vstv %s2250_s5  ;;  %v324_v37 = vstv %s2252_s10  ;;  %s2436_s4 = sld [smem:[#allocation9 + $0x40]]  ;;  %s2438_s3 = sld [smem:[#allocation9 + $0x4c]] }
  0x88   :  { %v309_v40 = vmul.f32 %v308_v33, %v2194_v36  ;;  %v310_v41 = vmul.f32 %v308_v33, %v2182_v28  ;;  %v313_v43 = vmul.f32 %v312_v34, %v2154_v6  ;;  %v314_v47 = vmul.f32 %v312_v34, %v2156_v9  ;;  %s2444_s5 = sld [smem:[#allocation9 + $0x58]]  ;;  %s2446_s10 = sld [smem:[#allocation9 + $0x5]] }
  0x89   :  { %v319_v48 = vmul.f32 %v318_v35, %v2154_v6  ;;  %v320_v49 = vmul.f32 %v318_v35, %v2156_v9  ;;  %v325_v50 = vmul.f32 %v324_v37, %v2154_v6  ;;  %v326_v51 = vmul.f32 %v324_v37, %v2156_v9 }
  0x8a   :  { %v315_v52 = vadd.f32 %v313_v43, %v281_v54  ;;  %v316_v53 = vadd.f32 %v314_v47, %v282_v55  ;;  %v330_v56 = vstv %s2278_s11  ;;  %v336_v36 = vstv %s2296_s12  ;;  %s2456_s11 = sld [smem:[#allocation9 + $0x11]]  ;;  %s2458_s12 = sld [smem:[#allocation9 + $0x1d]] }
  0x8b   :  { %v321_v28 = vadd.f32 %v319_v48, %v285_v10  ;;  %v322_v57 = vadd.f32 %v320_v49, %v286_v12  ;;  %v327_v62 = vadd.f32 %v325_v50, %v289_v13  ;;  %v328_v63 = vadd.f32 %v326_v51, %v290_v14 }
  0x8c   :  { %v331_v54 = vmul.f32 %v330_v56, %v2154_v6  ;;  %v332_v55 = vmul.f32 %v330_v56, %v2156_v9  ;;  %v337_v0 = vmul.f32 %v336_v36, %v2154_v6  ;;  %v338_v1 = vmul.f32 %v336_v36, %v2156_v9 }
  0x8d   :  { %v342_v15 = vstv %s2306_s13  ;;  %v348_v17 = vstv %s2308_s6  ;;  %v354_v11 = vstv %s2314_s14  ;;  %v360_v16 = vstv %s2316_s15  ;;  %s2464_s13 = sld [smem:[#allocation9 + $0x29]]  ;;  %s2466_s6 = sld [smem:[#allocation9 + $0x35]] }
  0x8e   :  { %v333_v10 = vadd.f32 %v331_v54, %v293_v18  ;;  %v334_v12 = vadd.f32 %v332_v55, %v294_v19  ;;  %v339_v13 = vadd.f32 %v337_v0, %v297_v20  ;;  %v340_v14 = vadd.f32 %v338_v1, %v298_v21  ;;  %s2476_s14 = sld [smem:[#allocation9 + $0x41]]  ;;  %s2478_s15 = sld [smem:[#allocation9 + $0x4d]] }
  0x8f   :  { %v343_v33 = vmul.f32 %v342_v15, %v2154_v6  ;;  %v344_v34 = vmul.f32 %v342_v15, %v2156_v9  ;;  %v349_v35 = vmul.f32 %v348_v17, %v2154_v6  ;;  %v350_v37 = vmul.f32 %v348_v17, %v2156_v9 }
  0x90   :  { %v355_v43 = vmul.f32 %v354_v11, %v2154_v6  ;;  %v356_v18 = vmul.f32 %v354_v11, %v2156_v9  ;;  %v361_v19 = vmul.f32 %v360_v16, %v2256_v58  ;;  %v362_v20 = vmul.f32 %v360_v16, %v2282_v2 }
  0x91   :  { %v345_v21 = vadd.f32 %v343_v33, %v301_v29  ;;  %v346_v47 = vadd.f32 %v344_v34, %v302_v30  ;;  %v351_v48 = vadd.f32 %v349_v35, %v305_v31  ;;  %v352_v49 = vadd.f32 %v350_v37, %v306_v32 }
  0x92   :  { %v357_v50 = vadd.f32 %v355_v43, %v309_v40  ;;  %v358_v51 = vadd.f32 %v356_v18, %v310_v41  ;;  %v363_v56 = vadd.f32 %v361_v19, %v315_v52  ;;  %v364_v6 = vadd.f32 %v362_v20, %v316_v53 }
  0x93   :  { %v366_v36 = vstv %s2336_s16  ;;  %v372_v54 = vstv %s2338_s17  ;;  %v378_v9 = vstv %s2340_s18  ;;  %v384_v55 = vstv %s2342_s19  ;;  %s2484_s16 = sld [smem:[#allocation9 + $0x59]]  ;;  %s2486_s17 = sld [smem:[#allocation9 + $0x6]] }
  0x94   :  { %v367_v0 = vmul.f32 %v366_v36, %v2256_v58  ;;  %v368_v1 = vmul.f32 %v366_v36, %v2282_v2  ;;  %v373_v15 = vmul.f32 %v372_v54, %v2256_v58  ;;  %v374_v17 = vmul.f32 %v372_v54, %v2282_v2  ;;  %s2496_s18 = sld [smem:[#allocation9 + $0x12]]  ;;  %s2498_s19 = sld [smem:[#allocation9 + $0x1e]] }
  0x95   :  { %v379_v29 = vmul.f32 %v378_v9, %v2256_v58  ;;  %v380_v30 = vmul.f32 %v378_v9, %v2282_v2  ;;  %v385_v31 = vmul.f32 %v384_v55, %v2256_v58  ;;  %v386_v32 = vmul.f32 %v384_v55, %v2282_v2 }
  0x96   :  { %v369_v40 = vadd.f32 %v367_v0, %v321_v28  ;;  %v370_v41 = vadd.f32 %v368_v1, %v322_v57  ;;  %v375_v52 = vadd.f32 %v373_v15, %v327_v62  ;;  %v376_v53 = vadd.f32 %v374_v17, %v328_v63 }
  0x97   :  { %v381_v11 = vadd.f32 %v379_v29, %v333_v10  ;;  %v382_v16 = vadd.f32 %v380_v30, %v334_v12  ;;  %v387_v33 = vadd.f32 %v385_v31, %v339_v13  ;;  %v388_v34 = vadd.f32 %v386_v32, %v340_v14 }
  0x98   :  { %v390_v35 = vstv %s2356_s20  ;;  %v396_v37 = vstv %s2358_s21  ;;  %v402_v43 = vstv %s2364_s1  ;;  %v408_v18 = vstv %s2366_s22  ;;  %s2504_s20 = sld [smem:[#allocation9 + $0x2a]]  ;;  %s2506_s21 = sld [smem:[#allocation9 + $0x36]] }
  0x99   :  { %v391_v19 = vmul.f32 %v390_v35, %v2256_v58  ;;  %v392_v20 = vmul.f32 %v390_v35, %v2282_v2  ;;  %v397_v36 = vmul.f32 %v396_v37, %v2256_v58  ;;  %v398_v54 = vmul.f32 %v396_v37, %v2282_v2  ;;  %s2516_s1 = sld [smem:[#allocation9 + $0x42]]  ;;  %s2518_s22 = sld [smem:[#allocation9 + $0x4e]] }
  0x9a   :  { %v403_v28 = vmul.f32 %v402_v43, %v2256_v58  ;;  %v404_v57 = vmul.f32 %v402_v43, %v2282_v2  ;;  %v409_v62 = vmul.f32 %v408_v18, %v2221_v44  ;;  %v410_v63 = vmul.f32 %v408_v18, %v2199_v38 }
  0x9b   :  { %v393_v10 = vadd.f32 %v391_v19, %v345_v21  ;;  %v394_v12 = vadd.f32 %v392_v20, %v346_v47  ;;  %v399_v13 = vadd.f32 %v397_v36, %v351_v48  ;;  %v400_v14 = vadd.f32 %v398_v54, %v352_v49 }
  0x9c   :  { %v405_v9 = vadd.f32 %v403_v28, %v357_v50  ;;  %v406_v55 = vadd.f32 %v404_v57, %v358_v51  ;;  %v411_v0 = vadd.f32 %v409_v62, %v363_v56  ;;  %v412_v58 = vadd.f32 %v410_v63, %v364_v6 }
  0x9d   :  { %v414_v1 = vstv %s2376_s23  ;;  %v420_v15 = vstv %s2378_s24  ;;  %v426_v2 = vstv %s2384_s25  ;;  %v432_v17 = vstv %s2386_s26  ;;  %s2524_s23 = sld [smem:[#allocation9 + $0x5a]]  ;;  %s2526_s24 = sld [smem:[#allocation9 + $0x7]] }
  0x9e   :  { %v415_v29 = vmul.f32 %v414_v1, %v2221_v44  ;;  %v416_v30 = vmul.f32 %v414_v1, %v2199_v38  ;;  %v421_v31 = vmul.f32 %v420_v15, %v2221_v44  ;;  %v422_v32 = vmul.f32 %v420_v15, %v2199_v38  ;;  %s2536_s25 = sld [smem:[#allocation9 + $0x13]]  ;;  %s2538_s26 = sld [smem:[#allocation9 + $0x1f]] }
  0x9f   :  { %v427_v21 = vmul.f32 %v426_v2, %v2221_v44  ;;  %v428_v47 = vmul.f32 %v426_v2, %v2199_v38  ;;  %v433_v48 = vmul.f32 %v432_v17, %v2221_v44  ;;  %v434_v49 = vmul.f32 %v432_v17, %v2199_v38 }
  0xa0   :  { %v417_v50 = vadd.f32 %v415_v29, %v369_v40  ;;  %v418_v51 = vadd.f32 %v416_v30, %v370_v41  ;;  %v423_v56 = vadd.f32 %v421_v31, %v375_v52  ;;  %v424_v6 = vadd.f32 %v422_v32, %v376_v53 }
  0xa1   :  { %v429_v35 = vadd.f32 %v427_v21, %v381_v11  ;;  %v430_v37 = vadd.f32 %v428_v47, %v382_v16  ;;  %v435_v43 = vadd.f32 %v433_v48, %v387_v33  ;;  %v436_v18 = vadd.f32 %v434_v49, %v388_v34 }
  0xa2   :  { %v438_v19 = vstv %s2396_s27  ;;  %v444_v20 = vstv %s2398_s28  ;;  %v450_v36 = vstv %s2404_s29  ;;  %v456_v54 = vstv %s2406_s30  ;;  %s2544_s27 = sld [smem:[#allocation9 + $0x2b]]  ;;  %s2546_s28 = sld [smem:[#allocation9 + $0x37]] }
  0xa3   :  { %v439_v28 = vmul.f32 %v438_v19, %v2221_v44  ;;  %v440_v57 = vmul.f32 %v438_v19, %v2199_v38  ;;  %v445_v62 = vmul.f32 %v444_v20, %v2221_v44  ;;  %v446_v63 = vmul.f32 %v444_v20, %v2199_v38  ;;  %s2556_s29 = sld [smem:[#allocation9 + $0x43]]  ;;  %s2558_s30 = sld [smem:[#allocation9 + $0x4f]] }
  0xa4   :  { %v451_v40 = vmul.f32 %v450_v36, %v2221_v44  ;;  %v452_v41 = vmul.f32 %v450_v36, %v2199_v38  ;;  %v457_v52 = vmul.f32 %v456_v54, %v2166_v22  ;;  %v458_v53 = vmul.f32 %v456_v54, %v2168_v23 }
  0xa5   :  { %v441_v11 = vadd.f32 %v439_v28, %v393_v10  ;;  %v442_v16 = vadd.f32 %v440_v57, %v394_v12  ;;  %v447_v33 = vadd.f32 %v445_v62, %v399_v13  ;;  %v448_v34 = vadd.f32 %v446_v63, %v400_v14 }
  0xa6   :  { %v453_v1 = vadd.f32 %v451_v40, %v405_v9  ;;  %v454_v15 = vadd.f32 %v452_v41, %v406_v55  ;;  %v459_v2 = vadd.f32 %v457_v52, %v411_v0  ;;  %v460_v44 = vadd.f32 %v458_v53, %v412_v58 }
  0xa7   :  { %v462_v17 = vstv %s2416_s8  ;;  %v468_v29 = vstv %s2418_s9  ;;  %v474_v38 = vstv %s2424_s0  ;;  %v480_v30 = vstv %s2426_s2  ;;  %s2564_s8 = sld [smem:[#allocation9 + $0x5b]]  ;;  %s2566_s9 = sld [smem:[#allocation9 + $0x8]] }
  0xa8   :  { %v463_v31 = vmul.f32 %v462_v17, %v2166_v22  ;;  %v464_v32 = vmul.f32 %v462_v17, %v2168_v23  ;;  %v469_v21 = vmul.f32 %v468_v29, %v2166_v22  ;;  %v470_v47 = vmul.f32 %v468_v29, %v2168_v23  ;;  %s2576_s0 = sld [smem:[#allocation9 + $0x14]]  ;;  %s2578_s2 = sld [smem:[#allocation9 + $0x20]] }
  0xa9   :  { %v475_v10 = vmul.f32 %v474_v38, %v2166_v22  ;;  %v476_v12 = vmul.f32 %v474_v38, %v2168_v23  ;;  %v481_v13 = vmul.f32 %v480_v30, %v2166_v22  ;;  %v482_v14 = vmul.f32 %v480_v30, %v2168_v23 }
  0xaa   :  { %v465_v9 = vadd.f32 %v463_v31, %v417_v50  ;;  %v466_v55 = vadd.f32 %v464_v32, %v418_v51  ;;  %v471_v0 = vadd.f32 %v469_v21, %v423_v56  ;;  %v472_v58 = vadd.f32 %v470_v47, %v424_v6 }
  0xab   :  { %v477_v48 = vadd.f32 %v475_v10, %v429_v35  ;;  %v478_v49 = vadd.f32 %v476_v12, %v430_v37  ;;  %v483_v19 = vadd.f32 %v481_v13, %v435_v43  ;;  %v484_v20 = vadd.f32 %v482_v14, %v436_v18 }
  0xac   :  { %v486_v36 = vstv %s2436_s4  ;;  %v492_v54 = vstv %s2438_s3  ;;  %v498_v28 = vstv %s2444_s5  ;;  %v504_v57 = vstv %s2446_s10  ;;  %s2584_s4 = sld [smem:[#allocation9 + $0x2c]]  ;;  %s2586_s3 = sld [smem:[#allocation9 + $0x38]] }
  0xad   :  { %v487_v62 = vmul.f32 %v486_v36, %v2166_v22  ;;  %v488_v63 = vmul.f32 %v486_v36, %v2168_v23  ;;  %v493_v40 = vmul.f32 %v492_v54, %v2166_v22  ;;  %v494_v41 = vmul.f32 %v492_v54, %v2168_v23  ;;  %s2596_s5 = sld [smem:[#allocation9 + $0x44]]  ;;  %s2598_s10 = sld [smem:[#allocation9 + $0x50]] }
  0xae   :  { %v499_v50 = vmul.f32 %v498_v28, %v2166_v22  ;;  %v500_v51 = vmul.f32 %v498_v28, %v2168_v23  ;;  %v505_v56 = vmul.f32 %v504_v57, %v2260_v59  ;;  %v506_v6 = vmul.f32 %v504_v57, %v2286_v3 }
  0xaf   :  { %v489_v35 = vadd.f32 %v487_v62, %v441_v11  ;;  %v490_v37 = vadd.f32 %v488_v63, %v442_v16  ;;  %v495_v43 = vadd.f32 %v493_v40, %v447_v33  ;;  %v496_v18 = vadd.f32 %v494_v41, %v448_v34 }
  0xb0   :  { %v501_v52 = vadd.f32 %v499_v50, %v453_v1  ;;  %v502_v53 = vadd.f32 %v500_v51, %v454_v15  ;;  %v507_v17 = vadd.f32 %v505_v56, %v459_v2  ;;  %v508_v22 = vadd.f32 %v506_v6, %v460_v44 }
  0xb1   :  { %v510_v29 = vstv %s2456_s11  ;;  %v516_v38 = vstv %s2458_s12  ;;  %v522_v23 = vstv %s2464_s13  ;;  %v528_v30 = vstv %s2466_s6  ;;  %s2604_s11 = sld [smem:[#allocation9 + $0x5c]]  ;;  %s2606_s12 = sld [smem:[#allocation9 + $0x9]] }
  0xb2   :  { %v511_v31 = vmul.f32 %v510_v29, %v2260_v59  ;;  %v512_v32 = vmul.f32 %v510_v29, %v2286_v3  ;;  %v517_v21 = vmul.f32 %v516_v38, %v2260_v59  ;;  %v518_v47 = vmul.f32 %v516_v38, %v2286_v3  ;;  %s2616_s13 = sld [smem:[#allocation9 + $0x15]]  ;;  %s2618_s6 = sld [smem:[#allocation9 + $0x21]] }
  0xb3   :  { %v523_v11 = vmul.f32 %v522_v23, %v2260_v59  ;;  %v524_v16 = vmul.f32 %v522_v23, %v2286_v3  ;;  %v529_v33 = vmul.f32 %v528_v30, %v2260_v59  ;;  %v530_v34 = vmul.f32 %v528_v30, %v2286_v3 }
  0xb4   :  { %v513_v1 = vadd.f32 %v511_v31, %v465_v9  ;;  %v514_v15 = vadd.f32 %v512_v32, %v466_v55  ;;  %v519_v2 = vadd.f32 %v517_v21, %v471_v0  ;;  %v520_v44 = vadd.f32 %v518_v47, %v472_v58 }
  0xb5   :  { %v525_v10 = vadd.f32 %v523_v11, %v477_v48  ;;  %v526_v12 = vadd.f32 %v524_v16, %v478_v49  ;;  %v531_v13 = vadd.f32 %v529_v33, %v483_v19  ;;  %v532_v14 = vadd.f32 %v530_v34, %v484_v20 }
  0xb6   :  { %v534_v36 = vstv %s2476_s14  ;;  %v540_v54 = vstv %s2478_s15  ;;  %v546_v28 = vstv %s2484_s16  ;;  %v552_v57 = vstv %s2486_s17  ;;  %s2624_s14 = sld [smem:[#allocation9 + $0x2d]]  ;;  %s2626_s15 = sld [smem:[#allocation9 + $0x39]] }
  0xb7   :  { %v535_v62 = vmul.f32 %v534_v36, %v2260_v59  ;;  %v536_v63 = vmul.f32 %v534_v36, %v2286_v3  ;;  %v541_v40 = vmul.f32 %v540_v54, %v2260_v59  ;;  %v542_v41 = vmul.f32 %v540_v54, %v2286_v3  ;;  %s2636_s16 = sld [smem:[#allocation9 + $0x45]]  ;;  %s2638_s17 = sld [smem:[#allocation9 + $0x51]] }
  0xb8   :  { %v547_v9 = vmul.f32 %v546_v28, %v2260_v59  ;;  %v548_v55 = vmul.f32 %v546_v28, %v2286_v3  ;;  %v553_v0 = vmul.f32 %v552_v57, %v2225_v45  ;;  %v554_v58 = vmul.f32 %v552_v57, %v2203_v39 }
  0xb9   :  { %v537_v48 = vadd.f32 %v535_v62, %v489_v35  ;;  %v538_v49 = vadd.f32 %v536_v63, %v490_v37  ;;  %v543_v19 = vadd.f32 %v541_v40, %v495_v43  ;;  %v544_v20 = vadd.f32 %v542_v41, %v496_v18 }
  0xba   :  { %v549_v50 = vadd.f32 %v547_v9, %v501_v52  ;;  %v550_v51 = vadd.f32 %v548_v55, %v502_v53  ;;  %v555_v56 = vadd.f32 %v553_v0, %v507_v17  ;;  %v556_v59 = vadd.f32 %v554_v58, %v508_v22 }
  0xbb   :  { %v558_v6 = vstv %s2496_s18  ;;  %v564_v29 = vstv %s2498_s19  ;;  %v570_v3 = vstv %s2504_s20  ;;  %v576_v38 = vstv %s2506_s21  ;;  %s2644_s18 = sld [smem:[#allocation9 + $0x5d]]  ;;  %s2646_s19 = sld [smem:[#allocation9 + $0xa]] }
  0xbc   :  { %v559_v23 = vmul.f32 %v558_v6, %v2225_v45  ;;  %v560_v30 = vmul.f32 %v558_v6, %v2203_v39  ;;  %v565_v31 = vmul.f32 %v564_v29, %v2225_v45  ;;  %v566_v32 = vmul.f32 %v564_v29, %v2203_v39  ;;  %s2656_s20 = sld [smem:[#allocation9 + $0x16]]  ;;  %s2658_s21 = sld [smem:[#allocation9 + $0x22]] }
  0xbd   :  { %v571_v35 = vmul.f32 %v570_v3, %v2225_v45  ;;  %v572_v37 = vmul.f32 %v570_v3, %v2203_v39  ;;  %v577_v43 = vmul.f32 %v576_v38, %v2225_v45  ;;  %v578_v18 = vmul.f32 %v576_v38, %v2203_v39 }
  0xbe   :  { %v561_v52 = vadd.f32 %v559_v23, %v513_v1  ;;  %v562_v53 = vadd.f32 %v560_v30, %v514_v15  ;;  %v567_v17 = vadd.f32 %v565_v31, %v519_v2  ;;  %v568_v22 = vadd.f32 %v566_v32, %v520_v44 }
  0xbf   :  { %v573_v21 = vadd.f32 %v571_v35, %v525_v10  ;;  %v574_v47 = vadd.f32 %v572_v37, %v526_v12  ;;  %v579_v11 = vadd.f32 %v577_v43, %v531_v13  ;;  %v580_v16 = vadd.f32 %v578_v18, %v532_v14 }
  0xc0   :  { %v582_v33 = vstv %s2516_s1  ;;  %v588_v34 = vstv %s2518_s22  ;;  %v594_v36 = vstv %s2524_s23  ;;  %v600_v54 = vstv %s2526_s24  ;;  %s2664_s1 = sld [smem:[#allocation9 + $0x2e]]  ;;  %s2666_s22 = sld [smem:[#allocation9 + $0x3a]] }
  0xc1   :  { %v583_v28 = vmul.f32 %v582_v33, %v2225_v45  ;;  %v584_v57 = vmul.f32 %v582_v33, %v2203_v39  ;;  %v589_v62 = vmul.f32 %v588_v34, %v2225_v45  ;;  %v590_v63 = vmul.f32 %v588_v34, %v2203_v39  ;;  %s2676_s23 = sld [smem:[#allocation9 + $0x46]]  ;;  %s2678_s24 = sld [smem:[#allocation9 + $0x52]] }
  0xc2   :  { %v595_v1 = vmul.f32 %v594_v36, %v2225_v45  ;;  %v596_v15 = vmul.f32 %v594_v36, %v2203_v39  ;;  %v601_v2 = vmul.f32 %v600_v54, %v2170_v24  ;;  %v602_v44 = vmul.f32 %v600_v54, %v2172_v25 }
  0xc3   :  { %v585_v10 = vadd.f32 %v583_v28, %v537_v48  ;;  %v586_v12 = vadd.f32 %v584_v57, %v538_v49  ;;  %v591_v13 = vadd.f32 %v589_v62, %v543_v19  ;;  %v592_v14 = vadd.f32 %v590_v63, %v544_v20 }
  0xc4   :  { %v597_v40 = vadd.f32 %v595_v1, %v549_v50  ;;  %v598_v41 = vadd.f32 %v596_v15, %v550_v51  ;;  %v603_v9 = vadd.f32 %v601_v2, %v555_v56  ;;  %v604_v45 = vadd.f32 %v602_v44, %v556_v59 }
  0xc5   :  { %v606_v55 = vstv %s2536_s25  ;;  %v612_v0 = vstv %s2538_s26  ;;  %v618_v39 = vstv %s2544_s27  ;;  %v624_v58 = vstv %s2546_s28  ;;  %s2684_s25 = sld [smem:[#allocation9 + $0x5e]]  ;;  %s2686_s26 = sld [smem:[#allocation9 + $0xb]] }
  0xc6   :  { %v607_v6 = vmul.f32 %v606_v55, %v2170_v24  ;;  %v608_v29 = vmul.f32 %v606_v55, %v2172_v25  ;;  %v613_v3 = vmul.f32 %v612_v0, %v2170_v24  ;;  %v614_v38 = vmul.f32 %v612_v0, %v2172_v25  ;;  %s2696_s27 = sld [smem:[#allocation9 + $0x17]]  ;;  %s2698_s28 = sld [smem:[#allocation9 + $0x23]] }
  0xc7   :  { %v619_v48 = vmul.f32 %v618_v39, %v2170_v24  ;;  %v620_v49 = vmul.f32 %v618_v39, %v2172_v25  ;;  %v625_v19 = vmul.f32 %v624_v58, %v2170_v24  ;;  %v626_v20 = vmul.f32 %v624_v58, %v2172_v25 }
  0xc8   :  { %v609_v50 = vadd.f32 %v607_v6, %v561_v52  ;;  %v610_v51 = vadd.f32 %v608_v29, %v562_v53  ;;  %v615_v56 = vadd.f32 %v613_v3, %v567_v17  ;;  %v616_v59 = vadd.f32 %v614_v38, %v568_v22 }
  0xc9   :  { %v621_v23 = vadd.f32 %v619_v48, %v573_v21  ;;  %v622_v30 = vadd.f32 %v620_v49, %v574_v47  ;;  %v627_v31 = vadd.f32 %v625_v19, %v579_v11  ;;  %v628_v32 = vadd.f32 %v626_v20, %v580_v16 }
  0xca   :  { %v630_v35 = vstv %s2556_s29  ;;  %v636_v37 = vstv %s2558_s30  ;;  %v642_v43 = vstv %s2564_s8  ;;  %v648_v18 = vstv %s2566_s9  ;;  %s2704_s29 = sld [smem:[#allocation9 + $0x2f]]  ;;  %s2706_s30 = sld [smem:[#allocation9 + $0x3b]] }
  0xcb   :  { %v631_v33 = vmul.f32 %v630_v35, %v2170_v24  ;;  %v632_v34 = vmul.f32 %v630_v35, %v2172_v25  ;;  %v637_v36 = vmul.f32 %v636_v37, %v2170_v24  ;;  %v638_v54 = vmul.f32 %v636_v37, %v2172_v25  ;;  %s2716_s8 = sld [smem:[#allocation9 + $0x47]]  ;;  %s2718_s9 = sld [smem:[#allocation9 + $0x53]] }
  0xcc   :  { %v643_v52 = vmul.f32 %v642_v43, %v2170_v24  ;;  %v644_v53 = vmul.f32 %v642_v43, %v2172_v25  ;;  %v649_v17 = vmul.f32 %v648_v18, %v2264_v60  ;;  %v650_v22 = vmul.f32 %v648_v18, %v2290_v4 }
  0xcd   :  { %v633_v21 = vadd.f32 %v631_v33, %v585_v10  ;;  %v634_v47 = vadd.f32 %v632_v34, %v586_v12  ;;  %v639_v11 = vadd.f32 %v637_v36, %v591_v13  ;;  %v640_v16 = vadd.f32 %v638_v54, %v592_v14 }
  0xce   :  { %v645_v28 = vadd.f32 %v643_v52, %v597_v40  ;;  %v646_v57 = vadd.f32 %v644_v53, %v598_v41  ;;  %v651_v62 = vadd.f32 %v649_v17, %v603_v9  ;;  %v652_v24 = vadd.f32 %v650_v22, %v604_v45 }
  0xcf   :  { %v654_v63 = vstv %s2576_s0  ;;  %v660_v1 = vstv %s2578_s2  ;;  %v666_v25 = vstv %s2584_s4  ;;  %v672_v15 = vstv %s2586_s3  ;;  %s2724_s0 = sld [smem:[#allocation9 + $0x5f]]  ;;  %s2726_s2 = sld [smem:[#allocation10]] }
  0xd0   :  { %v655_v2 = vmul.f32 %v654_v63, %v2264_v60  ;;  %v656_v44 = vmul.f32 %v654_v63, %v2290_v4  ;;  %v661_v55 = vmul.f32 %v660_v1, %v2264_v60  ;;  %v662_v0 = vmul.f32 %v660_v1, %v2290_v4  ;;  %s2736_s4 = sld [smem:[#allocation10 + $0x1]]  ;;  %s2738_s3 = sld [smem:[#allocation10 + $0x2]] }
  0xd1   :  { %v667_v10 = vmul.f32 %v666_v25, %v2264_v60  ;;  %v668_v12 = vmul.f32 %v666_v25, %v2290_v4  ;;  %v673_v13 = vmul.f32 %v672_v15, %v2264_v60  ;;  %v674_v14 = vmul.f32 %v672_v15, %v2290_v4 }
  0xd2   :  { %v657_v40 = vadd.f32 %v655_v2, %v609_v50  ;;  %v658_v41 = vadd.f32 %v656_v44, %v610_v51  ;;  %v663_v9 = vadd.f32 %v661_v55, %v615_v56  ;;  %v664_v45 = vadd.f32 %v662_v0, %v616_v59 }
  0xd3   :  { %v669_v39 = vadd.f32 %v667_v10, %v621_v23  ;;  %v670_v58 = vadd.f32 %v668_v12, %v622_v30  ;;  %v675_v6 = vadd.f32 %v673_v13, %v627_v31  ;;  %v676_v29 = vadd.f32 %v674_v14, %v628_v32 }
  0xd4   :  { %v678_v3 = vstv %s2596_s5  ;;  %v684_v38 = vstv %s2598_s10  ;;  %v690_v48 = vstv %s2604_s11  ;;  %v696_v49 = vstv %s2606_s12  ;;  %s2744_s5 = sld [smem:[#allocation10 + $0x3]]  ;;  %s2746_s10 = sld [smem:[#allocation10 + $0x4]] }
  0xd5   :  { %v679_v19 = vmul.f32 %v678_v3, %v2264_v60  ;;  %v680_v20 = vmul.f32 %v678_v3, %v2290_v4  ;;  %v685_v35 = vmul.f32 %v684_v38, %v2264_v60  ;;  %v686_v37 = vmul.f32 %v684_v38, %v2290_v4  ;;  %s2756_s11 = sld [smem:[#allocation10 + $0x5]]  ;;  %s2760_s12 = sld [smem:[#allocation10 + $0x6]] }
  0xd6   :  { %v691_v50 = vmul.f32 %v690_v48, %v2264_v60  ;;  %v692_v51 = vmul.f32 %v690_v48, %v2290_v4  ;;  %v697_v56 = vmul.f32 %v696_v49, %v2233_v46  ;;  %v698_v59 = vmul.f32 %v696_v49, %v2215_v42 }
  0xd7   :  { %v681_v23 = vadd.f32 %v679_v19, %v633_v21  ;;  %v682_v30 = vadd.f32 %v680_v20, %v634_v47  ;;  %v687_v31 = vadd.f32 %v685_v35, %v639_v11  ;;  %v688_v32 = vadd.f32 %v686_v37, %v640_v16 }
  0xd8   :  { %v693_v43 = vadd.f32 %v691_v50, %v645_v28  ;;  %v694_v18 = vadd.f32 %v692_v51, %v646_v57  ;;  %v699_v33 = vadd.f32 %v697_v56, %v651_v62  ;;  %v700_v60 = vadd.f32 %v698_v59, %v652_v24 }
  0xd9   :  { %v702_v34 = vstv %s2616_s13  ;;  %v708_v36 = vstv %s2618_s6  ;;  %v714_v4 = vstv %s2624_s14  ;;  %v720_v54 = vstv %s2626_s15  ;;  %s2762_s13 = sld [smem:[#allocation10 + $0x7]]  ;;  %s2900_s6 = sld [smem:[#allocation12]] }
  0xda   :  { %v703_v52 = vmul.f32 %v702_v34, %v2233_v46  ;;  %v704_v53 = vmul.f32 %v702_v34, %v2215_v42  ;;  %v709_v17 = vmul.f32 %v708_v36, %v2233_v46  ;;  %v710_v22 = vmul.f32 %v708_v36, %v2215_v42  ;;  %s2906_s14 = sld [smem:[#allocation12 + $0x18]] }
  0xdb   :  { %v715_v21 = vmul.f32 %v714_v4, %v2233_v46  ;;  %v716_v47 = vmul.f32 %v714_v4, %v2215_v42  ;;  %v721_v11 = vmul.f32 %v720_v54, %v2233_v46  ;;  %v722_v16 = vmul.f32 %v720_v54, %v2215_v42  ;;  %s2912_s15 = sld [smem:[#allocation12 + $0x30]] }
  0xdc   :  { %v705_v28 = vadd.f32 %v703_v52, %v657_v40  ;;  %v706_v57 = vadd.f32 %v704_v53, %v658_v41  ;;  %v711_v62 = vadd.f32 %v709_v17, %v663_v9  ;;  %v712_v24 = vadd.f32 %v710_v22, %v664_v45 }
  0xdd   :  { %v717_v63 = vadd.f32 %v715_v21, %v669_v39  ;;  %v718_v1 = vadd.f32 %v716_v47, %v670_v58  ;;  %v723_v25 = vadd.f32 %v721_v11, %v675_v6  ;;  %v724_v15 = vadd.f32 %v722_v16, %v676_v29 }
  0xde   :  { %v726_v2 = vstv %s2636_s16  ;;  %v732_v44 = vstv %s2638_s17  ;;  %v738_v55 = vstv %s2644_s18  ;;  %v744_v0 = vstv %s2646_s19  ;;  %s2918_s16 = sld [smem:[#allocation12 + $0x48]]  ;;  %s2927_s17 = sld [smem:[#allocation12 + $0x1]] }
  0xdf   :  { %v727_v10 = vmul.f32 %v726_v2, %v2233_v46  ;;  %v728_v12 = vmul.f32 %v726_v2, %v2215_v42  ;;  %v733_v13 = vmul.f32 %v732_v44, %v2233_v46  ;;  %v734_v14 = vmul.f32 %v732_v44, %v2215_v42  ;;  %s2945_s18 = sld [smem:[#allocation12 + $0x19]] }
  0xe0   :  { %v739_v40 = vmul.f32 %v738_v55, %v2233_v46  ;;  %v740_v41 = vmul.f32 %v738_v55, %v2215_v42  ;;  %v745_v9 = vmul.f32 %v744_v0, %v2176_v26  ;;  %v746_v45 = vmul.f32 %v744_v0, %v2178_v27  ;;  %s2947_s19 = sld [smem:[#allocation12 + $0x31]] }
  0xe1   :  { %v729_v39 = vadd.f32 %v727_v10, %v681_v23  ;;  %v730_v58 = vadd.f32 %v728_v12, %v682_v30  ;;  %v735_v6 = vadd.f32 %v733_v13, %v687_v31  ;;  %v736_v29 = vadd.f32 %v734_v14, %v688_v32 }
  0xe2   :  { %v741_v3 = vadd.f32 %v739_v40, %v693_v43  ;;  %v742_v38 = vadd.f32 %v740_v41, %v694_v18  ;;  %v747_v48 = vadd.f32 %v745_v9, %v699_v33  ;;  %v748_v46 = vadd.f32 %v746_v45, %v700_v60 }
  0xe3   :  { %v750_v49 = vstv %s2656_s20  ;;  %v756_v19 = vstv %s2658_s21  ;;  %v762_v42 = vstv %s2664_s1  ;;  %v768_v20 = vstv %s2666_s22  ;;  %s2981_s20 = sld [smem:[#allocation12 + $0x49]]  ;;  %s2983_s21 = sld [smem:[#allocation12 + $0x2]] }
  0xe4   :  { %v751_v35 = vmul.f32 %v750_v49, %v2176_v26  ;;  %v752_v37 = vmul.f32 %v750_v49, %v2178_v27  ;;  %v757_v50 = vmul.f32 %v756_v19, %v2176_v26  ;;  %v758_v51 = vmul.f32 %v756_v19, %v2178_v27  ;;  %s3001_s1 = sld [smem:[#allocation12 + $0x1a]] }
  0xe5   :  { %v763_v56 = vmul.f32 %v762_v42, %v2176_v26  ;;  %v764_v59 = vmul.f32 %v762_v42, %v2178_v27  ;;  %v769_v23 = vmul.f32 %v768_v20, %v2176_v26  ;;  %v770_v30 = vmul.f32 %v768_v20, %v2178_v27  ;;  %s3016_s22 = sld [smem:[#allocation12 + $0x32]] }
  0xe6   :  { %v753_v31 = vadd.f32 %v751_v35, %v705_v28  ;;  %v754_v32 = vadd.f32 %v752_v37, %v706_v57  ;;  %v759_v43 = vadd.f32 %v757_v50, %v711_v62  ;;  %v760_v18 = vadd.f32 %v758_v51, %v712_v24 }
  0xe7   :  { %v765_v33 = vadd.f32 %v763_v56, %v717_v63  ;;  %v766_v60 = vadd.f32 %v764_v59, %v718_v1  ;;  %v771_v34 = vadd.f32 %v769_v23, %v723_v25  ;;  %v772_v36 = vadd.f32 %v770_v30, %v724_v15 }
  0xe8   :  { %v774_v4 = vstv %s2676_s23  ;;  %v780_v54 = vstv %s2678_s24  ;;  %v786_v52 = vstv %s2684_s25  ;;  %v792_v53 = vstv %s2686_s26  ;;  %s3022_s23 = sld [smem:[#allocation12 + $0x4a]]  ;;  %s3024_s24 = sld [smem:[#allocation12 + $0x3]] }
  0xe9   :  { %v775_v17 = vmul.f32 %v774_v4, %v2176_v26  ;;  %v776_v22 = vmul.f32 %v774_v4, %v2178_v27  ;;  %v781_v21 = vmul.f32 %v780_v54, %v2176_v26  ;;  %v782_v47 = vmul.f32 %v780_v54, %v2178_v27  ;;  %s3044_s25 = sld [smem:[#allocation12 + $0x1b]] }
  0xea   :  { %v787_v11 = vmul.f32 %v786_v52, %v2176_v26  ;;  %v788_v16 = vmul.f32 %v786_v52, %v2178_v27  ;;  %v793_v28 = vmul.f32 %v792_v53, %v2268_v61  ;;  %v794_v57 = vmul.f32 %v792_v53, %v2294_v5  ;;  %s3046_s26 = sld [smem:[#allocation12 + $0x33]] }
  0xeb   :  { %v777_v62 = vadd.f32 %v775_v17, %v729_v39  ;;  %v778_v24 = vadd.f32 %v776_v22, %v730_v58  ;;  %v783_v63 = vadd.f32 %v781_v21, %v735_v6  ;;  %v784_v1 = vadd.f32 %v782_v47, %v736_v29 }
  0xec   :  { %v789_v25 = vadd.f32 %v787_v11, %v741_v3  ;;  %v790_v15 = vadd.f32 %v788_v16, %v742_v38  ;;  %v795_v2 = vadd.f32 %v793_v28, %v747_v48  ;;  %v796_v26 = vadd.f32 %v794_v57, %v748_v46 }
  0xed   :  { %v798_v44 = vstv %s2696_s27  ;;  %v804_v55 = vstv %s2698_s28  ;;  %v810_v27 = vstv %s2704_s29  ;;  %v816_v0 = vstv %s2706_s30  ;;  %s3048_s27 = sld [smem:[#allocation12 + $0x4b]]  ;;  %s3050_s28 = sld [smem:[#allocation12 + $0x4]] }
  0xee   :  { %v799_v10 = vmul.f32 %v798_v44, %v2268_v61  ;;  %v800_v12 = vmul.f32 %v798_v44, %v2294_v5  ;;  %v805_v13 = vmul.f32 %v804_v55, %v2268_v61  ;;  %v806_v14 = vmul.f32 %v804_v55, %v2294_v5  ;;  %s3064_s29 = sld [smem:[#allocation12 + $0x1c]] }
  0xef   :  { %v811_v40 = vmul.f32 %v810_v27, %v2268_v61  ;;  %v812_v41 = vmul.f32 %v810_v27, %v2294_v5  ;;  %v817_v9 = vmul.f32 %v816_v0, %v2268_v61  ;;  %v818_v45 = vmul.f32 %v816_v0, %v2294_v5  ;;  %s3066_s30 = sld [smem:[#allocation12 + $0x34]] }
  0xf0   :  { %v801_v39 = vadd.f32 %v799_v10, %v753_v31  ;;  %v802_v58 = vadd.f32 %v800_v12, %v754_v32  ;;  %v807_v6 = vadd.f32 %v805_v13, %v759_v43  ;;  %v808_v29 = vadd.f32 %v806_v14, %v760_v18 }
  0xf1   :  { %v813_v3 = vadd.f32 %v811_v40, %v765_v33  ;;  %v814_v38 = vadd.f32 %v812_v41, %v766_v60  ;;  %v819_v48 = vadd.f32 %v817_v9, %v771_v34  ;;  %v820_v46 = vadd.f32 %v818_v45, %v772_v36 }
  0xf2   :  { %v822_v49 = vstv %s2716_s8  ;;  %v828_v19 = vstv %s2718_s9  ;;  %v834_v42 = vstv %s2724_s0  ;;  %v840_v20 = vstv %s2726_s2  ;;  %s3072_s8 = sld [smem:[#allocation12 + $0x4c]]  ;;  %s3074_s9 = sld [smem:[#allocation12 + $0x5]] }
  0xf3   :  { %v823_v35 = vmul.f32 %v822_v49, %v2268_v61  ;;  %v824_v37 = vmul.f32 %v822_v49, %v2294_v5  ;;  %v829_v50 = vmul.f32 %v828_v19, %v2268_v61  ;;  %v830_v51 = vmul.f32 %v828_v19, %v2294_v5  ;;  %s3084_s0 = sld [smem:[#allocation12 + $0x1d]] }
  0xf4   :  { %v835_v56 = vmul.f32 %v834_v42, %v2268_v61  ;;  %v836_v59 = vmul.f32 %v834_v42, %v2294_v5  ;;  %v841_v23 = vadd.f32 %v840_v20, %v795_v2  ;;  %v842_v30 = vadd.f32 %v840_v20, %v796_v26  ;;  %s3086_s2 = sld [smem:[#allocation12 + $0x35]] }
  0xf5   :  { %v825_v31 = vadd.f32 %v823_v35, %v777_v62  ;;  %v826_v32 = vadd.f32 %v824_v37, %v778_v24  ;;  %v831_v43 = vadd.f32 %v829_v50, %v783_v63  ;;  %v832_v18 = vadd.f32 %v830_v51, %v784_v1 }
  0xf6   :  { %v837_v33 = vadd.f32 %v835_v56, %v789_v25  ;;  %v838_v60 = vadd.f32 %v836_v59, %v790_v15  ;;  %v2764_v34 = vmax.f32 %v841_v23, 0.0  ;;  %v2766_v36 = vmax.f32 %v842_v30, 0.0 }
  0xf7   :  { %v846_v61 = vstv %s2736_s4  ;;  %v852_v4 = vstv %s2738_s3  ;;  %v858_v5 = vstv %s2744_s5  ;;  %v864_v54 = vstv %s2746_s10  ;;  %s3092_s4 = sld [smem:[#allocation12 + $0x4d]]  ;;  %s3094_s3 = sld [smem:[#allocation12 + $0x6]] }
  0xf8   :  { %v847_v52 = vadd.f32 %v846_v61, %v801_v39  ;;  %v848_v53 = vadd.f32 %v846_v61, %v802_v58  ;;  %v853_v17 = vadd.f32 %v852_v4, %v807_v6  ;;  %v854_v22 = vadd.f32 %v852_v4, %v808_v29  ;;  %s3104_s5 = sld [smem:[#allocation12 + $0x1e]] }
  0xf9   :  { %v859_v21 = vadd.f32 %v858_v5, %v813_v3  ;;  %v860_v47 = vadd.f32 %v858_v5, %v814_v38  ;;  %v865_v11 = vadd.f32 %v864_v54, %v819_v48  ;;  %v866_v16 = vadd.f32 %v864_v54, %v820_v46  ;;  %s3106_s10 = sld [smem:[#allocation12 + $0x36]] }
  0xfa   :  { %v2772_v28 = vmax.f32 %v847_v52, 0.0  ;;  %v2774_v57 = vmax.f32 %v848_v53, 0.0  ;;  %v2776_v62 = vmax.f32 %v853_v17, 0.0  ;;  %v2778_v24 = vmax.f32 %v854_v22, 0.0 }
  0xfb   :  { %v2780_v63 = vmax.f32 %v859_v21, 0.0  ;;  %v2782_v1 = vmax.f32 %v860_v47, 0.0  ;;  %v2784_v25 = vmax.f32 %v865_v11, 0.0  ;;  %v2786_v15 = vmax.f32 %v866_v16, 0.0 }
  0xfc   :  { %v870_v2 = vstv %s2756_s11  ;;  %v876_v26 = vstv %s2760_s12  ;;  %v882_v44 = vstv %s2762_s13  ;;  %v887_v55 = vrot.slane %v2764_v34, 7  ;;  %s3112_s11 = sld [smem:[#allocation12 + $0x4e]]  ;;  %s3114_s12 = sld [smem:[#allocation12 + $0x7]] }
  0xfd   :  { %v871_v27 = vadd.f32 %v870_v2, %v825_v31  ;;  %v872_v0 = vadd.f32 %v870_v2, %v826_v32  ;;  %v877_v10 = vadd.f32 %v876_v26, %v831_v43  ;;  %v878_v12 = vadd.f32 %v876_v26, %v832_v18  ;;  %s3124_s13 = sld [smem:[#allocation12 + $0x1f]] }
  0xfe   :  { %v883_v13 = vadd.f32 %v882_v44, %v837_v33  ;;  %v884_v14 = vadd.f32 %v882_v44, %v838_v60  ;;  %v888_v40 = vrot.slane %v2772_v28, 7  ;;  %v889_v41 = vrot.slane %v2776_v62, 7 }
  0xff   :  { %v2794_v9 = vmax.f32 %v871_v27, 0.0  ;;  %v2796_v45 = vmax.f32 %v872_v0, 0.0  ;;  %v2798_v39 = vmax.f32 %v877_v10, 0.0  ;;  %v2800_v58 = vmax.f32 %v878_v12, 0.0 }
 0x100   :  { %v2802_v6 = vmax.f32 %v883_v13, 0.0  ;;  %v2804_v29 = vmax.f32 %v884_v14, 0.0  ;;  %v890_v3 = vrot.slane %v2780_v63, 7  ;;  %v891_v38 = vrot.slane %v2784_v25, 7 }
 0x101   :  { %3521 = vst [vmem:[#allocation22_spill] sm:$0xff] %v2798_v39  ;;  %3522 = vst [vmem:[#allocation23_spill] sm:$0xff] %v2800_v58  ;;  %v892_v48 = vrot.slane %v2794_v9, 7  ;;  %v893_v46 = vrot.slane %v2798_v39, 7  ;;  %v895_v49 = vrot.slane %v2766_v36, 7  ;;  %v896_v19 = vrot.slane %v2774_v57, 7 }
 0x102   :  { %3523 = vst [vmem:[#allocation24_spill] sm:$0xff] %v2802_v6  ;;  %3524 = vst [vmem:[#allocation25_spill] sm:$0xff] %v2804_v29  ;;  %v894_v42 = vrot.slane %v2802_v6, 7  ;;  %v897_v20 = vrot.slane %v2778_v24, 7  ;;  %v898_v35 = vrot.slane %v2782_v1, 7  ;;  %v899_v37 = vrot.slane %v2786_v15, 7 }
 0x103   :  { %v900_v50 = vrot.slane %v2796_v45, 7  ;;  %v901_v51 = vrot.slane %v2800_v58, 7  ;;  %v902_v56 = vrot.slane %v2804_v29, 7  ;;  %v2821_v59 = vsel %vm123_vm1, %v887_v55, %v895_v49 }
 0x104   :  { %v2825_v23 = vsel %vm123_vm1, %v888_v40, %v896_v19  ;;  %v2829_v30 = vsel %vm123_vm1, %v889_v41, %v897_v20  ;;  %v2833_v31 = vsel %vm123_vm1, %v890_v3, %v898_v35  ;;  %v2837_v32 = vsel %vm123_vm1, %v891_v38, %v899_v37 }
 0x105   :  { %v2841_v43 = vsel %vm123_vm1, %v892_v48, %v900_v50  ;;  %v2845_v18 = vsel %vm123_vm1, %v893_v46, %v901_v51  ;;  %v2849_v33 = vsel %vm123_vm1, %v894_v42, %v902_v56  ;;  %v911_v60 = vsel %vm123_vm1, %v895_v49, %v887_v55 }
 0x106   :  { %3525 = vst [vmem:[#allocation26_spill] sm:$0xff] %v2849_v33  ;;  %v912_v61 = vsel %vm123_vm1, %v896_v19, %v888_v40  ;;  %v913_v4 = vsel %vm123_vm1, %v897_v20, %v889_v41  ;;  %v914_v5 = vsel %vm123_vm1, %v898_v35, %v890_v3  ;;  %v915_v54 = vsel %vm123_vm1, %v899_v37, %v891_v38 }
 0x107   :  { %v916_v52 = vsel %vm123_vm1, %v900_v50, %v892_v48  ;;  %v917_v53 = vsel %vm123_vm1, %v901_v51, %v893_v46  ;;  %v918_v17 = vsel %vm123_vm1, %v902_v56, %v894_v42  ;;  %v2869_v22 = vsel %vm115_vm0, 0.0, %v911_v60 }
 0x108   :  { %v2873_v21 = vsel %vm115_vm0, 0.0, %v912_v61  ;;  %v2877_v47 = vsel %vm115_vm0, 0.0, %v913_v4  ;;  %v2881_v11 = vsel %vm115_vm0, 0.0, %v914_v5  ;;  %v2885_v16 = vsel %vm115_vm0, 0.0, %v915_v54 }
 0x109   :  { %v2889_v2 = vsel %vm115_vm0, 0.0, %v916_v52  ;;  %v2893_v26 = vsel %vm115_vm0, 0.0, %v917_v53  ;;  %v2897_v44 = vsel %vm115_vm0, 0.0, %v918_v17  ;;  %v935_v55 = vrot.slane %v2764_v34, 1 }
 0x10a   :  { %3526 = vst [vmem:[#allocation27_spill] sm:$0xff] %v2897_v44  ;;  %v936_v27 = vrot.slane %v2772_v28, 1  ;;  %v937_v0 = vrot.slane %v2776_v62, 1  ;;  %v938_v10 = vrot.slane %v2780_v63, 1  ;;  %v939_v12 = vrot.slane %v2784_v25, 1 }
 0x10b   :  { %v940_v13 = vrot.slane %v2794_v9, 1  ;;  %v941_v14 = vrot.slane %v2798_v39, 1  ;;  %v942_v40 = vrot.slane %v2802_v6, 1  ;;  %v943_v41 = vrot.slane %v2766_v36, 1 }
 0x10c   :  { %v944_v3 = vrot.slane %v2774_v57, 1  ;;  %v945_v38 = vrot.slane %v2778_v24, 1  ;;  %v946_v48 = vrot.slane %v2782_v1, 1  ;;  %v947_v46 = vrot.slane %v2786_v15, 1 }
 0x10d   :  { %v948_v49 = vrot.slane %v2796_v45, 1  ;;  %v949_v19 = vrot.slane %v2800_v58, 1  ;;  %v950_v42 = vrot.slane %v2804_v29, 1  ;;  %v2925_v20 = vsel %vm134_vm2, %v935_v55, %v943_v41 }
 0x10e   :  { %v2931_v35 = vsel %vm134_vm2, %v936_v27, %v944_v3  ;;  %v2935_v37 = vsel %vm134_vm2, %v937_v0, %v945_v38  ;;  %v2939_v50 = vsel %vm134_vm2, %v938_v10, %v946_v48  ;;  %v2943_v51 = vsel %vm134_vm2, %v939_v12, %v947_v46 }
 0x10f   :  { %v2951_v56 = vsel %vm134_vm2, %v940_v13, %v948_v49  ;;  %v2955_v60 = vsel %vm134_vm2, %v941_v14, %v949_v19  ;;  %v2959_v61 = vsel %vm134_vm2, %v942_v40, %v950_v42  ;;  %v959_v4 = vsel %vm134_vm2, %v943_v41, %v935_v55 }
 0x110   :  { %3527 = vst [vmem:[#allocation28_spill] sm:$0xff] %v2955_v60  ;;  %3528 = vst [vmem:[#allocation29_spill] sm:$0xff] %v2959_v61  ;;  %v960_v5 = vsel %vm134_vm2, %v944_v3, %v936_v27  ;;  %v961_v54 = vsel %vm134_vm2, %v945_v38, %v937_v0  ;;  %v962_v52 = vsel %vm134_vm2, %v946_v48, %v938_v10  ;;  %v2979_v27 = vsel %vm118_vm3, 0.0, %v959_v4 }
 0x111   :  { %v963_v53 = vsel %vm134_vm2, %v947_v46, %v939_v12  ;;  %v964_v17 = vsel %vm134_vm2, %v948_v49, %v940_v13  ;;  %v965_v61 = vsel %vm134_vm2, %v949_v19, %v941_v14  ;;  %v966_v55 = vsel %vm134_vm2, %v950_v42, %v942_v40 }
 0x112   :  { %v2987_v0 = vsel %vm118_vm3, 0.0, %v960_v5  ;;  %v2991_v10 = vsel %vm118_vm3, 0.0, %v961_v54  ;;  %v2995_v7 = vsel %vm118_vm3, 0.0, %v962_v52  ;;  %v2999_v12 = vsel %vm118_vm3, 0.0, %v963_v53 }
 0x113   :  { %v3005_v13 = vsel %vm118_vm3, 0.0, %v964_v17  ;;  %v3009_v14 = vsel %vm118_vm3, 0.0, %v965_v61  ;;  %v3013_v40 = vsel %vm118_vm3, 0.0, %v966_v55  ;;  %v984_v41 = vstv %s2900_s6  ;;  %s3126_s6 = sld [smem:[#allocation12 + $0x37]] }
 0x114   :  { %3529 = vst [vmem:[#allocation30_spill] sm:$0xff] %v3009_v14  ;;  %3530 = vst [vmem:[#allocation31_spill] sm:$0xff] %v3013_v40  ;;  %v985_v3 = vmul.f32 %v984_v41, %v2869_v22  ;;  %v986_v38 = vmul.f32 %v984_v41, %v2821_v59  ;;  %v988_v48 = vstv %s2906_s14  ;;  %v992_v46 = vstv %s2912_s15  ;;  %s3132_s14 = sld [smem:[#allocation12 + $0x4f]]  ;;  %s3134_s15 = sld [smem:[#allocation12 + $0x8]] }
 0x115   :  { %v989_v49 = vmul.f32 %v988_v48, %v2869_v22  ;;  %v990_v8 = vmul.f32 %v988_v48, %v2821_v59  ;;  %v993_v19 = vmul.f32 %v992_v46, %v2869_v22  ;;  %v994_v42 = vmul.f32 %v992_v46, %v2821_v59 }
 0x116   :  { %v996_v61 = vstv %s2918_s16  ;;  %v1000_v4 = vstv %s2927_s17  ;;  %v1006_v5 = vstv %s2945_s18  ;;  %v1012_v54 = vstv %s2947_s19  ;;  %s3144_s16 = sld [smem:[#allocation12 + $0x20]]  ;;  %s3154_s19 = sld [smem:[#allocation12 + $0x9]] }
 0x117   :  { %v997_v52 = vmul.f32 %v996_v61, %v2869_v22  ;;  %v998_v53 = vmul.f32 %v996_v61, %v2821_v59  ;;  %v1001_v17 = vmul.f32 %v1000_v4, %v2764_v34  ;;  %v1002_v55 = vmul.f32 %v1000_v4, %v2766_v36  ;;  %s3146_s17 = sld [smem:[#allocation12 + $0x38]] }
 0x118   :  { %v1007_v41 = vmul.f32 %v1006_v5, %v2764_v34  ;;  %v1008_v48 = vmul.f32 %v1006_v5, %v2766_v36  ;;  %v1013_v40 = vmul.f32 %v1012_v54, %v2764_v34  ;;  %v1014_v46 = vmul.f32 %v1012_v54, %v2766_v36  ;;  %s3152_s18 = sld [smem:[#allocation12 + $0x50]] }
 0x119   :  { %v1003_v29 = vadd.f32 %v1001_v17, %v985_v3  ;;  %v1004_v6 = vadd.f32 %v1002_v55, %v986_v38  ;;  %v1018_v33 = vstv %s2981_s20  ;;  %v1024_v22 = vstv %s2983_s21  ;;  %s3164_s20 = sld [smem:[#allocation12 + $0x21]] }
 0x11a   :  { %v1009_v59 = vadd.f32 %v1007_v41, %v989_v49  ;;  %v1010_v61 = vadd.f32 %v1008_v48, %v990_v8  ;;  %v1015_v4 = vadd.f32 %v1013_v40, %v993_v19  ;;  %v1016_v5 = vadd.f32 %v1014_v46, %v994_v42  ;;  %s3166_s21 = sld [smem:[#allocation12 + $0x39]] }
 0x11b   :  { %v1019_v3 = vmul.f32 %v1018_v33, %v2764_v34  ;;  %v1020_v38 = vmul.f32 %v1018_v33, %v2766_v36  ;;  %v1025_v54 = vmul.f32 %v1024_v22, %v2925_v20  ;;  %v1026_v17 = vmul.f32 %v1024_v22, %v2979_v27 }
 0x11c   :  { %v1030_v55 = vstv %s3001_s1  ;;  %v1036_v44 = vstv %s3016_s22  ;;  %v1042_v14 = vstv %s3022_s23  ;;  %v1048_v60 = vstv %s3024_s24  ;;  %s3172_s1 = sld [smem:[#allocation12 + $0x51]]  ;;  %s3174_s22 = sld [smem:[#allocation12 + $0xa]] }
 0x11d   :  { %v1021_v49 = vadd.f32 %v1019_v3, %v997_v52  ;;  %v1022_v8 = vadd.f32 %v1020_v38, %v998_v53  ;;  %v1027_v40 = vadd.f32 %v1025_v54, %v1003_v29  ;;  %v1028_v19 = vadd.f32 %v1026_v17, %v1004_v6  ;;  %s3184_s23 = sld [smem:[#allocation12 + $0x22]] }
 0x11e   :  { %v1031_v42 = vmul.f32 %v1030_v55, %v2925_v20  ;;  %v1032_v41 = vmul.f32 %v1030_v55, %v2979_v27  ;;  %v1037_v34 = vmul.f32 %v1036_v44, %v2925_v20  ;;  %v1038_v36 = vmul.f32 %v1036_v44, %v2979_v27  ;;  %s3186_s24 = sld [smem:[#allocation12 + $0x3a]] }
 0x11f   :  { %v1043_v33 = vmul.f32 %v1042_v14, %v2925_v20  ;;  %v1044_v29 = vmul.f32 %v1042_v14, %v2979_v27  ;;  %v1049_v6 = vmul.f32 %v1048_v60, %v2873_v21  ;;  %v1050_v52 = vmul.f32 %v1048_v60, %v2825_v23 }
 0x120   :  { %v1033_v44 = vadd.f32 %v1031_v42, %v1009_v59  ;;  %v1034_v53 = vadd.f32 %v1032_v41, %v1010_v61  ;;  %v1039_v48 = vadd.f32 %v1037_v34, %v1015_v4  ;;  %v1040_v46 = vadd.f32 %v1038_v36, %v1016_v5 }
 0x121   :  { %v1045_v22 = vadd.f32 %v1043_v33, %v1021_v49  ;;  %v1046_v3 = vadd.f32 %v1044_v29, %v1022_v8  ;;  %v1051_v38 = vadd.f32 %v1049_v6, %v1027_v40  ;;  %v1052_v20 = vadd.f32 %v1050_v52, %v1028_v19 }
 0x122   :  { %v1054_v54 = vstv %s3044_s25  ;;  %v1060_v17 = vstv %s3046_s26  ;;  %v1066_v27 = vstv %s3048_s27  ;;  %v1072_v14 = vstv %s3050_s28  ;;  %s3192_s25 = sld [smem:[#allocation12 + $0x52]]  ;;  %s3194_s26 = sld [smem:[#allocation12 + $0xb]] }
 0x123   :  { %v1055_v55 = vmul.f32 %v1054_v54, %v2873_v21  ;;  %v1056_v60 = vmul.f32 %v1054_v54, %v2825_v23  ;;  %v1061_v58 = vmul.f32 %v1060_v17, %v2873_v21  ;;  %v1062_v39 = vmul.f32 %v1060_v17, %v2825_v23  ;;  %s3204_s27 = sld [smem:[#allocation12 + $0x23]] }
 0x124   :  { %v1067_v59 = vmul.f32 %v1066_v27, %v2873_v21  ;;  %v1068_v61 = vmul.f32 %v1066_v27, %v2825_v23  ;;  %v1073_v4 = vmul.f32 %v1072_v14, %v2772_v28  ;;  %v1074_v5 = vmul.f32 %v1072_v14, %v2774_v57  ;;  %s3206_s28 = sld [smem:[#allocation12 + $0x3b]] }
 0x125   :  { %v1057_v49 = vadd.f32 %v1055_v55, %v1033_v44  ;;  %v1058_v8 = vadd.f32 %v1056_v60, %v1034_v53  ;;  %v1063_v40 = vadd.f32 %v1061_v58, %v1039_v48  ;;  %v1064_v19 = vadd.f32 %v1062_v39, %v1040_v46 }
 0x126   :  { %v1069_v42 = vadd.f32 %v1067_v59, %v1045_v22  ;;  %v1070_v41 = vadd.f32 %v1068_v61, %v1046_v3  ;;  %v1075_v34 = vadd.f32 %v1073_v4, %v1051_v38  ;;  %v1076_v21 = vadd.f32 %v1074_v5, %v1052_v20 }
 0x127   :  { %v1078_v36 = vstv %s3064_s29  ;;  %v1084_v33 = vstv %s3066_s30  ;;  %v1090_v23 = vstv %s3072_s8  ;;  %v1096_v29 = vstv %s3074_s9  ;;  %s3212_s29 = sld [smem:[#allocation12 + $0x53]]  ;;  %s3214_s30 = sld [smem:[#allocation12 + $0xc]] }
 0x128   :  { %v1079_v6 = vmul.f32 %v1078_v36, %v2772_v28  ;;  %v1080_v52 = vmul.f32 %v1078_v36, %v2774_v57  ;;  %v1085_v54 = vmul.f32 %v1084_v33, %v2772_v28  ;;  %v1086_v17 = vmul.f32 %v1084_v33, %v2774_v57  ;;  %s3224_s8 = sld [smem:[#allocation12 + $0x24]] }
 0x129   :  { %v1091_v39 = vmul.f32 %v1090_v23, %v2772_v28  ;;  %v1092_v58 = vmul.f32 %v1090_v23, %v2774_v57  ;;  %v1097_v44 = vmul.f32 %v1096_v29, %v2931_v35  ;;  %v1098_v53 = vmul.f32 %v1096_v29, %v2987_v0  ;;  %s3226_s9 = sld [smem:[#allocation12 + $0x3c]] }
 0x12a   :  { %v1081_v48 = vadd.f32 %v1079_v6, %v1057_v49  ;;  %v1082_v46 = vadd.f32 %v1080_v52, %v1058_v8  ;;  %v1087_v22 = vadd.f32 %v1085_v54, %v1063_v40  ;;  %v1088_v3 = vadd.f32 %v1086_v17, %v1064_v19 }
 0x12b   :  { %v1093_v38 = vadd.f32 %v1091_v39, %v1069_v42  ;;  %v1094_v20 = vadd.f32 %v1092_v58, %v1070_v41  ;;  %v1099_v27 = vadd.f32 %v1097_v44, %v1075_v34  ;;  %v1100_v28 = vadd.f32 %v1098_v53, %v1076_v21 }
 0x12c   :  { %v1102_v14 = vstv %s3084_s0  ;;  %v1108_v55 = vstv %s3086_s2  ;;  %v1114_v57 = vstv %s3092_s4  ;;  %v1120_v60 = vstv %s3094_s3  ;;  %s3232_s0 = sld [smem:[#allocation12 + $0x54]]  ;;  %s3234_s2 = sld [smem:[#allocation12 + $0xd]] }
 0x12d   :  { %v1103_v59 = vmul.f32 %v1102_v14, %v2931_v35  ;;  %v1104_v61 = vmul.f32 %v1102_v14, %v2987_v0  ;;  %v1109_v4 = vmul.f32 %v1108_v55, %v2931_v35  ;;  %v1110_v5 = vmul.f32 %v1108_v55, %v2987_v0  ;;  %s3244_s4 = sld [smem:[#allocation12 + $0x25]] }
 0x12e   :  { %v1115_v49 = vmul.f32 %v1114_v57, %v2931_v35  ;;  %v1116_v8 = vmul.f32 %v1114_v57, %v2987_v0  ;;  %v1121_v40 = vmul.f32 %v1120_v60, %v2877_v47  ;;  %v1122_v19 = vmul.f32 %v1120_v60, %v2829_v30  ;;  %s3246_s3 = sld [smem:[#allocation12 + $0x3d]] }
 0x12f   :  { %v1105_v42 = vadd.f32 %v1103_v59, %v1081_v48  ;;  %v1106_v41 = vadd.f32 %v1104_v61, %v1082_v46  ;;  %v1111_v34 = vadd.f32 %v1109_v4, %v1087_v22  ;;  %v1112_v21 = vadd.f32 %v1110_v5, %v1088_v3 }
 0x130   :  { %v1117_v36 = vadd.f32 %v1115_v49, %v1093_v38  ;;  %v1118_v33 = vadd.f32 %v1116_v8, %v1094_v20  ;;  %v1123_v23 = vadd.f32 %v1121_v40, %v1099_v27  ;;  %v1124_v35 = vadd.f32 %v1122_v19, %v1100_v28 }
 0x131   :  { %v1126_v29 = vstv %s3104_s5  ;;  %v1132_v6 = vstv %s3106_s10  ;;  %v1138_v0 = vstv %s3112_s11  ;;  %v1144_v52 = vstv %s3114_s12  ;;  %s3252_s5 = sld [smem:[#allocation12 + $0x55]]  ;;  %s3254_s10 = sld [smem:[#allocation12 + $0xe]] }
 0x132   :  { %v1127_v54 = vmul.f32 %v1126_v29, %v2877_v47  ;;  %v1128_v17 = vmul.f32 %v1126_v29, %v2829_v30  ;;  %v1133_v39 = vmul.f32 %v1132_v6, %v2877_v47  ;;  %v1134_v58 = vmul.f32 %v1132_v6, %v2829_v30  ;;  %s3264_s11 = sld [smem:[#allocation12 + $0x26]] }
 0x133   :  { %v1139_v44 = vmul.f32 %v1138_v0, %v2877_v47  ;;  %v1140_v53 = vmul.f32 %v1138_v0, %v2829_v30  ;;  %v1145_v48 = vmul.f32 %v1144_v52, %v2776_v62  ;;  %v1146_v46 = vmul.f32 %v1144_v52, %v2778_v24  ;;  %s3266_s12 = sld [smem:[#allocation12 + $0x3e]] }
 0x134   :  { %v1129_v22 = vadd.f32 %v1127_v54, %v1105_v42  ;;  %v1130_v3 = vadd.f32 %v1128_v17, %v1106_v41  ;;  %v1135_v38 = vadd.f32 %v1133_v39, %v1111_v34  ;;  %v1136_v20 = vadd.f32 %v1134_v58, %v1112_v21 }
 0x135   :  { %v1141_v27 = vadd.f32 %v1139_v44, %v1117_v36  ;;  %v1142_v28 = vadd.f32 %v1140_v53, %v1118_v33  ;;  %v1147_v14 = vadd.f32 %v1145_v48, %v1123_v23  ;;  %v1148_v47 = vadd.f32 %v1146_v46, %v1124_v35 }
 0x136   :  { %v1150_v55 = vstv %s3124_s13  ;;  %v1156_v57 = vstv %s3126_s6  ;;  %v1162_v30 = vstv %s3132_s14  ;;  %v1168_v60 = vstv %s3134_s15  ;;  %s3272_s13 = sld [smem:[#allocation12 + $0x56]]  ;;  %s3274_s6 = sld [smem:[#allocation12 + $0xf]] }
 0x137   :  { %v1151_v59 = vmul.f32 %v1150_v55, %v2776_v62  ;;  %v1152_v61 = vmul.f32 %v1150_v55, %v2778_v24  ;;  %v1157_v4 = vmul.f32 %v1156_v57, %v2776_v62  ;;  %v1158_v5 = vmul.f32 %v1156_v57, %v2778_v24  ;;  %s3284_s14 = sld [smem:[#allocation12 + $0x27]] }
 0x138   :  { %v1163_v49 = vmul.f32 %v1162_v30, %v2776_v62  ;;  %v1164_v8 = vmul.f32 %v1162_v30, %v2778_v24  ;;  %v1169_v40 = vmul.f32 %v1168_v60, %v2935_v37  ;;  %v1170_v19 = vmul.f32 %v1168_v60, %v2991_v10  ;;  %s3286_s15 = sld [smem:[#allocation12 + $0x3f]] }
 0x139   :  { %v1153_v42 = vadd.f32 %v1151_v59, %v1129_v22  ;;  %v1154_v41 = vadd.f32 %v1152_v61, %v1130_v3  ;;  %v1159_v34 = vadd.f32 %v1157_v4, %v1135_v38  ;;  %v1160_v21 = vadd.f32 %v1158_v5, %v1136_v20 }
 0x13a   :  { %v1165_v36 = vadd.f32 %v1163_v49, %v1141_v27  ;;  %v1166_v33 = vadd.f32 %v1164_v8, %v1142_v28  ;;  %v1171_v23 = vadd.f32 %v1169_v40, %v1147_v14  ;;  %v1172_v62 = vadd.f32 %v1170_v19, %v1148_v47 }
 0x13b   :  { %v1174_v35 = vstv %s3144_s16  ;;  %v1180_v29 = vstv %s3146_s17  ;;  %v1186_v24 = vstv %s3152_s18  ;;  %v1192_v6 = vstv %s3154_s19  ;;  %s3292_s16 = sld [smem:[#allocation12 + $0x57]]  ;;  %s3294_s17 = sld [smem:[#allocation12 + $0x10]] }
 0x13c   :  { %v1175_v0 = vmul.f32 %v1174_v35, %v2935_v37  ;;  %v1176_v52 = vmul.f32 %v1174_v35, %v2991_v10  ;;  %v1181_v54 = vmul.f32 %v1180_v29, %v2935_v37  ;;  %v1182_v17 = vmul.f32 %v1180_v29, %v2991_v10  ;;  %s3304_s18 = sld [smem:[#allocation12 + $0x28]] }
 0x13d   :  { %v1187_v39 = vmul.f32 %v1186_v24, %v2935_v37  ;;  %v1188_v58 = vmul.f32 %v1186_v24, %v2991_v10  ;;  %v1193_v44 = vmul.f32 %v1192_v6, %v2881_v11  ;;  %v1194_v53 = vmul.f32 %v1192_v6, %v2833_v31  ;;  %s3306_s19 = sld [smem:[#allocation12 + $0x40]] }
 0x13e   :  { %v1177_v48 = vadd.f32 %v1175_v0, %v1153_v42  ;;  %v1178_v46 = vadd.f32 %v1176_v52, %v1154_v41  ;;  %v1183_v22 = vadd.f32 %v1181_v54, %v1159_v34  ;;  %v1184_v3 = vadd.f32 %v1182_v17, %v1160_v21 }
 0x13f   :  { %v1189_v38 = vadd.f32 %v1187_v39, %v1165_v36  ;;  %v1190_v20 = vadd.f32 %v1188_v58, %v1166_v33  ;;  %v1195_v27 = vadd.f32 %v1193_v44, %v1171_v23  ;;  %v1196_v37 = vadd.f32 %v1194_v53, %v1172_v62 }
 0x140   :  { %v1198_v28 = vstv %s3164_s20  ;;  %v1204_v14 = vstv %s3166_s21  ;;  %v1210_v10 = vstv %s3172_s1  ;;  %v1216_v47 = vstv %s3174_s22  ;;  %s3312_s20 = sld [smem:[#allocation12 + $0x58]]  ;;  %s3314_s21 = sld [smem:[#allocation12 + $0x11]] }
 0x141   :  { %v1199_v55 = vmul.f32 %v1198_v28, %v2881_v11  ;;  %v1200_v57 = vmul.f32 %v1198_v28, %v2833_v31  ;;  %v1205_v30 = vmul.f32 %v1204_v14, %v2881_v11  ;;  %v1206_v60 = vmul.f32 %v1204_v14, %v2833_v31  ;;  %s3324_s1 = sld [smem:[#allocation12 + $0x29]] }
 0x142   :  { %v1211_v59 = vmul.f32 %v1210_v10, %v2881_v11  ;;  %v1212_v61 = vmul.f32 %v1210_v10, %v2833_v31  ;;  %v1217_v4 = vmul.f32 %v1216_v47, %v2780_v63  ;;  %v1218_v5 = vmul.f32 %v1216_v47, %v2782_v1  ;;  %s3326_s22 = sld [smem:[#allocation12 + $0x41]] }
 0x143   :  { %v1201_v49 = vadd.f32 %v1199_v55, %v1177_v48  ;;  %v1202_v8 = vadd.f32 %v1200_v57, %v1178_v46  ;;  %v1207_v40 = vadd.f32 %v1205_v30, %v1183_v22  ;;  %v1208_v19 = vadd.f32 %v1206_v60, %v1184_v3 }
 0x144   :  { %v1213_v42 = vadd.f32 %v1211_v59, %v1189_v38  ;;  %v1214_v41 = vadd.f32 %v1212_v61, %v1190_v20  ;;  %v1219_v34 = vadd.f32 %v1217_v4, %v1195_v27  ;;  %v1220_v11 = vadd.f32 %v1218_v5, %v1196_v37 }
 0x145   :  { %v1222_v21 = vstv %s3184_s23  ;;  %v1228_v36 = vstv %s3186_s24  ;;  %v1234_v31 = vstv %s3192_s25  ;;  %v1240_v33 = vstv %s3194_s26  ;;  %s3332_s23 = sld [smem:[#allocation12 + $0x59]]  ;;  %s3334_s24 = sld [smem:[#allocation12 + $0x12]] }
 0x146   :  { %v1223_v23 = vmul.f32 %v1222_v21, %v2780_v63  ;;  %v1224_v62 = vmul.f32 %v1222_v21, %v2782_v1  ;;  %v1229_v35 = vmul.f32 %v1228_v36, %v2780_v63  ;;  %v1230_v29 = vmul.f32 %v1228_v36, %v2782_v1  ;;  %s3344_s25 = sld [smem:[#allocation12 + $0x2a]] }
 0x147   :  { %v1235_v24 = vmul.f32 %v1234_v31, %v2780_v63  ;;  %v1236_v6 = vmul.f32 %v1234_v31, %v2782_v1  ;;  %v1241_v0 = vmul.f32 %v1240_v33, %v2939_v50  ;;  %v1242_v52 = vmul.f32 %v1240_v33, %v2995_v7  ;;  %s3346_s26 = sld [smem:[#allocation12 + $0x42]] }
 0x148   :  { %v1225_v54 = vadd.f32 %v1223_v23, %v1201_v49  ;;  %v1226_v17 = vadd.f32 %v1224_v62, %v1202_v8  ;;  %v1231_v39 = vadd.f32 %v1229_v35, %v1207_v40  ;;  %v1232_v58 = vadd.f32 %v1230_v29, %v1208_v19 }
 0x149   :  { %v1237_v44 = vadd.f32 %v1235_v24, %v1213_v42  ;;  %v1238_v53 = vadd.f32 %v1236_v6, %v1214_v41  ;;  %v1243_v48 = vadd.f32 %v1241_v0, %v1219_v34  ;;  %v1244_v63 = vadd.f32 %v1242_v52, %v1220_v11 }
 0x14a   :  { %v1246_v46 = vstv %s3204_s27  ;;  %v1252_v22 = vstv %s3206_s28  ;;  %v1258_v1 = vstv %s3212_s29  ;;  %v1264_v3 = vstv %s3214_s30  ;;  %s3352_s27 = sld [smem:[#allocation12 + $0x5a]]  ;;  %s3354_s28 = sld [smem:[#allocation12 + $0x13]] }
 0x14b   :  { %v1247_v38 = vmul.f32 %v1246_v46, %v2939_v50  ;;  %v1248_v20 = vmul.f32 %v1246_v46, %v2995_v7  ;;  %v1253_v27 = vmul.f32 %v1252_v22, %v2939_v50  ;;  %v1254_v37 = vmul.f32 %v1252_v22, %v2995_v7  ;;  %s3364_s29 = sld [smem:[#allocation12 + $0x2b]] }
 0x14c   :  { %v1259_v28 = vmul.f32 %v1258_v1, %v2939_v50  ;;  %v1260_v14 = vmul.f32 %v1258_v1, %v2995_v7  ;;  %v1265_v10 = vmul.f32 %v1264_v3, %v2885_v16  ;;  %v1266_v47 = vmul.f32 %v1264_v3, %v2837_v32  ;;  %s3366_s30 = sld [smem:[#allocation12 + $0x43]] }
 0x14d   :  { %v1249_v55 = vadd.f32 %v1247_v38, %v1225_v54  ;;  %v1250_v57 = vadd.f32 %v1248_v20, %v1226_v17  ;;  %v1255_v30 = vadd.f32 %v1253_v27, %v1231_v39  ;;  %v1256_v60 = vadd.f32 %v1254_v37, %v1232_v58 }
 0x14e   :  { %v1261_v59 = vadd.f32 %v1259_v28, %v1237_v44  ;;  %v1262_v61 = vadd.f32 %v1260_v14, %v1238_v53  ;;  %v1267_v4 = vadd.f32 %v1265_v10, %v1243_v48  ;;  %v1268_v50 = vadd.f32 %v1266_v47, %v1244_v63 }
 0x14f   :  { %v1270_v5 = vstv %s3224_s8  ;;  %v1276_v49 = vstv %s3226_s9  ;;  %v1282_v7 = vstv %s3232_s0  ;;  %v1288_v8 = vstv %s3234_s2  ;;  %s3372_s8 = sld [smem:[#allocation12 + $0x5b]]  ;;  %s3374_s9 = sld [smem:[#allocation12 + $0x14]] }
 0x150   :  { %v1271_v40 = vmul.f32 %v1270_v5, %v2885_v16  ;;  %v1272_v19 = vmul.f32 %v1270_v5, %v2837_v32  ;;  %v1277_v42 = vmul.f32 %v1276_v49, %v2885_v16  ;;  %v1278_v41 = vmul.f32 %v1276_v49, %v2837_v32  ;;  %s3384_s0 = sld [smem:[#allocation12 + $0x2c]] }
 0x151   :  { %v1283_v34 = vmul.f32 %v1282_v7, %v2885_v16  ;;  %v1284_v11 = vmul.f32 %v1282_v7, %v2837_v32  ;;  %v1289_v21 = vmul.f32 %v1288_v8, %v2784_v25  ;;  %v1290_v36 = vmul.f32 %v1288_v8, %v2786_v15  ;;  %s3386_s2 = sld [smem:[#allocation12 + $0x44]] }
 0x152   :  { %v1273_v31 = vadd.f32 %v1271_v40, %v1249_v55  ;;  %v1274_v33 = vadd.f32 %v1272_v19, %v1250_v57  ;;  %v1279_v23 = vadd.f32 %v1277_v42, %v1255_v30  ;;  %v1280_v62 = vadd.f32 %v1278_v41, %v1256_v60 }
 0x153   :  { %v1285_v35 = vadd.f32 %v1283_v34, %v1261_v59  ;;  %v1286_v29 = vadd.f32 %v1284_v11, %v1262_v61  ;;  %v1291_v24 = vadd.f32 %v1289_v21, %v1267_v4  ;;  %v1292_v16 = vadd.f32 %v1290_v36, %v1268_v50 }
 0x154   :  { %v1294_v6 = vstv %s3244_s4  ;;  %v1300_v0 = vstv %s3246_s3  ;;  %v1306_v32 = vstv %s3252_s5  ;;  %v1312_v52 = vstv %s3254_s10  ;;  %s3392_s4 = sld [smem:[#allocation12 + $0x5c]]  ;;  %s3394_s3 = sld [smem:[#allocation12 + $0x15]] }
 0x155   :  { %v1295_v54 = vmul.f32 %v1294_v6, %v2784_v25  ;;  %v1296_v17 = vmul.f32 %v1294_v6, %v2786_v15  ;;  %v1301_v39 = vmul.f32 %v1300_v0, %v2784_v25  ;;  %v1302_v58 = vmul.f32 %v1300_v0, %v2786_v15  ;;  %s3404_s5 = sld [smem:[#allocation12 + $0x2d]] }
 0x156   :  { %v1307_v44 = vmul.f32 %v1306_v32, %v2784_v25  ;;  %v1308_v53 = vmul.f32 %v1306_v32, %v2786_v15  ;;  %v1313_v48 = vmul.f32 %v1312_v52, %v2943_v51  ;;  %v1314_v63 = vmul.f32 %v1312_v52, %v2999_v12  ;;  %s3406_s10 = sld [smem:[#allocation12 + $0x45]] }
 0x157   :  { %v1297_v46 = vadd.f32 %v1295_v54, %v1273_v31  ;;  %v1298_v22 = vadd.f32 %v1296_v17, %v1274_v33  ;;  %v1303_v1 = vadd.f32 %v1301_v39, %v1279_v23  ;;  %v1304_v3 = vadd.f32 %v1302_v58, %v1280_v62 }
 0x158   :  { %v1309_v38 = vadd.f32 %v1307_v44, %v1285_v35  ;;  %v1310_v20 = vadd.f32 %v1308_v53, %v1286_v29  ;;  %v1315_v27 = vadd.f32 %v1313_v48, %v1291_v24  ;;  %v1316_v25 = vadd.f32 %v1314_v63, %v1292_v16 }
 0x159   :  { %v1318_v37 = vstv %s3264_s11  ;;  %v1324_v28 = vstv %s3266_s12  ;;  %v1330_v15 = vstv %s3272_s13  ;;  %v1336_v14 = vstv %s3274_s6  ;;  %s3412_s11 = sld [smem:[#allocation12 + $0x5d]]  ;;  %s3414_s12 = sld [smem:[#allocation12 + $0x16]] }
 0x15a   :  { %v1319_v10 = vmul.f32 %v1318_v37, %v2943_v51  ;;  %v1320_v47 = vmul.f32 %v1318_v37, %v2999_v12  ;;  %v1325_v55 = vmul.f32 %v1324_v28, %v2943_v51  ;;  %v1326_v57 = vmul.f32 %v1324_v28, %v2999_v12  ;;  %s3424_s13 = sld [smem:[#allocation12 + $0x2e]] }
 0x15b   :  { %v1331_v30 = vmul.f32 %v1330_v15, %v2943_v51  ;;  %v1332_v60 = vmul.f32 %v1330_v15, %v2999_v12  ;;  %v1337_v59 = vmul.f32 %v1336_v14, %v2889_v2  ;;  %v1338_v61 = vmul.f32 %v1336_v14, %v2841_v43  ;;  %s3426_s6 = sld [smem:[#allocation12 + $0x46]] }
 0x15c   :  { %v1321_v4 = vadd.f32 %v1319_v10, %v1297_v46  ;;  %v1322_v50 = vadd.f32 %v1320_v47, %v1298_v22  ;;  %v1327_v5 = vadd.f32 %v1325_v55, %v1303_v1  ;;  %v1328_v49 = vadd.f32 %v1326_v57, %v1304_v3 }
 0x15d   :  { %v1333_v7 = vadd.f32 %v1331_v30, %v1309_v38  ;;  %v1334_v8 = vadd.f32 %v1332_v60, %v1310_v20  ;;  %v1339_v40 = vadd.f32 %v1337_v59, %v1315_v27  ;;  %v1340_v51 = vadd.f32 %v1338_v61, %v1316_v25 }
 0x15e   :  { %v1342_v19 = vstv %s3284_s14  ;;  %v1348_v42 = vstv %s3286_s15  ;;  %v1354_v12 = vstv %s3292_s16  ;;  %v1360_v41 = vstv %s3294_s17  ;;  %s3432_s14 = sld [smem:[#allocation12 + $0x5e]]  ;;  %s3434_s15 = sld [smem:[#allocation12 + $0x17]] }
 0x15f   :  { %v1343_v34 = vmul.f32 %v1342_v19, %v2889_v2  ;;  %v1344_v11 = vmul.f32 %v1342_v19, %v2841_v43  ;;  %v1349_v21 = vmul.f32 %v1348_v42, %v2889_v2  ;;  %v1350_v36 = vmul.f32 %v1348_v42, %v2841_v43  ;;  %s3444_s16 = sld [smem:[#allocation12 + $0x2f]] }
 0x160   :  { %v1355_v31 = vmul.f32 %v1354_v12, %v2889_v2  ;;  %v1356_v33 = vmul.f32 %v1354_v12, %v2841_v43  ;;  %v1361_v23 = vmul.f32 %v1360_v41, %v2794_v9  ;;  %v1362_v62 = vmul.f32 %v1360_v41, %v2796_v45  ;;  %s3446_s17 = sld [smem:[#allocation12 + $0x47]] }
 0x161   :  { %v1345_v35 = vadd.f32 %v1343_v34, %v1321_v4  ;;  %v1346_v29 = vadd.f32 %v1344_v11, %v1322_v50  ;;  %v1351_v24 = vadd.f32 %v1349_v21, %v1327_v5  ;;  %v1352_v16 = vadd.f32 %v1350_v36, %v1328_v49 }
 0x162   :  { %v1357_v6 = vadd.f32 %v1355_v31, %v1333_v7  ;;  %v1358_v0 = vadd.f32 %v1356_v33, %v1334_v8  ;;  %v1363_v32 = vadd.f32 %v1361_v23, %v1339_v40  ;;  %v1364_v2 = vadd.f32 %v1362_v62, %v1340_v51  ;;  %v3531_v31 = vld [vmem:[#allocation22_spill] sm:$0xff]  ;;  %v3532_v23 = vld [vmem:[#allocation23_spill] sm:$0xff] }
 0x163   :  { %v1366_v52 = vstv %s3304_s18  ;;  %v1372_v54 = vstv %s3306_s19  ;;  %v1378_v43 = vstv %s3312_s20  ;;  %v1384_v17 = vstv %s3314_s21  ;;  %s3452_s18 = sld [smem:[#allocation12 + $0x5f]]  ;;  %s3454_s19 = sld [smem:[#allocation13]] }
 0x164   :  { %v1367_v39 = vmul.f32 %v1366_v52, %v2794_v9  ;;  %v1368_v58 = vmul.f32 %v1366_v52, %v2796_v45  ;;  %v1373_v44 = vmul.f32 %v1372_v54, %v2794_v9  ;;  %v1374_v53 = vmul.f32 %v1372_v54, %v2796_v45  ;;  %s3464_s20 = sld [smem:[#allocation13 + $0x1]]  ;;  %s3470_s21 = sld [smem:[#allocation13 + $0x2]] }
 0x165   :  { %v1379_v48 = vmul.f32 %v1378_v43, %v2794_v9  ;;  %v1380_v63 = vmul.f32 %v1378_v43, %v2796_v45  ;;  %v1385_v46 = vmul.f32 %v1384_v17, %v2951_v56  ;;  %v1386_v22 = vmul.f32 %v1384_v17, %v3005_v13 }
 0x166   :  { %v1369_v1 = vadd.f32 %v1367_v39, %v1345_v35  ;;  %v1370_v3 = vadd.f32 %v1368_v58, %v1346_v29  ;;  %v1375_v38 = vadd.f32 %v1373_v44, %v1351_v24  ;;  %v1376_v20 = vadd.f32 %v1374_v53, %v1352_v16 }
 0x167   :  { %v1381_v27 = vadd.f32 %v1379_v48, %v1357_v6  ;;  %v1382_v25 = vadd.f32 %v1380_v63, %v1358_v0  ;;  %v1387_v37 = vadd.f32 %v1385_v46, %v1363_v32  ;;  %v1388_v9 = vadd.f32 %v1386_v22, %v1364_v2  ;;  %v3533_v48 = vld [vmem:[#allocation28_spill] sm:$0xff]  ;;  %v3534_v46 = vld [vmem:[#allocation30_spill] sm:$0xff] }
 0x168   :  { %v1390_v28 = vstv %s3324_s1  ;;  %v1396_v15 = vstv %s3326_s22  ;;  %v1402_v45 = vstv %s3332_s23  ;;  %v1408_v14 = vstv %s3334_s24  ;;  %s3472_s1 = sld [smem:[#allocation13 + $0x3]]  ;;  %s2002_s22 = smov [#allocation15]  }
 0x169   :  { %v1391_v10 = vmul.f32 %v1390_v28, %v2951_v56  ;;  %v1392_v47 = vmul.f32 %v1390_v28, %v3005_v13  ;;  %v1397_v55 = vmul.f32 %v1396_v15, %v2951_v56  ;;  %v1398_v57 = vmul.f32 %v1396_v15, %v3005_v13  ;;  %s1628_s23 = sshll.u32 %s2002_s22, 4  ;;  %s1629_s23 = int_to_ptr.vmem [resolvable:$true] %s1628_s23 }
 0x16a   :  { %v1403_v30 = vmul.f32 %v1402_v45, %v2951_v56  ;;  %v1404_v60 = vmul.f32 %v1402_v45, %v3005_v13  ;;  %v1409_v59 = vmul.f32 %v1408_v14, %v2893_v26  ;;  %v1410_v61 = vmul.f32 %v1408_v14, %v2845_v18  ;;  %s1959_s24 = scalar_lea.vmem %s1629_s23, 128  ;;  %p1964_p11 = scmp.lt.s32.totalorder %s1629_s23, %s1629_s23 }
 0x16b   :  { %v1393_v4 = vadd.f32 %v1391_v10, %v1369_v1  ;;  %v1394_v50 = vadd.f32 %v1392_v47, %v1370_v3  ;;  %v1399_v5 = vadd.f32 %v1397_v55, %v1375_v38  ;;  %v1400_v49 = vadd.f32 %v1398_v57, %v1376_v20  ;;  %p1960_p10 = scmp.ne.s32.totalorder %s1629_s23, %s1959_s24  ;;  %p1965_p12 = scmp.lt.s32.totalorder %s1959_s24, %s1959_s24 }
 0x16c   :  { %v1405_v7 = vadd.f32 %v1403_v30, %v1381_v27  ;;  %v1406_v8 = vadd.f32 %v1404_v60, %v1382_v25  ;;  %v1411_v40 = vadd.f32 %v1409_v59, %v1387_v37  ;;  %v1412_v56 = vadd.f32 %v1410_v61, %v1388_v9  ;;  %v3535_v59 = vld [vmem:[#allocation27_spill] sm:$0xff] }
 0x16d   :  { %v1414_v51 = vstv %s3344_s25  ;;  %v1420_v19 = vstv %s3346_s26  ;;  %v1426_v13 = vstv %s3352_s27  ;;  %v1432_v42 = vstv %s3354_s28  ;;  %p1966_p13 = por %p1965_p12, %p1964_p11 }
 0x16e   :  { %v1415_v12 = vmul.f32 %v1414_v51, %v2893_v26  ;;  %v1416_v41 = vmul.f32 %v1414_v51, %v2845_v18  ;;  %v1421_v34 = vmul.f32 %v1420_v19, %v2893_v26  ;;  %v1422_v11 = vmul.f32 %v1420_v19, %v2845_v18 }
 0x16f   :  { %v1427_v21 = vmul.f32 %v1426_v13, %v2893_v26  ;;  %v1428_v36 = vmul.f32 %v1426_v13, %v2845_v18  ;;  %v1433_v33 = vmul.f32 %v1432_v42, %v3531_v31  ;;  %v1434_v62 = vmul.f32 %v1432_v42, %v3532_v23  ;;  %p1967_p0 = pnand %p1966_p13, %p1960_p10 }
 0x170   :  { %v1417_v35 = vadd.f32 %v1415_v12, %v1393_v4  ;;  %v1418_v29 = vadd.f32 %v1416_v41, %v1394_v50  ;;  %v1423_v24 = vadd.f32 %v1421_v34, %v1399_v5  ;;  %v1424_v16 = vadd.f32 %v1422_v11, %v1400_v49  ;;  %v3536_v4 = vld [vmem:[#allocation26_spill] sm:$0xff] }
 0x171   :  { %v1429_v6 = vadd.f32 %v1427_v21, %v1405_v7  ;;  %v1430_v0 = vadd.f32 %v1428_v36, %v1406_v8  ;;  %v1435_v32 = vadd.f32 %v1433_v33, %v1411_v40  ;;  %v1436_v26 = vadd.f32 %v1434_v62, %v1412_v56 }
 0x172   :  { %v1438_v2 = vstv %s3364_s29  ;;  %v1444_v52 = vstv %s3366_s30  ;;  %v1450_v18 = vstv %s3372_s8  ;;  %v1456_v54 = vstv %s3374_s9 }
 0x173   :  { %v1439_v43 = vmul.f32 %v1438_v2, %v3531_v31  ;;  %v1440_v17 = vmul.f32 %v1438_v2, %v3532_v23  ;;  %v1445_v39 = vmul.f32 %v1444_v52, %v3531_v31  ;;  %v1446_v58 = vmul.f32 %v1444_v52, %v3532_v23 }
 0x174   :  { %v1451_v44 = vmul.f32 %v1450_v18, %v3531_v31  ;;  %v1452_v53 = vmul.f32 %v1450_v18, %v3532_v23  ;;  %v1457_v63 = vmul.f32 %v1456_v54, %v3533_v48  ;;  %v1458_v22 = vmul.f32 %v1456_v54, %v3534_v46  ;;  %v3537_v23 = vld [vmem:[#allocation24_spill] sm:$0xff] }
 0x175   :  { %v1441_v1 = vadd.f32 %v1439_v43, %v1417_v35  ;;  %v1442_v3 = vadd.f32 %v1440_v17, %v1418_v29  ;;  %v1447_v38 = vadd.f32 %v1445_v39, %v1423_v24  ;;  %v1448_v20 = vadd.f32 %v1446_v58, %v1424_v16  ;;  %v3538_v35 = vld [vmem:[#allocation25_spill] sm:$0xff] }
 0x176   :  { %v1453_v27 = vadd.f32 %v1451_v44, %v1429_v6  ;;  %v1454_v25 = vadd.f32 %v1452_v53, %v1430_v0  ;;  %v1459_v37 = vadd.f32 %v1457_v63, %v1435_v32  ;;  %v1460_v9 = vadd.f32 %v1458_v22, %v1436_v26 }
 0x177   :  { %v1462_v28 = vstv %s3384_s0  ;;  %v1468_v15 = vstv %s3386_s2  ;;  %v1474_v45 = vstv %s3392_s4  ;;  %v1480_v14 = vstv %s3394_s3 }
 0x178   :  { %v1463_v10 = vmul.f32 %v1462_v28, %v3533_v48  ;;  %v1464_v47 = vmul.f32 %v1462_v28, %v3534_v46  ;;  %v1469_v55 = vmul.f32 %v1468_v15, %v3533_v48  ;;  %v1470_v57 = vmul.f32 %v1468_v15, %v3534_v46 }
 0x179   :  { %v1475_v30 = vmul.f32 %v1474_v45, %v3533_v48  ;;  %v1476_v60 = vmul.f32 %v1474_v45, %v3534_v46  ;;  %v1481_v61 = vmul.f32 %v1480_v14, %v3535_v59  ;;  %v1482_v50 = vmul.f32 %v1480_v14, %v3536_v4  ;;  %v3539_v46 = vld [vmem:[#allocation29_spill] sm:$0xff] }
 0x17a   :  { %v1465_v5 = vadd.f32 %v1463_v10, %v1441_v1  ;;  %v1466_v49 = vadd.f32 %v1464_v47, %v1442_v3  ;;  %v1471_v7 = vadd.f32 %v1469_v55, %v1447_v38  ;;  %v1472_v8 = vadd.f32 %v1470_v57, %v1448_v20  ;;  %v3540_v1 = vld [vmem:[#allocation31_spill] sm:$0xff] }
 0x17b   :  { %v1477_v40 = vadd.f32 %v1475_v30, %v1453_v27  ;;  %v1478_v56 = vadd.f32 %v1476_v60, %v1454_v25  ;;  %v1483_v51 = vadd.f32 %v1481_v61, %v1459_v37  ;;  %v1484_v19 = vadd.f32 %v1482_v50, %v1460_v9 }
 0x17c   :  { %v1486_v13 = vstv %s3404_s5  ;;  %v1492_v42 = vstv %s3406_s10  ;;  %v1498_v12 = vstv %s3412_s11  ;;  %v1504_v41 = vstv %s3414_s12 }
 0x17d   :  { %v1487_v34 = vmul.f32 %v1486_v13, %v3535_v59  ;;  %v1488_v11 = vmul.f32 %v1486_v13, %v3536_v4  ;;  %v1493_v21 = vmul.f32 %v1492_v42, %v3535_v59  ;;  %v1494_v36 = vmul.f32 %v1492_v42, %v3536_v4 }
 0x17e   :  { %v1499_v31 = vmul.f32 %v1498_v12, %v3535_v59  ;;  %v1500_v33 = vmul.f32 %v1498_v12, %v3536_v4  ;;  %v1505_v62 = vmul.f32 %v1504_v41, %v3537_v23  ;;  %v1506_v29 = vmul.f32 %v1504_v41, %v3538_v35 }
 0x17f   :  { %v1489_v24 = vadd.f32 %v1487_v34, %v1465_v5  ;;  %v1490_v16 = vadd.f32 %v1488_v11, %v1466_v49  ;;  %v1495_v6 = vadd.f32 %v1493_v21, %v1471_v7  ;;  %v1496_v0 = vadd.f32 %v1494_v36, %v1472_v8 }
 0x180   :  { %v1501_v32 = vadd.f32 %v1499_v31, %v1477_v40  ;;  %v1502_v26 = vadd.f32 %v1500_v33, %v1478_v56  ;;  %v1507_v2 = vadd.f32 %v1505_v62, %v1483_v51  ;;  %v1508_v52 = vadd.f32 %v1506_v29, %v1484_v19 }
 0x181   :  { %v1510_v18 = vstv %s3424_s13  ;;  %v1516_v54 = vstv %s3426_s6  ;;  %v1522_v43 = vstv %s3432_s14  ;;  %v1528_v17 = vstv %s3434_s15 }
 0x182   :  { %v1511_v39 = vmul.f32 %v1510_v18, %v3537_v23  ;;  %v1512_v58 = vmul.f32 %v1510_v18, %v3538_v35  ;;  %v1517_v44 = vmul.f32 %v1516_v54, %v3537_v23  ;;  %v1518_v53 = vmul.f32 %v1516_v54, %v3538_v35 }
 0x183   :  { %v1523_v48 = vmul.f32 %v1522_v43, %v3537_v23  ;;  %v1524_v63 = vmul.f32 %v1522_v43, %v3538_v35  ;;  %v1529_v22 = vmul.f32 %v1528_v17, %v3539_v46  ;;  %v1530_v3 = vmul.f32 %v1528_v17, %v3540_v1 }
 0x184   :  { %v1513_v38 = vadd.f32 %v1511_v39, %v1489_v24  ;;  %v1514_v20 = vadd.f32 %v1512_v58, %v1490_v16  ;;  %v1519_v27 = vadd.f32 %v1517_v44, %v1495_v6  ;;  %v1520_v25 = vadd.f32 %v1518_v53, %v1496_v0 }
 0x185   :  { %v1525_v37 = vadd.f32 %v1523_v48, %v1501_v32  ;;  %v1526_v9 = vadd.f32 %v1524_v63, %v1502_v26  ;;  %v1531_v28 = vadd.f32 %v1529_v22, %v1507_v2  ;;  %v1532_v15 = vadd.f32 %v1530_v3, %v1508_v52 }
 0x186   :  { %v1534_v45 = vstv %s3444_s16  ;;  %v1540_v14 = vstv %s3446_s17  ;;  %v1546_v10 = vstv %s3452_s18  ;;  %v1552_v47 = vstv %s3454_s19 }
 0x187   :  { %v1535_v55 = vmul.f32 %v1534_v45, %v3539_v46  ;;  %v1536_v57 = vmul.f32 %v1534_v45, %v3540_v1  ;;  %v1541_v30 = vmul.f32 %v1540_v14, %v3539_v46  ;;  %v1542_v60 = vmul.f32 %v1540_v14, %v3540_v1 }
 0x188   :  { %v1547_v59 = vmul.f32 %v1546_v10, %v3539_v46  ;;  %v1548_v61 = vmul.f32 %v1546_v10, %v3540_v1  ;;  %v1553_v4 = vadd.f32 %v1552_v47, %v1531_v28  ;;  %v1554_v50 = vadd.f32 %v1552_v47, %v1532_v15 }
 0x189   :  { %v1537_v5 = vadd.f32 %v1535_v55, %v1513_v38  ;;  %v1538_v49 = vadd.f32 %v1536_v57, %v1514_v20  ;;  %v1543_v7 = vadd.f32 %v1541_v30, %v1519_v27  ;;  %v1544_v8 = vadd.f32 %v1542_v60, %v1520_v25 }
 0x18a   :  { %v1549_v40 = vadd.f32 %v1547_v59, %v1525_v37  ;;  %v1550_v56 = vadd.f32 %v1548_v61, %v1526_v9  ;;  %v1555_v51 = vmax.f32 %v1553_v4, 0.0  ;;  %v1556_v19 = vmax.f32 %v1554_v50, 0.0 }
 0x18b   :  { %v1558_v13 = vstv %s3464_s20  ;;  %v1564_v42 = vstv %s3470_s21  ;;  %v1570_v12 = vstv %s3472_s1 }
 0x18c   :  { %v1559_v41 = vadd.f32 %v1558_v13, %v1537_v5  ;;  %v1560_v34 = vadd.f32 %v1558_v13, %v1538_v49  ;;  %v1565_v11 = vadd.f32 %v1564_v42, %v1543_v7  ;;  %v1566_v21 = vadd.f32 %v1564_v42, %v1544_v8 }
 0x18d   :  { %v1571_v36 = vadd.f32 %v1570_v12, %v1549_v40  ;;  %v1572_v31 = vadd.f32 %v1570_v12, %v1550_v56  ;;  %v1575_v33 = vadd.f32 %v1556_v19, %v1555_v51 }
 0x18e   :  { %v1561_v23 = vmax.f32 %v1559_v41, 0.0  ;;  %v1562_v62 = vmax.f32 %v1560_v34, 0.0  ;;  %v1567_v35 = vmax.f32 %v1565_v11, 0.0  ;;  %v1568_v29 = vmax.f32 %v1566_v21, 0.0 }
 0x18f   :  { %v1573_v24 = vmax.f32 %v1571_v36, 0.0  ;;  %v1574_v16 = vmax.f32 %v1572_v31, 0.0  ;;  %v1576_v6 = vrot.slane %v1575_v33, 4 }
 0x190   :  { %v1582_v0 = vadd.f32 %v1562_v62, %v1561_v23  ;;  %v1589_v32 = vadd.f32 %v1568_v29, %v1567_v35 }
 0x191   :  { %v1577_v26 = vadd.f32 %v1576_v6, %v1575_v33  ;;  %v1596_v2 = vadd.f32 %v1574_v16, %v1573_v24 }
 0x192   :  { %v1583_v52 = vrot.slane %v1582_v0, 4  ;;  %v1590_v18 = vrot.slane %v1589_v32, 4 }
 0x193   :  { %v1578_v54 = vrot.slane %v1577_v26, 2  ;;  %v1597_v43 = vrot.slane %v1596_v2, 4 }
 0x194   :  { %v1584_v17 = vadd.f32 %v1583_v52, %v1582_v0  ;;  %v1591_v39 = vadd.f32 %v1590_v18, %v1589_v32 }
 0x195   :  { %v1579_v58 = vadd.f32 %v1578_v54, %v1577_v26  ;;  %v1598_v44 = vadd.f32 %v1597_v43, %v1596_v2 }
 0x196   :  { %v1585_v53 = vrot.slane %v1584_v17, 2  ;;  %v1592_v48 = vrot.slane %v1591_v39, 2 }
 0x197   :  { %v1580_v63 = vrot.slane %v1579_v58, 1  ;;  %v1599_v46 = vrot.slane %v1598_v44, 2 }
 0x198   :  { %v1586_v22 = vadd.f32 %v1585_v53, %v1584_v17  ;;  %v1593_v1 = vadd.f32 %v1592_v48, %v1591_v39 }
 0x199   :  { %v1581_v3 = vadd.f32 %v1580_v63, %v1579_v58  ;;  %v1600_v38 = vadd.f32 %v1599_v46, %v1598_v44 }
 0x19a   :  { %v1587_v20 = vrot.slane %v1586_v22, 1  ;;  %v1594_v27 = vrot.slane %v1593_v1, 1 }
 0x19b   :  { %v1601_v25 = vrot.slane %v1600_v38, 1  ;;  %v1604_v28 = vmul.f32 0.0625, %v1581_v3 }
 0x19c   :  { %v1588_v37 = vadd.f32 %v1587_v20, %v1586_v22  ;;  %v1595_v9 = vadd.f32 %v1594_v27, %v1593_v1 }
 0x19d   :  { %v1602_v15 = vadd.f32 %v1601_v25, %v1600_v38 }
 0x19e   :  { %v1605_v45 = vmul.f32 0.0625, %v1588_v37  ;;  %v1606_v14 = vmul.f32 0.0625, %v1595_v9 }
 0x19f   :  { %v1607_v10 = vmul.f32 0.0625, %v1602_v15 }
 0x1a0   :  { %v1613_v47 = vsel %vm1612_vm4, %v1605_v45, %v1604_v28 }
 0x1a1   :  { %v1615_v55 = vsel %vm1614_vm5, %v1606_v14, %v1613_v47 }
 0x1a2   :  { %v1617_v57 = vsel %vm1616_vm6, %v1607_v10, %v1615_v55 }
 0x1a3   :  { %v1620_v30 = vsel %vm1619_vm7, %v1617_v57, 0.0 }
 0x1a4   :  { %1621 = vst [vmem:[#allocation15] sm:$0xff] %v1620_v30 }
 0x1a5   :  { %1970 = shalt.err (!%p1967_p0)
}
 0x1a6   :  { %s1971_s27 = scalar_lea.hbm %s3506_s7, 128 }
 0x1a7   :  { %p1972_p1 = scmp.ne.s32.totalorder %s3506_s7, %s1971_s27  ;;  %p1975_p2 = scmp.lt.u32.totalorder %s1971_s27, %s3506_s7 }
 0x1a9   :  { %p1977_p3 = pnand %p1975_p2, %p1972_p1 }
 0x1ab   :  { %1980 = shalt.err (!%p1977_p3)
}
 0x1ac   :  { %1631 = dma.vmem_to_hbm [thread:$0]  %s1629_s23, 128, %s3506_s7, [#allocation4]  }
 0x1ad   :  { %1991 = dma.done.wait [#allocation4], 128  }
 0x1ae   :  { %1992 = vsyncadd [#allocation4], 4294967168 }
 0x1af   :  { %1635 = vsyncpa [#allocation3], 1 }
 0x1b0   :  { %1636 = vsyncpa [#allocation4], 1 }
 0x1b1   :  { %1637 = vsyncpa [#allocation5], 1 }
 0x1b2   :  { %1638 = vsyncpa [#allocation8], 1 }
 0x1b3   :  { %1639 = vsyncpa [#allocation11], 1 }
 0x1b4   :  { %1640 = vsyncpa [#allocation14], 1 }

</bundles_post_ra>
